<compile_context>
chip_gen: v7x
topology: tpu7x:2x2x1
jax: 0.10.0
libtpu: 0.0.40
codegen_flags: <defaults>
</compile_context>

<pallas_src>
import functools

import jax
import jax.numpy as jnp
from jax import lax
from jax.experimental import pallas as pl
from jax.experimental.pallas import tpu as pltpu


_UNROLL_T_MAX = 32          # fully unroll (static Python loop) up to this many steps
_LANE = 128                 # lane width: gate slabs / output padded to multiples of this
_SUBLANE = 8                # batch padded to multiples of this

_VMEM = pl.BlockSpec(memory_space=pltpu.MemorySpace.VMEM)


def _round_up(x, m):
    return ((x + m - 1) // m) * m


# ----------------------------------------------------------------------------
# Fused Pallas kernel
# ----------------------------------------------------------------------------
def fused_lstm_attn_kernel(
    # inputs
    x_ref,      # (T*Bp, Din)   time-major flattened input (batch padded to Bp)
    wih0_ref,   # (Din, 4*Hp)   gate slabs lane-aligned (each gate = Hp lanes)
    whh0_ref,   # (Hp, 4*Hp)
    b0_ref,     # (1, 4*Hp)     b_ih_l0 + b_hh_l0
    w1_ref,     # (2*Hp, 4*Hp)  [wih1 ; whh1] stacked along K
    b1_ref,     # (1, 4*Hp)     b_ih_l1 + b_hh_l1
    wa_ref,     # (Hp, Hp)
    ba_ref,     # (1, Hp)       padded lanes = -1e30 (masked out of softmax)
    wf_ref,     # (Hp, Dp)
    bf_ref,     # (1, Dp)
    # outputs
    out_ref,    # (T*Bp, Dp)    lane-dense padded output
    # scratch
    gin0_sc,    # (T*Bp, 4*Hp)  hoisted layer-0 input projection
    h1_sc,      # (T*Bp, Hp)    layer-1 hidden states for all timesteps
    *,
    seq_len,
    batch,      # padded batch Bp (multiple of 8)
    hidden,     # padded hidden Hp (multiple of 128)
):
    T, Bp, Hp = seq_len, batch, hidden

    # ---- (1) hoisted layer-0 input projection: one big MXU matmul ----------
    gin0_sc[...] = (
        jnp.dot(x_ref[...], wih0_ref[...], preferred_element_type=jnp.float32)
        + b0_ref[...]
    )

    # ---- (2) loop-invariant weights / broadcasts loaded ONCE ----------------
    whh0 = whh0_ref[...]
    w1 = w1_ref[...]
    b1b = jnp.broadcast_to(b1_ref[...], (Bp, 4 * Hp))   # hoisted broadcast

    zeros = jnp.zeros((Bp, Hp), jnp.float32)

    def cell(gates, c_prev):
        # PyTorch gate order [i | f | g | o]; each slab is Hp (=128k) lanes wide,
        # so every slice below is a whole-vreg, lane-aligned read.
        i_g = jax.nn.sigmoid(gates[:, 0 * Hp:1 * Hp])
        f_g = jax.nn.sigmoid(gates[:, 1 * Hp:2 * Hp])
        g_g = jnp.tanh(gates[:, 2 * Hp:3 * Hp])
        o_g = jax.nn.sigmoid(gates[:, 3 * Hp:4 * Hp])
        c_t = f_g * c_prev + i_g * g_g
        h_t = o_g * jnp.tanh(c_t)
        return h_t, c_t

    def step(row, carry):
        h0_p, c0_p, h1_p, c1_p = carry
        # layer 0: precomputed input gates + recurrent term (1 MXU push)
        g0 = gin0_sc[pl.ds(row, Bp), :] + jnp.dot(
            h0_p, whh0, preferred_element_type=jnp.float32)
        h0_t, c0_t = cell(g0, c0_p)
        # layer 1: single merged matmul  [h0_t | h1_p] @ [wih1 ; whh1]  (1 MXU push)
        g1 = jnp.dot(jnp.concatenate([h0_t, h1_p], axis=-1), w1,
                     preferred_element_type=jnp.float32) + b1b
        h1_t, c1_t = cell(g1, c1_p)
        h1_sc[pl.ds(row, Bp), :] = h1_t          # single aligned store per step
        return h0_t, c0_t, h1_t, c1_t

    carry = (zeros, zeros, zeros, zeros)
    if T <= _UNROLL_T_MAX:
        # fully unrolled static time loop: static, sublane-aligned slice starts.
        for t in range(T):
            carry = step(t * Bp, carry)
    else:
        # partial unroll: cross-step scheduling without vreg-pressure blowup.
        lax.fori_loop(
            0, T,
            lambda t, c: step(pl.multiple_of(t * Bp, Bp), c),
            carry, unroll=8)

    # ---- (3) attention gate + FC head: two big lane-dense matmuls ----------
    h = h1_sc[...]                                                  # (T*Bp, Hp)
    logits = (
        jnp.dot(h, wa_ref[...], preferred_element_type=jnp.float32)
        + ba_ref[...]                    # padded lanes get -1e30 -> softmax mass 0
    )
    m = jnp.max(logits, axis=-1, keepdims=True)
    e = jnp.exp(logits - m)
    attn = e * pl.reciprocal(jnp.sum(e, axis=-1, keepdims=True), approx=True)
    weighted = attn * h                                             # (T*Bp, Hp)
    out_ref[...] = (
        jnp.dot(weighted, wf_ref[...], preferred_element_type=jnp.float32)
        + bf_ref[...]
    )


# ----------------------------------------------------------------------------
# Parameter handling
# ----------------------------------------------------------------------------
def init_params(key, input_size, hidden_size, output_size):
    """PyTorch-style parameters (gate order i, f, g, o; separate ih/hh bias)."""
    H = hidden_size
    ks = jax.random.split(key, 12)
    s = 1.0 / jnp.sqrt(H)

    def u(k, shape):
        return jax.random.uniform(k, shape, jnp.float32, -s, s)

    return {
        "w_ih_l0": u(ks[0], (4 * H, input_size)),
        "w_hh_l0": u(ks[1], (4 * H, H)),
        "b_ih_l0": u(ks[2], (4 * H,)),
        "b_hh_l0": u(ks[3], (4 * H,)),
        "w_ih_l1": u(ks[4], (4 * H, H)),
        "w_hh_l1": u(ks[5], (4 * H, H)),
        "b_ih_l1": u(ks[6], (4 * H,)),
        "b_hh_l1": u(ks[7], (4 * H,)),
        "w_attn": u(ks[8], (H, H)),
        "b_attn": u(ks[9], (H,)),
        "w_fc": u(ks[10], (output_size, H)),
        "b_fc": u(ks[11], (output_size,)),
    }


def prepare_params(params):
    """One-time layout prep: transpose to (in, out), lane-align gate slabs (pad H to a
    multiple of 128 with zeros), stack layer-1 weights along K, pad Dout to 128 lanes,
    and fold the LSTM biases. Padded weight rows/cols and biases are zero, so padded
    hidden lanes stay exactly zero through the recurrence; the attention bias is padded
    with -1e30 so the softmax is over exactly the real H features."""
    f32 = lambda a: jnp.asarray(a, jnp.float32)
    H = params["w_hh_l0"].shape[1]
    Din = params["w_ih_l0"].shape[1]
    Dout = params["w_fc"].shape[0]
    Hp = _round_up(H, _LANE)
    Dp = _round_up(Dout, _LANE)

    def pad_gate_w(w, k_in, k_pad):
        # torch (4H, k_in) -> (k_pad, 4*Hp) with lane-aligned [i|f|g|o] slabs
        w = f32(w).T.reshape(k_in, 4, H)
        w = jnp.pad(w, ((0, k_pad - k_in), (0, 0), (0, Hp - H)))
        return w.reshape(k_pad, 4 * Hp)

    def pad_gate_b(b):
        b = f32(b).reshape(4, H)
        b = jnp.pad(b, ((0, 0), (0, Hp - H)))
        return b.reshape(1, 4 * Hp)

    wih1 = pad_gate_w(params["w_ih_l1"], H, Hp)
    whh1 = pad_gate_w(params["w_hh_l1"], H, Hp)

    return {
        "wih0": pad_gate_w(params["w_ih_l0"], Din, Din),
        "whh0": pad_gate_w(params["w_hh_l0"], H, Hp),
        "b0": pad_gate_b(params["b_ih_l0"] + params["b_hh_l0"]),
        "w1": jnp.concatenate([wih1, whh1], axis=0),            # (2*Hp, 4*Hp)
        "b1": pad_gate_b(params["b_ih_l1"] + params["b_hh_l1"]),
        "wa": jnp.pad(f32(params["w_attn"]).T, ((0, Hp - H), (0, Hp - H))),
        "ba": jnp.pad(f32(params["b_attn"])[None, :], ((0, 0), (0, Hp - H)),
                      constant_values=-1e30),
        "wf": jnp.pad(f32(params["w_fc"]).T, ((0, Hp - H), (0, Dp - Dout))),
        "bf": jnp.pad(f32(params["b_fc"])[None, :], ((0, 0), (0, Dp - Dout))),
    }


# ----------------------------------------------------------------------------
# Forward wrapper
# ----------------------------------------------------------------------------
@functools.partial(jax.jit, static_argnames=("out_size",))
def lstm_attention_forward(x_btd, prepped, out_size):
    """x_btd: (B, T, input_size) float32, batch-first like the PyTorch module."""
    B, T, Din = x_btd.shape
    Hp = prepped["whh0"].shape[0]
    Dp = prepped["wf"].shape[1]
    Bp = _round_up(B, _SUBLANE)

    # pad batch to a sublane multiple; batch-first -> time-major rows (row = t*Bp + b)
    x_p = jnp.pad(x_btd.astype(jnp.float32), ((0, Bp - B), (0, 0), (0, 0)))
    x_tb = jnp.transpose(x_p, (1, 0, 2)).reshape(T * Bp, Din)

    n_rows = T * Bp
    footprint = 4 * (
        n_rows * (Din + Dp + 4 * Hp + Hp)                         # x, out, scratches
        + Din * 4 * Hp + Hp * 4 * Hp + 2 * Hp * 4 * Hp            # weights
        + Hp * Hp + Hp * Dp
        + 2 * 4 * Hp + Hp + Dp                                    # biases
    )
    vmem_limit = int(min(128 * 1024 * 1024, max(32 * 1024 * 1024, 2 * footprint)))

    kernel = functools.partial(
        fused_lstm_attn_kernel, seq_len=T, batch=Bp, hidden=Hp)
    out_tb = pl.pallas_call(
        kernel,
        out_shape=jax.ShapeDtypeStruct((n_rows, Dp), jnp.float32),
        in_specs=[_VMEM] * 10,
        out_specs=_VMEM,
        scratch_shapes=[
            pltpu.VMEM((n_rows, 4 * Hp), jnp.float32),   # hoisted input gates
            pltpu.VMEM((n_rows, Hp), jnp.float32),       # layer-1 hidden states
        ],
        compiler_params=pltpu.CompilerParams(vmem_limit_bytes=vmem_limit),
    )(
        x_tb,
        prepped["wih0"], prepped["whh0"], prepped["b0"],
        prepped["w1"], prepped["b1"],
        prepped["wa"], prepped["ba"], prepped["wf"], prepped["bf"],
    )

    out = jnp.transpose(out_tb.reshape(T, Bp, Dp), (1, 0, 2))    # (Bp, T, Dp)
    return out[:B, :, :out_size]                                 # (B, T, Dout)


# ----------------------------------------------------------------------------
# Pure-JAX reference (mirrors the PyTorch module, eval mode)
# ----------------------------------------------------------------------------
def reference_forward(x_btd, params):
    B, T, _ = x_btd.shape
    H = params["w_hh_l0"].shape[1]

    def lstm_layer(xs_btd, w_ih, w_hh, b_ih, b_hh):
        def cell(carry, x_t):
            h, c = carry
            gates = x_t @ w_ih.T + h @ w_hh.T + b_ih + b_hh
            i, f, g, o = jnp.split(gates, 4, axis=-1)
            c = jax.nn.sigmoid(f) * c + jax.nn.sigmoid(i) * jnp.tanh(g)
            h = jax.nn.sigmoid(o) * jnp.tanh(c)
            return (h, c), h

        init = (jnp.zeros((B, H), jnp.float32), jnp.zeros((B, H), jnp.float32))
        _, hs = lax.scan(cell, init, jnp.transpose(xs_btd, (1, 0, 2)))
        return jnp.transpose(hs, (1, 0, 2))

    h = lstm_layer(x_btd, params["w_ih_l0"], params["w_hh_l0"],
                   params["b_ih_l0"], params["b_hh_l0"])
    h = lstm_layer(h, params["w_ih_l1"], params["w_hh_l1"],
                   params["b_ih_l1"], params["b_hh_l1"])
    logits = h @ params["w_attn"].T + params["b_attn"]
    attn = jax.nn.softmax(logits, axis=-1)
    return (attn * h) @ params["w_fc"].T + params["b_fc"]


if __name__ == "__main__":
    B, T = 2, 8
    INPUT_SIZE, HIDDEN_SIZE, OUTPUT_SIZE = 1, 32, 1

    key = jax.random.PRNGKey(0)
    k_x, k_p = jax.random.split(key)
    x = jax.random.normal(k_x, (B, T, INPUT_SIZE), dtype=jnp.float32)
    params = init_params(k_p, INPUT_SIZE, HIDDEN_SIZE, OUTPUT_SIZE)
    prepped = prepare_params(params)

    out = lstm_attention_forward(x, prepped, OUTPUT_SIZE)
    out = jax.block_until_ready(out)

    assert out.shape == (B, T, OUTPUT_SIZE), out.shape
    assert bool(jnp.all(jnp.isfinite(out)))

    ref = reference_forward(x, params)
    max_err = float(jnp.max(jnp.abs(out - ref)))
    assert max_err < 5e-3, f"mismatch vs reference: {max_err}"

    print("KERNEL_OK")
</pallas_src>

<mosaic_0001>
module attributes {stable_mosaic.version = 11 : i64} {
  func.func @fused_lstm_attn_kernel(%arg0: memref<64x1xf32, #tpu.memory_space<vmem>>, %arg1: memref<1x512xf32, #tpu.memory_space<vmem>>, %arg2: memref<128x512xf32, #tpu.memory_space<vmem>>, %arg3: memref<1x512xf32, #tpu.memory_space<vmem>>, %arg4: memref<256x512xf32, #tpu.memory_space<vmem>>, %arg5: memref<1x512xf32, #tpu.memory_space<vmem>>, %arg6: memref<128x128xf32, #tpu.memory_space<vmem>>, %arg7: memref<1x128xf32, #tpu.memory_space<vmem>>, %arg8: memref<128x128xf32, #tpu.memory_space<vmem>>, %arg9: memref<1x128xf32, #tpu.memory_space<vmem>>, %arg10: memref<64x128xf32, #tpu.memory_space<vmem>>, %arg11: memref<64x512xf32, #tpu.memory_space<vmem>>, %arg12: memref<64x128xf32, #tpu.memory_space<vmem>>) attributes {dimension_semantics = [], scalar_prefetch = 0 : i64, scratch_operands = 2 : i64, tpu.core_type = #tpu.core_type<tc>} {
    %c0 = arith.constant 0 : index
    %c0_0 = arith.constant 0 : index
    %0 = vector.load %arg0[%c0, %c0_0] : memref<64x1xf32, #tpu.memory_space<vmem>>, vector<64x1xf32>
    %c0_1 = arith.constant 0 : index
    %c0_2 = arith.constant 0 : index
    %1 = vector.load %arg1[%c0_1, %c0_2] : memref<1x512xf32, #tpu.memory_space<vmem>>, vector<1x512xf32>
    %cst = arith.constant dense<0.000000e+00> : vector<64x512xf32>
    %2 = tpu.matmul %0, %1, %cst {dimension_numbers = #tpu.dot_dimension_numbers<[1], [0], [0], [1], [0, 0, 1, 1], [], []>} : vector<64x1xf32>, vector<1x512xf32>, vector<64x512xf32> -> vector<64x512xf32>
    %c0_3 = arith.constant 0 : index
    %c0_4 = arith.constant 0 : index
    %3 = vector.load %arg3[%c0_3, %c0_4] : memref<1x512xf32, #tpu.memory_space<vmem>>, vector<1x512xf32>
    %4 = vector.broadcast %3 : vector<1x512xf32> to vector<64x512xf32>
    %5 = arith.addf %2, %4 : vector<64x512xf32>
    %c0_5 = arith.constant 0 : index
    %c0_6 = arith.constant 0 : index
    %6 = vector.load %arg11[%c0_5, %c0_6] : memref<64x512xf32, #tpu.memory_space<vmem>>, vector<64x512xf32>
    tpu.vector_store %arg11[%c0_5, %c0_6], %5 {strides = array<i32>} : memref<64x512xf32, #tpu.memory_space<vmem>>, vector<64x512xf32>,
    %c0_7 = arith.constant 0 : index
    %c0_8 = arith.constant 0 : index
    %7 = vector.load %arg2[%c0_7, %c0_8] : memref<128x512xf32, #tpu.memory_space<vmem>>, vector<128x512xf32>
    %c0_9 = arith.constant 0 : index
    %c0_10 = arith.constant 0 : index
    %8 = vector.load %arg4[%c0_9, %c0_10] : memref<256x512xf32, #tpu.memory_space<vmem>>, vector<256x512xf32>
    %c0_11 = arith.constant 0 : index
    %c0_12 = arith.constant 0 : index
    %9 = vector.load %arg5[%c0_11, %c0_12] : memref<1x512xf32, #tpu.memory_space<vmem>>, vector<1x512xf32>
    %10 = vector.shape_cast %9 : vector<1x512xf32> to vector<1x512xf32>
    %11 = vector.broadcast %10 : vector<1x512xf32> to vector<8x512xf32>
    %cst_13 = arith.constant 0.000000e+00 : f32
    %12 = vector.broadcast %cst_13 : f32 to vector<8x128xf32>
    %c0_14 = arith.constant 0 : index
    %c0_15 = arith.constant 0 : index
    %13 = vector.load %arg11[%c0_14, %c0_15] : memref<64x512xf32, #tpu.memory_space<vmem>>, vector<8x512xf32>
    %cst_16 = arith.constant dense<0.000000e+00> : vector<8x512xf32>
    %14 = tpu.matmul %12, %7, %cst_16 {dimension_numbers = #tpu.dot_dimension_numbers<[1], [0], [0], [1], [0, 0, 1, 1], [], []>} : vector<8x128xf32>, vector<128x512xf32>, vector<8x512xf32> -> vector<8x512xf32>
    %15 = arith.addf %13, %14 : vector<8x512xf32>
    %16 = vector.extract_strided_slice %15 {offsets = [0, 0], sizes = [8, 128], strides = [1, 1]} : vector<8x512xf32> to vector<8x128xf32>
    %17 = arith.negf %16 : vector<8x128xf32>
    %18 = math.exp %17 : vector<8x128xf32>
    %cst_17 = arith.constant 1.000000e+00 : f32
    %19 = vector.broadcast %cst_17 : f32 to vector<8x128xf32>
    %20 = arith.addf %19, %18 : vector<8x128xf32>
    %21 = arith.divf %19, %20 : vector<8x128xf32>
    %22 = vector.extract_strided_slice %15 {offsets = [0, 128], sizes = [8, 128], strides = [1, 1]} : vector<8x512xf32> to vector<8x128xf32>
    %23 = arith.negf %22 : vector<8x128xf32>
    %24 = math.exp %23 : vector<8x128xf32>
    %cst_18 = arith.constant 1.000000e+00 : f32
    %25 = vector.broadcast %cst_18 : f32 to vector<8x128xf32>
    %26 = arith.addf %25, %24 : vector<8x128xf32>
    %27 = arith.divf %25, %26 : vector<8x128xf32>
    %28 = vector.extract_strided_slice %15 {offsets = [0, 256], sizes = [8, 128], strides = [1, 1]} : vector<8x512xf32> to vector<8x128xf32>
    %29 = math.tanh %28 : vector<8x128xf32>
    %30 = vector.extract_strided_slice %15 {offsets = [0, 384], sizes = [8, 128], strides = [1, 1]} : vector<8x512xf32> to vector<8x128xf32>
    %31 = arith.negf %30 : vector<8x128xf32>
    %32 = math.exp %31 : vector<8x128xf32>
    %cst_19 = arith.constant 1.000000e+00 : f32
    %33 = vector.broadcast %cst_19 : f32 to vector<8x128xf32>
    %34 = arith.addf %33, %32 : vector<8x128xf32>
    %35 = arith.divf %33, %34 : vector<8x128xf32>
    %36 = arith.mulf %27, %12 : vector<8x128xf32>
    %37 = arith.mulf %21, %29 : vector<8x128xf32>
    %38 = arith.addf %36, %37 : vector<8x128xf32>
    %39 = math.tanh %38 : vector<8x128xf32>
    %40 = arith.mulf %35, %39 : vector<8x128xf32>
    %41 = tpu.concatenate %40, %12 in 1 : vector<8x128xf32>, vector<8x128xf32> -> vector<8x256xf32>
    %cst_20 = arith.constant dense<0.000000e+00> : vector<8x512xf32>
    %42 = tpu.matmul %41, %8, %cst_20 {dimension_numbers = #tpu.dot_dimension_numbers<[1], [0], [0], [1], [0, 0, 1, 1], [], []>} : vector<8x256xf32>, vector<256x512xf32>, vector<8x512xf32> -> vector<8x512xf32>
    %43 = arith.addf %42, %11 : vector<8x512xf32>
    %44 = vector.extract_strided_slice %43 {offsets = [0, 0], sizes = [8, 128], strides = [1, 1]} : vector<8x512xf32> to vector<8x128xf32>
    %45 = arith.negf %44 : vector<8x128xf32>
    %46 = math.exp %45 : vector<8x128xf32>
    %cst_21 = arith.constant 1.000000e+00 : f32
    %47 = vector.broadcast %cst_21 : f32 to vector<8x128xf32>
    %48 = arith.addf %47, %46 : vector<8x128xf32>
    %49 = arith.divf %47, %48 : vector<8x128xf32>
    %50 = vector.extract_strided_slice %43 {offsets = [0, 128], sizes = [8, 128], strides = [1, 1]} : vector<8x512xf32> to vector<8x128xf32>
    %51 = arith.negf %50 : vector<8x128xf32>
    %52 = math.exp %51 : vector<8x128xf32>
    %cst_22 = arith.constant 1.000000e+00 : f32
    %53 = vector.broadcast %cst_22 : f32 to vector<8x128xf32>
    %54 = arith.addf %53, %52 : vector<8x128xf32>
    %55 = arith.divf %53, %54 : vector<8x128xf32>
    %56 = vector.extract_strided_slice %43 {offsets = [0, 256], sizes = [8, 128], strides = [1, 1]} : vector<8x512xf32> to vector<8x128xf32>
    %57 = math.tanh %56 : vector<8x128xf32>
    %58 = vector.extract_strided_slice %43 {offsets = [0, 384], sizes = [8, 128], strides = [1, 1]} : vector<8x512xf32> to vector<8x128xf32>
    %59 = arith.negf %58 : vector<8x128xf32>
    %60 = math.exp %59 : vector<8x128xf32>
    %cst_23 = arith.constant 1.000000e+00 : f32
    %61 = vector.broadcast %cst_23 : f32 to vector<8x128xf32>
    %62 = arith.addf %61, %60 : vector<8x128xf32>
    %63 = arith.divf %61, %62 : vector<8x128xf32>
    %64 = arith.mulf %55, %12 : vector<8x128xf32>
    %65 = arith.mulf %49, %57 : vector<8x128xf32>
    %66 = arith.addf %64, %65 : vector<8x128xf32>
    %67 = math.tanh %66 : vector<8x128xf32>
    %68 = arith.mulf %63, %67 : vector<8x128xf32>
    %c0_24 = arith.constant 0 : index
    %c0_25 = arith.constant 0 : index
    %69 = vector.load %arg12[%c0_24, %c0_25] : memref<64x128xf32, #tpu.memory_space<vmem>>, vector<8x128xf32>
    tpu.vector_store %arg12[%c0_24, %c0_25], %68 {strides = array<i32>} : memref<64x128xf32, #tpu.memory_space<vmem>>, vector<8x128xf32>,
    %c8 = arith.constant 8 : index
    %c0_26 = arith.constant 0 : index
    %70 = vector.load %arg11[%c8, %c0_26] : memref<64x512xf32, #tpu.memory_space<vmem>>, vector<8x512xf32>
    %cst_27 = arith.constant dense<0.000000e+00> : vector<8x512xf32>
    %71 = tpu.matmul %40, %7, %cst_27 {dimension_numbers = #tpu.dot_dimension_numbers<[1], [0], [0], [1], [0, 0, 1, 1], [], []>} : vector<8x128xf32>, vector<128x512xf32>, vector<8x512xf32> -> vector<8x512xf32>
    %72 = arith.addf %70, %71 : vector<8x512xf32>
    %73 = vector.extract_strided_slice %72 {offsets = [0, 0], sizes = [8, 128], strides = [1, 1]} : vector<8x512xf32> to vector<8x128xf32>
    %74 = arith.negf %73 : vector<8x128xf32>
    %75 = math.exp %74 : vector<8x128xf32>
    %cst_28 = arith.constant 1.000000e+00 : f32
    %76 = vector.broadcast %cst_28 : f32 to vector<8x128xf32>
    %77 = arith.addf %76, %75 : vector<8x128xf32>
    %78 = arith.divf %76, %77 : vector<8x128xf32>
    %79 = vector.extract_strided_slice %72 {offsets = [0, 128], sizes = [8, 128], strides = [1, 1]} : vector<8x512xf32> to vector<8x128xf32>
    %80 = arith.negf %79 : vector<8x128xf32>
    %81 = math.exp %80 : vector<8x128xf32>
    %cst_29 = arith.constant 1.000000e+00 : f32
    %82 = vector.broadcast %cst_29 : f32 to vector<8x128xf32>
    %83 = arith.addf %82, %81 : vector<8x128xf32>
    %84 = arith.divf %82, %83 : vector<8x128xf32>
    %85 = vector.extract_strided_slice %72 {offsets = [0, 256], sizes = [8, 128], strides = [1, 1]} : vector<8x512xf32> to vector<8x128xf32>
    %86 = math.tanh %85 : vector<8x128xf32>
    %87 = vector.extract_strided_slice %72 {offsets = [0, 384], sizes = [8, 128], strides = [1, 1]} : vector<8x512xf32> to vector<8x128xf32>
    %88 = arith.negf %87 : vector<8x128xf32>
    %89 = math.exp %88 : vector<8x128xf32>
    %cst_30 = arith.constant 1.000000e+00 : f32
    %90 = vector.broadcast %cst_30 : f32 to vector<8x128xf32>
    %91 = arith.addf %90, %89 : vector<8x128xf32>
    %92 = arith.divf %90, %91 : vector<8x128xf32>
    %93 = arith.mulf %84, %38 : vector<8x128xf32>
    %94 = arith.mulf %78, %86 : vector<8x128xf32>
    %95 = arith.addf %93, %94 : vector<8x128xf32>
    %96 = math.tanh %95 : vector<8x128xf32>
    %97 = arith.mulf %92, %96 : vector<8x128xf32>
    %98 = tpu.concatenate %97, %68 in 1 : vector<8x128xf32>, vector<8x128xf32> -> vector<8x256xf32>
    %cst_31 = arith.constant dense<0.000000e+00> : vector<8x512xf32>
    %99 = tpu.matmul %98, %8, %cst_31 {dimension_numbers = #tpu.dot_dimension_numbers<[1], [0], [0], [1], [0, 0, 1, 1], [], []>} : vector<8x256xf32>, vector<256x512xf32>, vector<8x512xf32> -> vector<8x512xf32>
    %100 = arith.addf %99, %11 : vector<8x512xf32>
    %101 = vector.extract_strided_slice %100 {offsets = [0, 0], sizes = [8, 128], strides = [1, 1]} : vector<8x512xf32> to vector<8x128xf32>
    %102 = arith.negf %101 : vector<8x128xf32>
    %103 = math.exp %102 : vector<8x128xf32>
    %cst_32 = arith.constant 1.000000e+00 : f32
    %104 = vector.broadcast %cst_32 : f32 to vector<8x128xf32>
    %105 = arith.addf %104, %103 : vector<8x128xf32>
    %106 = arith.divf %104, %105 : vector<8x128xf32>
    %107 = vector.extract_strided_slice %100 {offsets = [0, 128], sizes = [8, 128], strides = [1, 1]} : vector<8x512xf32> to vector<8x128xf32>
    %108 = arith.negf %107 : vector<8x128xf32>
    %109 = math.exp %108 : vector<8x128xf32>
    %cst_33 = arith.constant 1.000000e+00 : f32
    %110 = vector.broadcast %cst_33 : f32 to vector<8x128xf32>
    %111 = arith.addf %110, %109 : vector<8x128xf32>
    %112 = arith.divf %110, %111 : vector<8x128xf32>
    %113 = vector.extract_strided_slice %100 {offsets = [0, 256], sizes = [8, 128], strides = [1, 1]} : vector<8x512xf32> to vector<8x128xf32>
    %114 = math.tanh %113 : vector<8x128xf32>
    %115 = vector.extract_strided_slice %100 {offsets = [0, 384], sizes = [8, 128], strides = [1, 1]} : vector<8x512xf32> to vector<8x128xf32>
    %116 = arith.negf %115 : vector<8x128xf32>
    %117 = math.exp %116 : vector<8x128xf32>
    %cst_34 = arith.constant 1.000000e+00 : f32
    %118 = vector.broadcast %cst_34 : f32 to vector<8x128xf32>
    %119 = arith.addf %118, %117 : vector<8x128xf32>
    %120 = arith.divf %118, %119 : vector<8x128xf32>
    %121 = arith.mulf %112, %66 : vector<8x128xf32>
    %122 = arith.mulf %106, %114 : vector<8x128xf32>
    %123 = arith.addf %121, %122 : vector<8x128xf32>
    %124 = math.tanh %123 : vector<8x128xf32>
    %125 = arith.mulf %120, %124 : vector<8x128xf32>
    %c8_35 = arith.constant 8 : index
    %c0_36 = arith.constant 0 : index
    %126 = vector.load %arg12[%c8_35, %c0_36] : memref<64x128xf32, #tpu.memory_space<vmem>>, vector<8x128xf32>
    tpu.vector_store %arg12[%c8_35, %c0_36], %125 {strides = array<i32>} : memref<64x128xf32, #tpu.memory_space<vmem>>, vector<8x128xf32>,
    %c16 = arith.constant 16 : index
    %c0_37 = arith.constant 0 : index
    %127 = vector.load %arg11[%c16, %c0_37] : memref<64x512xf32, #tpu.memory_space<vmem>>, vector<8x512xf32>
    %cst_38 = arith.constant dense<0.000000e+00> : vector<8x512xf32>
    %128 = tpu.matmul %97, %7, %cst_38 {dimension_numbers = #tpu.dot_dimension_numbers<[1], [0], [0], [1], [0, 0, 1, 1], [], []>} : vector<8x128xf32>, vector<128x512xf32>, vector<8x512xf32> -> vector<8x512xf32>
    %129 = arith.addf %127, %128 : vector<8x512xf32>
    %130 = vector.extract_strided_slice %129 {offsets = [0, 0], sizes = [8, 128], strides = [1, 1]} : vector<8x512xf32> to vector<8x128xf32>
    %131 = arith.negf %130 : vector<8x128xf32>
    %132 = math.exp %131 : vector<8x128xf32>
    %cst_39 = arith.constant 1.000000e+00 : f32
    %133 = vector.broadcast %cst_39 : f32 to vector<8x128xf32>
    %134 = arith.addf %133, %132 : vector<8x128xf32>
    %135 = arith.divf %133, %134 : vector<8x128xf32>
    %136 = vector.extract_strided_slice %129 {offsets = [0, 128], sizes = [8, 128], strides = [1, 1]} : vector<8x512xf32> to vector<8x128xf32>
    %137 = arith.negf %136 : vector<8x128xf32>
    %138 = math.exp %137 : vector<8x128xf32>
    %cst_40 = arith.constant 1.000000e+00 : f32
    %139 = vector.broadcast %cst_40 : f32 to vector<8x128xf32>
    %140 = arith.addf %139, %138 : vector<8x128xf32>
    %141 = arith.divf %139, %140 : vector<8x128xf32>
    %142 = vector.extract_strided_slice %129 {offsets = [0, 256], sizes = [8, 128], strides = [1, 1]} : vector<8x512xf32> to vector<8x128xf32>
    %143 = math.tanh %142 : vector<8x128xf32>
    %144 = vector.extract_strided_slice %129 {offsets = [0, 384], sizes = [8, 128], strides = [1, 1]} : vector<8x512xf32> to vector<8x128xf32>
    %145 = arith.negf %144 : vector<8x128xf32>
    %146 = math.exp %145 : vector<8x128xf32>
    %cst_41 = arith.constant 1.000000e+00 : f32
    %147 = vector.broadcast %cst_41 : f32 to vector<8x128xf32>
    %148 = arith.addf %147, %146 : vector<8x128xf32>
    %149 = arith.divf %147, %148 : vector<8x128xf32>
    %150 = arith.mulf %141, %95 : vector<8x128xf32>
    %151 = arith.mulf %135, %143 : vector<8x128xf32>
    %152 = arith.addf %150, %151 : vector<8x128xf32>
    %153 = math.tanh %152 : vector<8x128xf32>
    %154 = arith.mulf %149, %153 : vector<8x128xf32>
    %155 = tpu.concatenate %154, %125 in 1 : vector<8x128xf32>, vector<8x128xf32> -> vector<8x256xf32>
    %cst_42 = arith.constant dense<0.000000e+00> : vector<8x512xf32>
    %156 = tpu.matmul %155, %8, %cst_42 {dimension_numbers = #tpu.dot_dimension_numbers<[1], [0], [0], [1], [0, 0, 1, 1], [], []>} : vector<8x256xf32>, vector<256x512xf32>, vector<8x512xf32> -> vector<8x512xf32>
    %157 = arith.addf %156, %11 : vector<8x512xf32>
    %158 = vector.extract_strided_slice %157 {offsets = [0, 0], sizes = [8, 128], strides = [1, 1]} : vector<8x512xf32> to vector<8x128xf32>
    %159 = arith.negf %158 : vector<8x128xf32>
    %160 = math.exp %159 : vector<8x128xf32>
    %cst_43 = arith.constant 1.000000e+00 : f32
    %161 = vector.broadcast %cst_43 : f32 to vector<8x128xf32>
    %162 = arith.addf %161, %160 : vector<8x128xf32>
    %163 = arith.divf %161, %162 : vector<8x128xf32>
    %164 = vector.extract_strided_slice %157 {offsets = [0, 128], sizes = [8, 128], strides = [1, 1]} : vector<8x512xf32> to vector<8x128xf32>
    %165 = arith.negf %164 : vector<8x128xf32>
    %166 = math.exp %165 : vector<8x128xf32>
    %cst_44 = arith.constant 1.000000e+00 : f32
    %167 = vector.broadcast %cst_44 : f32 to vector<8x128xf32>
    %168 = arith.addf %167, %166 : vector<8x128xf32>
    %169 = arith.divf %167, %168 : vector<8x128xf32>
    %170 = vector.extract_strided_slice %157 {offsets = [0, 256], sizes = [8, 128], strides = [1, 1]} : vector<8x512xf32> to vector<8x128xf32>
    %171 = math.tanh %170 : vector<8x128xf32>
    %172 = vector.extract_strided_slice %157 {offsets = [0, 384], sizes = [8, 128], strides = [1, 1]} : vector<8x512xf32> to vector<8x128xf32>
    %173 = arith.negf %172 : vector<8x128xf32>
    %174 = math.exp %173 : vector<8x128xf32>
    %cst_45 = arith.constant 1.000000e+00 : f32
    %175 = vector.broadcast %cst_45 : f32 to vector<8x128xf32>
    %176 = arith.addf %175, %174 : vector<8x128xf32>
    %177 = arith.divf %175, %176 : vector<8x128xf32>
    %178 = arith.mulf %169, %123 : vector<8x128xf32>
    %179 = arith.mulf %163, %171 : vector<8x128xf32>
    %180 = arith.addf %178, %179 : vector<8x128xf32>
    %181 = math.tanh %180 : vector<8x128xf32>
    %182 = arith.mulf %177, %181 : vector<8x128xf32>
    %c16_46 = arith.constant 16 : index
    %c0_47 = arith.constant 0 : index
    %183 = vector.load %arg12[%c16_46, %c0_47] : memref<64x128xf32, #tpu.memory_space<vmem>>, vector<8x128xf32>
    tpu.vector_store %arg12[%c16_46, %c0_47], %182 {strides = array<i32>} : memref<64x128xf32, #tpu.memory_space<vmem>>, vector<8x128xf32>,
    %c24 = arith.constant 24 : index
    %c0_48 = arith.constant 0 : index
    %184 = vector.load %arg11[%c24, %c0_48] : memref<64x512xf32, #tpu.memory_space<vmem>>, vector<8x512xf32>
    %cst_49 = arith.constant dense<0.000000e+00> : vector<8x512xf32>
    %185 = tpu.matmul %154, %7, %cst_49 {dimension_numbers = #tpu.dot_dimension_numbers<[1], [0], [0], [1], [0, 0, 1, 1], [], []>} : vector<8x128xf32>, vector<128x512xf32>, vector<8x512xf32> -> vector<8x512xf32>
    %186 = arith.addf %184, %185 : vector<8x512xf32>
    %187 = vector.extract_strided_slice %186 {offsets = [0, 0], sizes = [8, 128], strides = [1, 1]} : vector<8x512xf32> to vector<8x128xf32>
    %188 = arith.negf %187 : vector<8x128xf32>
    %189 = math.exp %188 : vector<8x128xf32>
    %cst_50 = arith.constant 1.000000e+00 : f32
    %190 = vector.broadcast %cst_50 : f32 to vector<8x128xf32>
    %191 = arith.addf %190, %189 : vector<8x128xf32>
    %192 = arith.divf %190, %191 : vector<8x128xf32>
    %193 = vector.extract_strided_slice %186 {offsets = [0, 128], sizes = [8, 128], strides = [1, 1]} : vector<8x512xf32> to vector<8x128xf32>
    %194 = arith.negf %193 : vector<8x128xf32>
    %195 = math.exp %194 : vector<8x128xf32>
    %cst_51 = arith.constant 1.000000e+00 : f32
    %196 = vector.broadcast %cst_51 : f32 to vector<8x128xf32>
    %197 = arith.addf %196, %195 : vector<8x128xf32>
    %198 = arith.divf %196, %197 : vector<8x128xf32>
    %199 = vector.extract_strided_slice %186 {offsets = [0, 256], sizes = [8, 128], strides = [1, 1]} : vector<8x512xf32> to vector<8x128xf32>
    %200 = math.tanh %199 : vector<8x128xf32>
    %201 = vector.extract_strided_slice %186 {offsets = [0, 384], sizes = [8, 128], strides = [1, 1]} : vector<8x512xf32> to vector<8x128xf32>
    %202 = arith.negf %201 : vector<8x128xf32>
    %203 = math.exp %202 : vector<8x128xf32>
    %cst_52 = arith.constant 1.000000e+00 : f32
    %204 = vector.broadcast %cst_52 : f32 to vector<8x128xf32>
    %205 = arith.addf %204, %203 : vector<8x128xf32>
    %206 = arith.divf %204, %205 : vector<8x128xf32>
    %207 = arith.mulf %198, %152 : vector<8x128xf32>
    %208 = arith.mulf %192, %200 : vector<8x128xf32>
    %209 = arith.addf %207, %208 : vector<8x128xf32>
    %210 = math.tanh %209 : vector<8x128xf32>
    %211 = arith.mulf %206, %210 : vector<8x128xf32>
    %212 = tpu.concatenate %211, %182 in 1 : vector<8x128xf32>, vector<8x128xf32> -> vector<8x256xf32>
    %cst_53 = arith.constant dense<0.000000e+00> : vector<8x512xf32>
    %213 = tpu.matmul %212, %8, %cst_53 {dimension_numbers = #tpu.dot_dimension_numbers<[1], [0], [0], [1], [0, 0, 1, 1], [], []>} : vector<8x256xf32>, vector<256x512xf32>, vector<8x512xf32> -> vector<8x512xf32>
    %214 = arith.addf %213, %11 : vector<8x512xf32>
    %215 = vector.extract_strided_slice %214 {offsets = [0, 0], sizes = [8, 128], strides = [1, 1]} : vector<8x512xf32> to vector<8x128xf32>
    %216 = arith.negf %215 : vector<8x128xf32>
    %217 = math.exp %216 : vector<8x128xf32>
    %cst_54 = arith.constant 1.000000e+00 : f32
    %218 = vector.broadcast %cst_54 : f32 to vector<8x128xf32>
    %219 = arith.addf %218, %217 : vector<8x128xf32>
    %220 = arith.divf %218, %219 : vector<8x128xf32>
    %221 = vector.extract_strided_slice %214 {offsets = [0, 128], sizes = [8, 128], strides = [1, 1]} : vector<8x512xf32> to vector<8x128xf32>
    %222 = arith.negf %221 : vector<8x128xf32>
    %223 = math.exp %222 : vector<8x128xf32>
    %cst_55 = arith.constant 1.000000e+00 : f32
    %224 = vector.broadcast %cst_55 : f32 to vector<8x128xf32>
    %225 = arith.addf %224, %223 : vector<8x128xf32>
    %226 = arith.divf %224, %225 : vector<8x128xf32>
    %227 = vector.extract_strided_slice %214 {offsets = [0, 256], sizes = [8, 128], strides = [1, 1]} : vector<8x512xf32> to vector<8x128xf32>
    %228 = math.tanh %227 : vector<8x128xf32>
    %229 = vector.extract_strided_slice %214 {offsets = [0, 384], sizes = [8, 128], strides = [1, 1]} : vector<8x512xf32> to vector<8x128xf32>
    %230 = arith.negf %229 : vector<8x128xf32>
    %231 = math.exp %230 : vector<8x128xf32>
    %cst_56 = arith.constant 1.000000e+00 : f32
    %232 = vector.broadcast %cst_56 : f32 to vector<8x128xf32>
    %233 = arith.addf %232, %231 : vector<8x128xf32>
    %234 = arith.divf %232, %233 : vector<8x128xf32>
    %235 = arith.mulf %226, %180 : vector<8x128xf32>
    %236 = arith.mulf %220, %228 : vector<8x128xf32>
    %237 = arith.addf %235, %236 : vector<8x128xf32>
    %238 = math.tanh %237 : vector<8x128xf32>
    %239 = arith.mulf %234, %238 : vector<8x128xf32>
    %c24_57 = arith.constant 24 : index
    %c0_58 = arith.constant 0 : index
    %240 = vector.load %arg12[%c24_57, %c0_58] : memref<64x128xf32, #tpu.memory_space<vmem>>, vector<8x128xf32>
    tpu.vector_store %arg12[%c24_57, %c0_58], %239 {strides = array<i32>} : memref<64x128xf32, #tpu.memory_space<vmem>>, vector<8x128xf32>,
    %c32 = arith.constant 32 : index
    %c0_59 = arith.constant 0 : index
    %241 = vector.load %arg11[%c32, %c0_59] : memref<64x512xf32, #tpu.memory_space<vmem>>, vector<8x512xf32>
    %cst_60 = arith.constant dense<0.000000e+00> : vector<8x512xf32>
    %242 = tpu.matmul %211, %7, %cst_60 {dimension_numbers = #tpu.dot_dimension_numbers<[1], [0], [0], [1], [0, 0, 1, 1], [], []>} : vector<8x128xf32>, vector<128x512xf32>, vector<8x512xf32> -> vector<8x512xf32>
    %243 = arith.addf %241, %242 : vector<8x512xf32>
    %244 = vector.extract_strided_slice %243 {offsets = [0, 0], sizes = [8, 128], strides = [1, 1]} : vector<8x512xf32> to vector<8x128xf32>
    %245 = arith.negf %244 : vector<8x128xf32>
    %246 = math.exp %245 : vector<8x128xf32>
    %cst_61 = arith.constant 1.000000e+00 : f32
    %247 = vector.broadcast %cst_61 : f32 to vector<8x128xf32>
    %248 = arith.addf %247, %246 : vector<8x128xf32>
    %249 = arith.divf %247, %248 : vector<8x128xf32>
    %250 = vector.extract_strided_slice %243 {offsets = [0, 128], sizes = [8, 128], strides = [1, 1]} : vector<8x512xf32> to vector<8x128xf32>
    %251 = arith.negf %250 : vector<8x128xf32>
    %252 = math.exp %251 : vector<8x128xf32>
    %cst_62 = arith.constant 1.000000e+00 : f32
    %253 = vector.broadcast %cst_62 : f32 to vector<8x128xf32>
    %254 = arith.addf %253, %252 : vector<8x128xf32>
    %255 = arith.divf %253, %254 : vector<8x128xf32>
    %256 = vector.extract_strided_slice %243 {offsets = [0, 256], sizes = [8, 128], strides = [1, 1]} : vector<8x512xf32> to vector<8x128xf32>
    %257 = math.tanh %256 : vector<8x128xf32>
    %258 = vector.extract_strided_slice %243 {offsets = [0, 384], sizes = [8, 128], strides = [1, 1]} : vector<8x512xf32> to vector<8x128xf32>
    %259 = arith.negf %258 : vector<8x128xf32>
    %260 = math.exp %259 : vector<8x128xf32>
    %cst_63 = arith.constant 1.000000e+00 : f32
    %261 = vector.broadcast %cst_63 : f32 to vector<8x128xf32>
    %262 = arith.addf %261, %260 : vector<8x128xf32>
    %263 = arith.divf %261, %262 : vector<8x128xf32>
    %264 = arith.mulf %255, %209 : vector<8x128xf32>
    %265 = arith.mulf %249, %257 : vector<8x128xf32>
    %266 = arith.addf %264, %265 : vector<8x128xf32>
    %267 = math.tanh %266 : vector<8x128xf32>
    %268 = arith.mulf %263, %267 : vector<8x128xf32>
    %269 = tpu.concatenate %268, %239 in 1 : vector<8x128xf32>, vector<8x128xf32> -> vector<8x256xf32>
    %cst_64 = arith.constant dense<0.000000e+00> : vector<8x512xf32>
    %270 = tpu.matmul %269, %8, %cst_64 {dimension_numbers = #tpu.dot_dimension_numbers<[1], [0], [0], [1], [0, 0, 1, 1], [], []>} : vector<8x256xf32>, vector<256x512xf32>, vector<8x512xf32> -> vector<8x512xf32>
    %271 = arith.addf %270, %11 : vector<8x512xf32>
    %272 = vector.extract_strided_slice %271 {offsets = [0, 0], sizes = [8, 128], strides = [1, 1]} : vector<8x512xf32> to vector<8x128xf32>
    %273 = arith.negf %272 : vector<8x128xf32>
    %274 = math.exp %273 : vector<8x128xf32>
    %cst_65 = arith.constant 1.000000e+00 : f32
    %275 = vector.broadcast %cst_65 : f32 to vector<8x128xf32>
    %276 = arith.addf %275, %274 : vector<8x128xf32>
    %277 = arith.divf %275, %276 : vector<8x128xf32>
    %278 = vector.extract_strided_slice %271 {offsets = [0, 128], sizes = [8, 128], strides = [1, 1]} : vector<8x512xf32> to vector<8x128xf32>
    %279 = arith.negf %278 : vector<8x128xf32>
    %280 = math.exp %279 : vector<8x128xf32>
    %cst_66 = arith.constant 1.000000e+00 : f32
    %281 = vector.broadcast %cst_66 : f32 to vector<8x128xf32>
    %282 = arith.addf %281, %280 : vector<8x128xf32>
    %283 = arith.divf %281, %282 : vector<8x128xf32>
    %284 = vector.extract_strided_slice %271 {offsets = [0, 256], sizes = [8, 128], strides = [1, 1]} : vector<8x512xf32> to vector<8x128xf32>
    %285 = math.tanh %284 : vector<8x128xf32>
    %286 = vector.extract_strided_slice %271 {offsets = [0, 384], sizes = [8, 128], strides = [1, 1]} : vector<8x512xf32> to vector<8x128xf32>
    %287 = arith.negf %286 : vector<8x128xf32>
    %288 = math.exp %287 : vector<8x128xf32>
    %cst_67 = arith.constant 1.000000e+00 : f32
    %289 = vector.broadcast %cst_67 : f32 to vector<8x128xf32>
    %290 = arith.addf %289, %288 : vector<8x128xf32>
    %291 = arith.divf %289, %290 : vector<8x128xf32>
    %292 = arith.mulf %283, %237 : vector<8x128xf32>
    %293 = arith.mulf %277, %285 : vector<8x128xf32>
    %294 = arith.addf %292, %293 : vector<8x128xf32>
    %295 = math.tanh %294 : vector<8x128xf32>
    %296 = arith.mulf %291, %295 : vector<8x128xf32>
    %c32_68 = arith.constant 32 : index
    %c0_69 = arith.constant 0 : index
    %297 = vector.load %arg12[%c32_68, %c0_69] : memref<64x128xf32, #tpu.memory_space<vmem>>, vector<8x128xf32>
    tpu.vector_store %arg12[%c32_68, %c0_69], %296 {strides = array<i32>} : memref<64x128xf32, #tpu.memory_space<vmem>>, vector<8x128xf32>,
    %c40 = arith.constant 40 : index
    %c0_70 = arith.constant 0 : index
    %298 = vector.load %arg11[%c40, %c0_70] : memref<64x512xf32, #tpu.memory_space<vmem>>, vector<8x512xf32>
    %cst_71 = arith.constant dense<0.000000e+00> : vector<8x512xf32>
    %299 = tpu.matmul %268, %7, %cst_71 {dimension_numbers = #tpu.dot_dimension_numbers<[1], [0], [0], [1], [0, 0, 1, 1], [], []>} : vector<8x128xf32>, vector<128x512xf32>, vector<8x512xf32> -> vector<8x512xf32>
    %300 = arith.addf %298, %299 : vector<8x512xf32>
    %301 = vector.extract_strided_slice %300 {offsets = [0, 0], sizes = [8, 128], strides = [1, 1]} : vector<8x512xf32> to vector<8x128xf32>
    %302 = arith.negf %301 : vector<8x128xf32>
    %303 = math.exp %302 : vector<8x128xf32>
    %cst_72 = arith.constant 1.000000e+00 : f32
    %304 = vector.broadcast %cst_72 : f32 to vector<8x128xf32>
    %305 = arith.addf %304, %303 : vector<8x128xf32>
    %306 = arith.divf %304, %305 : vector<8x128xf32>
    %307 = vector.extract_strided_slice %300 {offsets = [0, 128], sizes = [8, 128], strides = [1, 1]} : vector<8x512xf32> to vector<8x128xf32>
    %308 = arith.negf %307 : vector<8x128xf32>
    %309 = math.exp %308 : vector<8x128xf32>
    %cst_73 = arith.constant 1.000000e+00 : f32
    %310 = vector.broadcast %cst_73 : f32 to vector<8x128xf32>
    %311 = arith.addf %310, %309 : vector<8x128xf32>
    %312 = arith.divf %310, %311 : vector<8x128xf32>
    %313 = vector.extract_strided_slice %300 {offsets = [0, 256], sizes = [8, 128], strides = [1, 1]} : vector<8x512xf32> to vector<8x128xf32>
    %314 = math.tanh %313 : vector<8x128xf32>
    %315 = vector.extract_strided_slice %300 {offsets = [0, 384], sizes = [8, 128], strides = [1, 1]} : vector<8x512xf32> to vector<8x128xf32>
    %316 = arith.negf %315 : vector<8x128xf32>
    %317 = math.exp %316 : vector<8x128xf32>
    %cst_74 = arith.constant 1.000000e+00 : f32
    %318 = vector.broadcast %cst_74 : f32 to vector<8x128xf32>
    %319 = arith.addf %318, %317 : vector<8x128xf32>
    %320 = arith.divf %318, %319 : vector<8x128xf32>
    %321 = arith.mulf %312, %266 : vector<8x128xf32>
    %322 = arith.mulf %306, %314 : vector<8x128xf32>
    %323 = arith.addf %321, %322 : vector<8x128xf32>
    %324 = math.tanh %323 : vector<8x128xf32>
    %325 = arith.mulf %320, %324 : vector<8x128xf32>
    %326 = tpu.concatenate %325, %296 in 1 : vector<8x128xf32>, vector<8x128xf32> -> vector<8x256xf32>
    %cst_75 = arith.constant dense<0.000000e+00> : vector<8x512xf32>
    %327 = tpu.matmul %326, %8, %cst_75 {dimension_numbers = #tpu.dot_dimension_numbers<[1], [0], [0], [1], [0, 0, 1, 1], [], []>} : vector<8x256xf32>, vector<256x512xf32>, vector<8x512xf32> -> vector<8x512xf32>
    %328 = arith.addf %327, %11 : vector<8x512xf32>
    %329 = vector.extract_strided_slice %328 {offsets = [0, 0], sizes = [8, 128], strides = [1, 1]} : vector<8x512xf32> to vector<8x128xf32>
    %330 = arith.negf %329 : vector<8x128xf32>
    %331 = math.exp %330 : vector<8x128xf32>
    %cst_76 = arith.constant 1.000000e+00 : f32
    %332 = vector.broadcast %cst_76 : f32 to vector<8x128xf32>
    %333 = arith.addf %332, %331 : vector<8x128xf32>
    %334 = arith.divf %332, %333 : vector<8x128xf32>
    %335 = vector.extract_strided_slice %328 {offsets = [0, 128], sizes = [8, 128], strides = [1, 1]} : vector<8x512xf32> to vector<8x128xf32>
    %336 = arith.negf %335 : vector<8x128xf32>
    %337 = math.exp %336 : vector<8x128xf32>
    %cst_77 = arith.constant 1.000000e+00 : f32
    %338 = vector.broadcast %cst_77 : f32 to vector<8x128xf32>
    %339 = arith.addf %338, %337 : vector<8x128xf32>
    %340 = arith.divf %338, %339 : vector<8x128xf32>
    %341 = vector.extract_strided_slice %328 {offsets = [0, 256], sizes = [8, 128], strides = [1, 1]} : vector<8x512xf32> to vector<8x128xf32>
    %342 = math.tanh %341 : vector<8x128xf32>
    %343 = vector.extract_strided_slice %328 {offsets = [0, 384], sizes = [8, 128], strides = [1, 1]} : vector<8x512xf32> to vector<8x128xf32>
    %344 = arith.negf %343 : vector<8x128xf32>
    %345 = math.exp %344 : vector<8x128xf32>
    %cst_78 = arith.constant 1.000000e+00 : f32
    %346 = vector.broadcast %cst_78 : f32 to vector<8x128xf32>
    %347 = arith.addf %346, %345 : vector<8x128xf32>
    %348 = arith.divf %346, %347 : vector<8x128xf32>
    %349 = arith.mulf %340, %294 : vector<8x128xf32>
    %350 = arith.mulf %334, %342 : vector<8x128xf32>
    %351 = arith.addf %349, %350 : vector<8x128xf32>
    %352 = math.tanh %351 : vector<8x128xf32>
    %353 = arith.mulf %348, %352 : vector<8x128xf32>
    %c40_79 = arith.constant 40 : index
    %c0_80 = arith.constant 0 : index
    %354 = vector.load %arg12[%c40_79, %c0_80] : memref<64x128xf32, #tpu.memory_space<vmem>>, vector<8x128xf32>
    tpu.vector_store %arg12[%c40_79, %c0_80], %353 {strides = array<i32>} : memref<64x128xf32, #tpu.memory_space<vmem>>, vector<8x128xf32>,
    %c48 = arith.constant 48 : index
    %c0_81 = arith.constant 0 : index
    %355 = vector.load %arg11[%c48, %c0_81] : memref<64x512xf32, #tpu.memory_space<vmem>>, vector<8x512xf32>
    %cst_82 = arith.constant dense<0.000000e+00> : vector<8x512xf32>
    %356 = tpu.matmul %325, %7, %cst_82 {dimension_numbers = #tpu.dot_dimension_numbers<[1], [0], [0], [1], [0, 0, 1, 1], [], []>} : vector<8x128xf32>, vector<128x512xf32>, vector<8x512xf32> -> vector<8x512xf32>
    %357 = arith.addf %355, %356 : vector<8x512xf32>
    %358 = vector.extract_strided_slice %357 {offsets = [0, 0], sizes = [8, 128], strides = [1, 1]} : vector<8x512xf32> to vector<8x128xf32>
    %359 = arith.negf %358 : vector<8x128xf32>
    %360 = math.exp %359 : vector<8x128xf32>
    %cst_83 = arith.constant 1.000000e+00 : f32
    %361 = vector.broadcast %cst_83 : f32 to vector<8x128xf32>
    %362 = arith.addf %361, %360 : vector<8x128xf32>
    %363 = arith.divf %361, %362 : vector<8x128xf32>
    %364 = vector.extract_strided_slice %357 {offsets = [0, 128], sizes = [8, 128], strides = [1, 1]} : vector<8x512xf32> to vector<8x128xf32>
    %365 = arith.negf %364 : vector<8x128xf32>
    %366 = math.exp %365 : vector<8x128xf32>
    %cst_84 = arith.constant 1.000000e+00 : f32
    %367 = vector.broadcast %cst_84 : f32 to vector<8x128xf32>
    %368 = arith.addf %367, %366 : vector<8x128xf32>
    %369 = arith.divf %367, %368 : vector<8x128xf32>
    %370 = vector.extract_strided_slice %357 {offsets = [0, 256], sizes = [8, 128], strides = [1, 1]} : vector<8x512xf32> to vector<8x128xf32>
    %371 = math.tanh %370 : vector<8x128xf32>
    %372 = vector.extract_strided_slice %357 {offsets = [0, 384], sizes = [8, 128], strides = [1, 1]} : vector<8x512xf32> to vector<8x128xf32>
    %373 = arith.negf %372 : vector<8x128xf32>
    %374 = math.exp %373 : vector<8x128xf32>
    %cst_85 = arith.constant 1.000000e+00 : f32
    %375 = vector.broadcast %cst_85 : f32 to vector<8x128xf32>
    %376 = arith.addf %375, %374 : vector<8x128xf32>
    %377 = arith.divf %375, %376 : vector<8x128xf32>
    %378 = arith.mulf %369, %323 : vector<8x128xf32>
    %379 = arith.mulf %363, %371 : vector<8x128xf32>
    %380 = arith.addf %378, %379 : vector<8x128xf32>
    %381 = math.tanh %380 : vector<8x128xf32>
    %382 = arith.mulf %377, %381 : vector<8x128xf32>
    %383 = tpu.concatenate %382, %353 in 1 : vector<8x128xf32>, vector<8x128xf32> -> vector<8x256xf32>
    %cst_86 = arith.constant dense<0.000000e+00> : vector<8x512xf32>
    %384 = tpu.matmul %383, %8, %cst_86 {dimension_numbers = #tpu.dot_dimension_numbers<[1], [0], [0], [1], [0, 0, 1, 1], [], []>} : vector<8x256xf32>, vector<256x512xf32>, vector<8x512xf32> -> vector<8x512xf32>
    %385 = arith.addf %384, %11 : vector<8x512xf32>
    %386 = vector.extract_strided_slice %385 {offsets = [0, 0], sizes = [8, 128], strides = [1, 1]} : vector<8x512xf32> to vector<8x128xf32>
    %387 = arith.negf %386 : vector<8x128xf32>
    %388 = math.exp %387 : vector<8x128xf32>
    %cst_87 = arith.constant 1.000000e+00 : f32
    %389 = vector.broadcast %cst_87 : f32 to vector<8x128xf32>
    %390 = arith.addf %389, %388 : vector<8x128xf32>
    %391 = arith.divf %389, %390 : vector<8x128xf32>
    %392 = vector.extract_strided_slice %385 {offsets = [0, 128], sizes = [8, 128], strides = [1, 1]} : vector<8x512xf32> to vector<8x128xf32>
    %393 = arith.negf %392 : vector<8x128xf32>
    %394 = math.exp %393 : vector<8x128xf32>
    %cst_88 = arith.constant 1.000000e+00 : f32
    %395 = vector.broadcast %cst_88 : f32 to vector<8x128xf32>
    %396 = arith.addf %395, %394 : vector<8x128xf32>
    %397 = arith.divf %395, %396 : vector<8x128xf32>
    %398 = vector.extract_strided_slice %385 {offsets = [0, 256], sizes = [8, 128], strides = [1, 1]} : vector<8x512xf32> to vector<8x128xf32>
    %399 = math.tanh %398 : vector<8x128xf32>
    %400 = vector.extract_strided_slice %385 {offsets = [0, 384], sizes = [8, 128], strides = [1, 1]} : vector<8x512xf32> to vector<8x128xf32>
    %401 = arith.negf %400 : vector<8x128xf32>
    %402 = math.exp %401 : vector<8x128xf32>
    %cst_89 = arith.constant 1.000000e+00 : f32
    %403 = vector.broadcast %cst_89 : f32 to vector<8x128xf32>
    %404 = arith.addf %403, %402 : vector<8x128xf32>
    %405 = arith.divf %403, %404 : vector<8x128xf32>
    %406 = arith.mulf %397, %351 : vector<8x128xf32>
    %407 = arith.mulf %391, %399 : vector<8x128xf32>
    %408 = arith.addf %406, %407 : vector<8x128xf32>
    %409 = math.tanh %408 : vector<8x128xf32>
    %410 = arith.mulf %405, %409 : vector<8x128xf32>
    %c48_90 = arith.constant 48 : index
    %c0_91 = arith.constant 0 : index
    %411 = vector.load %arg12[%c48_90, %c0_91] : memref<64x128xf32, #tpu.memory_space<vmem>>, vector<8x128xf32>
    tpu.vector_store %arg12[%c48_90, %c0_91], %410 {strides = array<i32>} : memref<64x128xf32, #tpu.memory_space<vmem>>, vector<8x128xf32>,
    %c56 = arith.constant 56 : index
    %c0_92 = arith.constant 0 : index
    %412 = vector.load %arg11[%c56, %c0_92] : memref<64x512xf32, #tpu.memory_space<vmem>>, vector<8x512xf32>
    %cst_93 = arith.constant dense<0.000000e+00> : vector<8x512xf32>
    %413 = tpu.matmul %382, %7, %cst_93 {dimension_numbers = #tpu.dot_dimension_numbers<[1], [0], [0], [1], [0, 0, 1, 1], [], []>} : vector<8x128xf32>, vector<128x512xf32>, vector<8x512xf32> -> vector<8x512xf32>
    %414 = arith.addf %412, %413 : vector<8x512xf32>
    %415 = vector.extract_strided_slice %414 {offsets = [0, 0], sizes = [8, 128], strides = [1, 1]} : vector<8x512xf32> to vector<8x128xf32>
    %416 = arith.negf %415 : vector<8x128xf32>
    %417 = math.exp %416 : vector<8x128xf32>
    %cst_94 = arith.constant 1.000000e+00 : f32
    %418 = vector.broadcast %cst_94 : f32 to vector<8x128xf32>
    %419 = arith.addf %418, %417 : vector<8x128xf32>
    %420 = arith.divf %418, %419 : vector<8x128xf32>
    %421 = vector.extract_strided_slice %414 {offsets = [0, 128], sizes = [8, 128], strides = [1, 1]} : vector<8x512xf32> to vector<8x128xf32>
    %422 = arith.negf %421 : vector<8x128xf32>
    %423 = math.exp %422 : vector<8x128xf32>
    %cst_95 = arith.constant 1.000000e+00 : f32
    %424 = vector.broadcast %cst_95 : f32 to vector<8x128xf32>
    %425 = arith.addf %424, %423 : vector<8x128xf32>
    %426 = arith.divf %424, %425 : vector<8x128xf32>
    %427 = vector.extract_strided_slice %414 {offsets = [0, 256], sizes = [8, 128], strides = [1, 1]} : vector<8x512xf32> to vector<8x128xf32>
    %428 = math.tanh %427 : vector<8x128xf32>
    %429 = vector.extract_strided_slice %414 {offsets = [0, 384], sizes = [8, 128], strides = [1, 1]} : vector<8x512xf32> to vector<8x128xf32>
    %430 = arith.negf %429 : vector<8x128xf32>
    %431 = math.exp %430 : vector<8x128xf32>
    %cst_96 = arith.constant 1.000000e+00 : f32
    %432 = vector.broadcast %cst_96 : f32 to vector<8x128xf32>
    %433 = arith.addf %432, %431 : vector<8x128xf32>
    %434 = arith.divf %432, %433 : vector<8x128xf32>
    %435 = arith.mulf %426, %380 : vector<8x128xf32>
    %436 = arith.mulf %420, %428 : vector<8x128xf32>
    %437 = arith.addf %435, %436 : vector<8x128xf32>
    %438 = math.tanh %437 : vector<8x128xf32>
    %439 = arith.mulf %434, %438 : vector<8x128xf32>
    %440 = tpu.concatenate %439, %410 in 1 : vector<8x128xf32>, vector<8x128xf32> -> vector<8x256xf32>
    %cst_97 = arith.constant dense<0.000000e+00> : vector<8x512xf32>
    %441 = tpu.matmul %440, %8, %cst_97 {dimension_numbers = #tpu.dot_dimension_numbers<[1], [0], [0], [1], [0, 0, 1, 1], [], []>} : vector<8x256xf32>, vector<256x512xf32>, vector<8x512xf32> -> vector<8x512xf32>
    %442 = arith.addf %441, %11 : vector<8x512xf32>
    %443 = vector.extract_strided_slice %442 {offsets = [0, 0], sizes = [8, 128], strides = [1, 1]} : vector<8x512xf32> to vector<8x128xf32>
    %444 = arith.negf %443 : vector<8x128xf32>
    %445 = math.exp %444 : vector<8x128xf32>
    %cst_98 = arith.constant 1.000000e+00 : f32
    %446 = vector.broadcast %cst_98 : f32 to vector<8x128xf32>
    %447 = arith.addf %446, %445 : vector<8x128xf32>
    %448 = arith.divf %446, %447 : vector<8x128xf32>
    %449 = vector.extract_strided_slice %442 {offsets = [0, 128], sizes = [8, 128], strides = [1, 1]} : vector<8x512xf32> to vector<8x128xf32>
    %450 = arith.negf %449 : vector<8x128xf32>
    %451 = math.exp %450 : vector<8x128xf32>
    %cst_99 = arith.constant 1.000000e+00 : f32
    %452 = vector.broadcast %cst_99 : f32 to vector<8x128xf32>
    %453 = arith.addf %452, %451 : vector<8x128xf32>
    %454 = arith.divf %452, %453 : vector<8x128xf32>
    %455 = vector.extract_strided_slice %442 {offsets = [0, 256], sizes = [8, 128], strides = [1, 1]} : vector<8x512xf32> to vector<8x128xf32>
    %456 = math.tanh %455 : vector<8x128xf32>
    %457 = vector.extract_strided_slice %442 {offsets = [0, 384], sizes = [8, 128], strides = [1, 1]} : vector<8x512xf32> to vector<8x128xf32>
    %458 = arith.negf %457 : vector<8x128xf32>
    %459 = math.exp %458 : vector<8x128xf32>
    %cst_100 = arith.constant 1.000000e+00 : f32
    %460 = vector.broadcast %cst_100 : f32 to vector<8x128xf32>
    %461 = arith.addf %460, %459 : vector<8x128xf32>
    %462 = arith.divf %460, %461 : vector<8x128xf32>
    %463 = arith.mulf %454, %408 : vector<8x128xf32>
    %464 = arith.mulf %448, %456 : vector<8x128xf32>
    %465 = arith.addf %463, %464 : vector<8x128xf32>
    %466 = math.tanh %465 : vector<8x128xf32>
    %467 = arith.mulf %462, %466 : vector<8x128xf32>
    %c56_101 = arith.constant 56 : index
    %c0_102 = arith.constant 0 : index
    %468 = vector.load %arg12[%c56_101, %c0_102] : memref<64x128xf32, #tpu.memory_space<vmem>>, vector<8x128xf32>
    tpu.vector_store %arg12[%c56_101, %c0_102], %467 {strides = array<i32>} : memref<64x128xf32, #tpu.memory_space<vmem>>, vector<8x128xf32>,
    %c0_103 = arith.constant 0 : index
    %c0_104 = arith.constant 0 : index
    %469 = vector.load %arg12[%c0_103, %c0_104] : memref<64x128xf32, #tpu.memory_space<vmem>>, vector<64x128xf32>
    %c0_105 = arith.constant 0 : index
    %c0_106 = arith.constant 0 : index
    %470 = vector.load %arg6[%c0_105, %c0_106] : memref<128x128xf32, #tpu.memory_space<vmem>>, vector<128x128xf32>
    %cst_107 = arith.constant dense<0.000000e+00> : vector<64x128xf32>
    %471 = tpu.matmul %469, %470, %cst_107 {dimension_numbers = #tpu.dot_dimension_numbers<[1], [0], [0], [1], [0, 0, 1, 1], [], []>} : vector<64x128xf32>, vector<128x128xf32>, vector<64x128xf32> -> vector<64x128xf32>
    %c0_108 = arith.constant 0 : index
    %c0_109 = arith.constant 0 : index
    %472 = vector.load %arg7[%c0_108, %c0_109] : memref<1x128xf32, #tpu.memory_space<vmem>>, vector<1x128xf32>
    %473 = vector.broadcast %472 : vector<1x128xf32> to vector<64x128xf32>
    %474 = arith.addf %471, %473 : vector<64x128xf32>
    %cst_110 = arith.constant dense<0xFF800000> : vector<64xf32>
    %475 = vector.multi_reduction <maximumf>, %474, %cst_110 [1] : vector<64x128xf32> to vector<64xf32>
    %476 = vector.shape_cast %475 : vector<64xf32> to vector<64x1xf32>
    %477 = vector.broadcast %476 : vector<64x1xf32> to vector<64x128xf32>
    %478 = arith.subf %474, %477 : vector<64x128xf32>
    %479 = math.exp %478 : vector<64x128xf32>
    %cst_111 = arith.constant dense<0.000000e+00> : vector<64xf32>
    %480 = vector.multi_reduction <add>, %479, %cst_111 [1] : vector<64x128xf32> to vector<64xf32>
    %481 = vector.shape_cast %480 : vector<64xf32> to vector<64x1xf32>
    %482 = tpu.reciprocal %481 {approx = true} : vector<64x1xf32> -> vector<64x1xf32>
    %483 = vector.broadcast %482 : vector<64x1xf32> to vector<64x128xf32>
    %484 = arith.mulf %479, %483 : vector<64x128xf32>
    %485 = arith.mulf %484, %469 : vector<64x128xf32>
    %c0_112 = arith.constant 0 : index
    %c0_113 = arith.constant 0 : index
    %486 = vector.load %arg8[%c0_112, %c0_113] : memref<128x128xf32, #tpu.memory_space<vmem>>, vector<128x128xf32>
    %cst_114 = arith.constant dense<0.000000e+00> : vector<64x128xf32>
    %487 = tpu.matmul %485, %486, %cst_114 {dimension_numbers = #tpu.dot_dimension_numbers<[1], [0], [0], [1], [0, 0, 1, 1], [], []>} : vector<64x128xf32>, vector<128x128xf32>, vector<64x128xf32> -> vector<64x128xf32>
    %c0_115 = arith.constant 0 : index
    %c0_116 = arith.constant 0 : index
    %488 = vector.load %arg9[%c0_115, %c0_116] : memref<1x128xf32, #tpu.memory_space<vmem>>, vector<1x128xf32>
    %489 = vector.broadcast %488 : vector<1x128xf32> to vector<64x128xf32>
    %490 = arith.addf %487, %489 : vector<64x128xf32>
    %c0_117 = arith.constant 0 : index
    %c0_118 = arith.constant 0 : index
    %491 = vector.load %arg10[%c0_117, %c0_118] : memref<64x128xf32, #tpu.memory_space<vmem>>, vector<64x128xf32>
    tpu.vector_store %arg10[%c0_117, %c0_118], %490 {strides = array<i32>} : memref<64x128xf32, #tpu.memory_space<vmem>>, vector<64x128xf32>,
    return
  }
}

</mosaic_0001>

<bundles_post_ra>
// kernel: lstm_attention_forward.1
= control target key start
LH: loop header
LB: loop body
LE: loop exit
PB: predicated region body
PF: predicated region fallthrough
CT: control target
= control target key end

     0   :  { %15 = vsyncpa [#allocation5], 0  ;;  %s7430_s0 = inlined_call_operand.vmem [shape: f32[64,1], index: 0, kind: input, shape index: {}]   ;;  %s7431_s1 = inlined_call_operand.vmem [shape: f32[1,512], index: 1, kind: input, shape index: {}]   ;;  %s7432_s2 = inlined_call_operand.hbm [shape: f32[128,512], index: 2, kind: input, shape index: {}]   ;;  %s7433_s3 = inlined_call_operand.vmem [shape: f32[1,512], index: 3, kind: input, shape index: {}]   ;;  %s7434_s4 = inlined_call_operand.hbm [shape: f32[256,512], index: 4, kind: input, shape index: {}]   ;;  %s7435_s5 = inlined_call_operand.vmem [shape: f32[1,512], index: 5, kind: input, shape index: {}]   ;;  %s7436_s6 = inlined_call_operand.hbm [shape: f32[128,128], index: 6, kind: input, shape index: {}]   ;;  %s7437_s7 = inlined_call_operand.vmem [shape: f32[1,128], index: 7, kind: input, shape index: {}]   ;;  %s7438_s8 = inlined_call_operand.hbm [shape: f32[128,128], index: 8, kind: input, shape index: {}]   ;;  %s7439_s9 = inlined_call_operand.vmem [shape: f32[1,128], index: 9, kind: input, shape index: {}]   ;;  %s7440_s10 = inlined_call_operand.vmem [shape: f32[64,128], index: 10, kind: output, shape index: {}]  }
   0x1   :  { %16 = vsyncpa [#allocation7], 0 }
   0x2   :  { %17 = vsyncpa [#allocation10], 0  ;;  %s5992_s13 = smov [#allocation6]   ;;  %s5993_s15 = smov [#allocation4]  }
   0x3   :  { %s41_s14 = sshll.u32 %s5992_s13, 4  ;;  %s27_s16 = sshll.u32 %s5993_s15, 4  ;;  %s42_s14 = int_to_ptr.vmem [resolvable:$true] %s41_s14  ;;  %s6056_s16 = int_to_ptr.vmem [resolvable:$true] %s27_s16 }
   0x4   :  { %s5898_s19 = scalar_lea.hbm %s7434_s4, 16384 }
   0x5   :  { %p5899_p0 = scmp.ne.s32.totalorder %s7434_s4, %s5898_s19  ;;  %p5902_p1 = scmp.lt.u32.totalorder %s5898_s19, %s7434_s4 }
   0x7   :  { %p5904_p2 = pnand %p5902_p1, %p5899_p0 }
   0x9   :  { %5907 = shalt.err (!%p5904_p2)
}
   0xa   :  { %s5908_s24 = scalar_lea.vmem %s42_s14, 16384  ;;  %p5913_p4 = scmp.lt.s32.totalorder %s42_s14, %s42_s14 }
   0xb   :  { %p5909_p3 = scmp.ne.s32.totalorder %s42_s14, %s5908_s24  ;;  %p5914_p5 = scmp.lt.s32.totalorder %s5908_s24, %s5908_s24 }
   0xd   :  { %p5915_p6 = por %p5914_p5, %p5913_p4 }
   0xf   :  { %p5916_p7 = pnand %p5915_p6, %p5909_p3 }
  0x11   :  { %5919 = shalt.err (!%p5916_p7)
}
  0x12   :  { %s5994_s25 = smov 512   ;;  %s5995_s26 = smov 32  }
  0x13   :  { %47 = dma.hbm_to_vmem [thread:$0]  %s7434_s4, 16384, %s42_s14, [#allocation7], %s5994_s25, %s5994_s25, %s5995_s26  }
  0x14   :  { %s5920_s11 = scalar_lea.hbm %s7432_s2, 8192 }
  0x15   :  { %p5921_p8 = scmp.ne.s32.totalorder %s7432_s2, %s5920_s11  ;;  %p5924_p9 = scmp.lt.u32.totalorder %s5920_s11, %s7432_s2 }
  0x17   :  { %p5926_p10 = pnand %p5924_p9, %p5921_p8 }
  0x19   :  { %5929 = shalt.err (!%p5926_p10)
}
  0x1a   :  { %s5930_s18 = scalar_lea.vmem %s6056_s16, 8192  ;;  %p5935_p12 = scmp.lt.s32.totalorder %s6056_s16, %s6056_s16 }
  0x1b   :  { %p5931_p11 = scmp.ne.s32.totalorder %s6056_s16, %s5930_s18  ;;  %p5936_p13 = scmp.lt.s32.totalorder %s5930_s18, %s5930_s18 }
  0x1d   :  { %p5937_p0 = por %p5936_p13, %p5935_p12 }
  0x1f   :  { %p5938_p1 = pnand %p5937_p0, %p5931_p11 }
  0x21   :  { %5941 = shalt.err (!%p5938_p1)
}
  0x22   :  { %33 = dma.hbm_to_vmem [thread:$0]  %s7432_s2, 8192, %s6056_s16, [#allocation5], %s5994_s25, %s5994_s25, %s5995_s26  }
  0x23   :  { %s5996_s19 = smov [#allocation8]   ;;  %s5942_s23 = scalar_lea.hbm %s7436_s6, 2048 }
  0x24   :  { %s55_s20 = sshll.u32 %s5996_s19, 4  ;;  %p5943_p2 = scmp.ne.s32.totalorder %s7436_s6, %s5942_s23  ;;  %s56_s20 = int_to_ptr.vmem [resolvable:$true] %s55_s20 }
  0x25   :  { %p5946_p3 = scmp.lt.u32.totalorder %s5942_s23, %s7436_s6 }
  0x27   :  { %p5948_p4 = pnand %p5946_p3, %p5943_p2 }
  0x29   :  { %5951 = shalt.err (!%p5948_p4)
}
  0x2a   :  { %s5952_s30 = scalar_lea.vmem %s56_s20, 2048  ;;  %p5957_p6 = scmp.lt.s32.totalorder %s56_s20, %s56_s20 }
  0x2b   :  { %p5953_p5 = scmp.ne.s32.totalorder %s56_s20, %s5952_s30  ;;  %p5958_p7 = scmp.lt.s32.totalorder %s5952_s30, %s5952_s30 }
  0x2d   :  { %p5959_p8 = por %p5958_p7, %p5957_p6 }
  0x2f   :  { %p5960_p9 = pnand %p5959_p8, %p5953_p5 }
  0x31   :  { %5963 = shalt.err (!%p5960_p9)
}
  0x32   :  { %s5997_s2 = smov 128   ;;  %s5998_s16 = smov 8  }
  0x33   :  { %61 = dma.hbm_to_vmem [thread:$0]  %s7436_s6, 2048, %s56_s20, [#allocation7], %s5997_s2, %s5997_s2, %s5998_s16  }
  0x34   :  { %s5999_s11 = smov [#allocation9]   ;;  %s5964_s17 = scalar_lea.hbm %s7438_s8, 2048 }
  0x35   :  { %s69_s12 = sshll.u32 %s5999_s11, 4  ;;  %p5965_p10 = scmp.ne.s32.totalorder %s7438_s8, %s5964_s17  ;;  %s70_s12 = int_to_ptr.vmem [resolvable:$true] %s69_s12 }
  0x36   :  { %p5968_p11 = scmp.lt.u32.totalorder %s5964_s17, %s7438_s8 }
  0x38   :  { %p5970_p12 = pnand %p5968_p11, %p5965_p10 }
  0x3a   :  { %5973 = shalt.err (!%p5970_p12)
}
  0x3b   :  { %s5974_s21 = scalar_lea.vmem %s70_s12, 2048  ;;  %p5979_p0 = scmp.lt.s32.totalorder %s70_s12, %s70_s12 }
  0x3c   :  { %p5975_p13 = scmp.ne.s32.totalorder %s70_s12, %s5974_s21  ;;  %p5980_p1 = scmp.lt.s32.totalorder %s5974_s21, %s5974_s21 }
  0x3e   :  { %p5981_p2 = por %p5980_p1, %p5979_p0 }
  0x40   :  { %p5982_p3 = pnand %p5981_p2, %p5975_p13 }
  0x42   :  { %5985 = shalt.err (!%p5982_p3)
}
  0x43   :  { %75 = dma.hbm_to_vmem [thread:$0]  %s7438_s8, 2048, %s70_s12, [#allocation10], %s5997_s2, %s5997_s2, %s5998_s16  }
  0x44   :  { %5986 = dma.done.wait [#allocation5], 8192  }
  0x45   :  { %5987 = vsyncadd [#allocation5], 4294959104 }
  0x46   :  { %5988 = dma.done.wait [#allocation7], 18432  }
  0x47   :  { %5989 = vsyncadd [#allocation7], 4294948864 }
  0x48   :  { %5990 = dma.done.wait [#allocation10], 2048  }
  0x49   :  { %5991 = vsyncadd [#allocation10], 4294965248  ;;  %v101_v0 = vlaneseq  ;;  %v7441_v1 = vmov 0.0   ;;  %v98_v7 = vld [vmem:[%s7431_s1] sm:$0xf]  ;;  %vm163_vm0 = vcmask 1040384  }
  0x4a   :  { %236 = vmatprep.mubr.f32.mxu0 %v7441_v1  ;;  %349 = vmatprep.mubr.f32.mxu1 %v7441_v1  ;;  %v90_v9 = vld [vmem:[%s7430_s0] sm:$0xff]  ;;  %v431_v10 = vld [vmem:[#allocation4 + $0x8] sm:$0xff]  ;;  %vm138_vm1 = vcmask 7168   ;;  %v433_v14 = vld [vmem:[#allocation4 + $0x18] sm:$0xff] }
  0x4b   :  { %v102_v2 = vshrl.u32 %v101_v0, 7  ;;  %v435_v11 = vld [vmem:[#allocation4 + $0x28] sm:$0xff]  ;;  %v437_v15 = vld [vmem:[#allocation4 + $0x38] sm:$0xff]  ;;  %v430_v16 = vld [vmem:[#allocation4] sm:$0xff] }
  0x4c   :  { %v434_v18 = vld [vmem:[#allocation4 + $0x20] sm:$0xff]  ;;  %v432_v19 = vld [vmem:[#allocation4 + $0x10] sm:$0xff]  ;;  %v6134_v21 = vpack.c.bf16 %v435_v11, %v431_v10  ;;  %v6136_v22 = vpack.c.bf16 %v437_v15, %v433_v14  ;;  %v91_v24 = vld [vmem:[%s7430_s0 + $0x8] sm:$0xff] }
  0x4d   :  { %v6113_v3 = vsub.s32 1, %v102_v2  ;;  %v6115_v4 = vsub.s32 3, %v102_v2  ;;  %v6117_v5 = vsub.s32 0, %v102_v2  ;;  %v6119_v6 = vsub.s32 2, %v102_v2  ;;  %v436_v20 = vld [vmem:[#allocation4 + $0x30] sm:$0xff]  ;;  %v439_v25 = vld [vmem:[#allocation4 + $0x48] sm:$0xff] }
  0x4e   :  { %7588 = vst [vmem:[#allocation16_spill] sm:$0xff] %v6134_v21  ;;  %7589 = vst [vmem:[#allocation17_spill] sm:$0xff] %v6136_v22  ;;  %v6138_v23 = vpack.c.bf16 %v434_v18, %v430_v16  ;;  %v443_v26 = vld [vmem:[#allocation4 + $0x68] sm:$0xff]  ;;  %v6145_v27 = vpack.c.bf16 %v436_v20, %v432_v19  ;;  %v441_v28 = vld [vmem:[#allocation4 + $0x58] sm:$0xff] }
  0x4f   :  { %7586 = vst [vmem:[#allocation14_spill] sm:$0xff] %v6113_v3  ;;  %7587 = vst [vmem:[#allocation15_spill] sm:$0xff] %v6117_v5  ;;  %v129_v8 = vrot.slane %v98_v7, %v6113_v3  ;;  %v137_v12 = vrot.slane %v98_v7, %v6115_v4  ;;  %v125_v13 = vrot.slane %v98_v7, %v6117_v5  ;;  %v445_v29 = vld [vmem:[#allocation4 + $0x78] sm:$0xff]  ;;  %v438_v30 = vld [vmem:[#allocation4 + $0x40] sm:$0xff] }
  0x50   :  { %v133_v17 = vrot.slane %v98_v7, %v6119_v6  ;;  %v6149_v31 = vpack.c.bf16 %v443_v26, %v439_v25  ;;  %v442_v32 = vld [vmem:[#allocation4 + $0x60] sm:$0xff]  ;;  %v440_v33 = vld [vmem:[#allocation4 + $0x50] sm:$0xff]  ;;  %v6153_v35 = vpack.c.bf16 %v445_v29, %v441_v28  ;;  %v447_v37 = vld [vmem:[#allocation4 + $0x88] sm:$0xff] }
  0x51   :  { %3731 = vmatprep.subr.msk.mxu0 %vm163_vm0, %v129_v8  ;;  %3741 = vmatprep.subr.msk.mxu1 %vm163_vm0, %v137_v12  ;;  %v444_v34 = vld [vmem:[#allocation4 + $0x70] sm:$0xff]  ;;  %v6155_v36 = vpack.c.bf16 %v442_v32, %v438_v30  ;;  %v451_v38 = vld [vmem:[#allocation4 + $0xa8] sm:$0xff]  ;;  %v449_v40 = vld [vmem:[#allocation4 + $0x98] sm:$0xff] }
  0x52   :  { %3732 = vmatpush1.msk.msra.mxu0 %vm163_vm0, %v125_v13  ;;  %3742 = vmatpush1.msk.msra.mxu1 %vm163_vm0, %v133_v17  ;;  %v6159_v39 = vpack.c.bf16 %v444_v34, %v440_v33  ;;  %v453_v41 = vld [vmem:[#allocation4 + $0xb8] sm:$0xff]  ;;  %v446_v42 = vld [vmem:[#allocation4 + $0x80] sm:$0xff]  ;;  %v448_v44 = vld [vmem:[#allocation4 + $0x90] sm:$0xff]  ;;  %v6168_v47 = vpack.c.bf16 %v451_v38, %v447_v37 }
  0x53   :  { %3733 = vmatmul.mubr.msk.f32.vlgmr.msra.gmra.mrb[0].mxu0 %vm138_vm1, %v90_v9  ;;  %3743 = vmatmul.mubr.msk.f32.vlgmr.msra.gmra.mrb[0].mxu1 %vm138_vm1, %v90_v9  ;;  %v450_v43 = vld [vmem:[#allocation4 + $0xa0] sm:$0xff]  ;;  %v452_v45 = vld [vmem:[#allocation4 + $0xb0] sm:$0xff]  ;;  %v6172_v48 = vpack.c.bf16 %v453_v41, %v449_v40  ;;  %v455_v50 = vld [vmem:[#allocation4 + $0xc8] sm:$0xff] }
  0x54   :  { %3938 = vmatprep.subr.bf16.mxu0 %v6134_v21  ;;  %3970 = vmatprep.subr.bf16.mxu1 %v6136_v22  ;;  %v92_v46 = vld [vmem:[%s7430_s0 + $0x10] sm:$0xff]  ;;  %v6174_v49 = vpack.c.bf16 %v450_v43, %v446_v42  ;;  %v459_v51 = vld [vmem:[#allocation4 + $0xe8] sm:$0xff]  ;;  %v457_v52 = vld [vmem:[#allocation4 + $0xd8] sm:$0xff]  ;;  %v6178_v53 = vpack.c.bf16 %v452_v45, %v448_v44 }
  0x55   :  { %3940 = vmatpush1.bf16.msra.mxu0 %v6138_v23  ;;  %3972 = vmatpush1.bf16.msra.mxu1 %v6145_v27  ;;  %v461_v54 = vld [vmem:[#allocation4 + $0xf8] sm:$0xff]  ;;  %v454_v55 = vld [vmem:[#allocation4 + $0xc0] sm:$0xff]  ;;  %v456_v57 = vld [vmem:[#allocation4 + $0xd0] sm:$0xff]  ;;  %v6187_v60 = vpack.c.bf16 %v459_v51, %v455_v50 }
  0x56   :  { %242 = vmatprep.mubr.f32.mxu0 %v7441_v1  ;;  %355 = vmatprep.mubr.f32.mxu1 %v7441_v1  ;;  %v458_v56 = vld [vmem:[#allocation4 + $0xe0] sm:$0xff]  ;;  %v460_v58 = vld [vmem:[#allocation4 + $0xf0] sm:$0xff]  ;;  %v93_v59 = vld [vmem:[%s7430_s0 + $0x18] sm:$0xff]  ;;  %v6191_v61 = vpack.c.bf16 %v461_v54, %v457_v52 }
  0x57   :  { %3734 = vmatmul.mubr.msk.f32.gmra.mrb[2].mxu0 %vm138_vm1, %v91_v24  ;;  %3744 = vmatmul.mubr.msk.f32.gmra.mrb[2].mxu1 %vm138_vm1, %v91_v24  ;;  %v6193_v62 = vpack.c.bf16 %v458_v56, %v454_v55  ;;  %v463_v63 = vld [vmem:[#allocation4 + $0x108] sm:$0xff]  ;;  %v465_v2 = vld [vmem:[#allocation4 + $0x118] sm:$0xff]  ;;  %v6197_v7 = vpack.c.bf16 %v460_v58, %v456_v57  ;;  %v462_v9 = vld [vmem:[#allocation4 + $0x100] sm:$0xff] }
  0x58   :  { %3942 = vmatprep.subr.bf16.mxu0 %v6149_v31  ;;  %3974 = vmatprep.subr.bf16.mxu1 %v6153_v35  ;;  %v467_v0 = vld [vmem:[#allocation4 + $0x128] sm:$0xff]  ;;  %v469_v8 = vld [vmem:[#allocation4 + $0x138] sm:$0xff]  ;;  %v466_v10 = vld [vmem:[#allocation4 + $0x120] sm:$0xff] }
  0x59   :  { %3944 = vmatpush1.bf16.msra.mxu0 %v6155_v36  ;;  %3976 = vmatpush1.bf16.msra.mxu1 %v6159_v39  ;;  %v464_v11 = vld [vmem:[#allocation4 + $0x110] sm:$0xff]  ;;  %v94_v13 = vld [vmem:[%s7430_s0 + $0x20] sm:$0xff]  ;;  %v6206_v14 = vpack.c.bf16 %v467_v0, %v463_v63  ;;  %v6210_v15 = vpack.c.bf16 %v469_v8, %v465_v2  ;;  %v6212_v16 = vpack.c.bf16 %v466_v10, %v462_v9  ;;  %v471_v17 = vld [vmem:[#allocation4 + $0x148] sm:$0xff] }
  0x5a   :  { %248 = vmatprep.mubr.f32.mxu0 %v7441_v1  ;;  %361 = vmatprep.mubr.f32.mxu1 %v7441_v1  ;;  %v468_v12 = vld [vmem:[#allocation4 + $0x130] sm:$0xff]  ;;  %v475_v18 = vld [vmem:[#allocation4 + $0x168] sm:$0xff]  ;;  %v473_v19 = vld [vmem:[#allocation4 + $0x158] sm:$0xff] }
  0x5b   :  { %3735 = vmatmul.mubr.msk.f32.gmra.mrb[4].mxu0 %vm138_vm1, %v92_v46  ;;  %3745 = vmatmul.mubr.msk.f32.gmra.mrb[4].mxu1 %vm138_vm1, %v92_v46  ;;  %v6216_v20 = vpack.c.bf16 %v468_v12, %v464_v11  ;;  %v477_v24 = vld [vmem:[#allocation4 + $0x178] sm:$0xff]  ;;  %v470_v25 = vld [vmem:[#allocation4 + $0x140] sm:$0xff]  ;;  %v472_v28 = vld [vmem:[#allocation4 + $0x150] sm:$0xff]  ;;  %v6225_v32 = vpack.c.bf16 %v475_v18, %v471_v17 }
  0x5c   :  { %3946 = vmatprep.subr.bf16.mxu0 %v6168_v47  ;;  %3978 = vmatprep.subr.bf16.mxu1 %v6172_v48  ;;  %v474_v26 = vld [vmem:[#allocation4 + $0x160] sm:$0xff]  ;;  %v476_v29 = vld [vmem:[#allocation4 + $0x170] sm:$0xff]  ;;  %v95_v30 = vld [vmem:[%s7430_s0 + $0x28] sm:$0xff]  ;;  %v6229_v33 = vpack.c.bf16 %v477_v24, %v473_v19 }
  0x5d   :  { %3948 = vmatpush1.bf16.msra.mxu0 %v6174_v49  ;;  %3980 = vmatpush1.bf16.msra.mxu1 %v6178_v53  ;;  %v6231_v34 = vpack.c.bf16 %v474_v26, %v470_v25  ;;  %v479_v37 = vld [vmem:[#allocation4 + $0x188] sm:$0xff]  ;;  %v481_v40 = vld [vmem:[#allocation4 + $0x198] sm:$0xff]  ;;  %v6235_v41 = vpack.c.bf16 %v476_v29, %v472_v28  ;;  %v478_v43 = vld [vmem:[#allocation4 + $0x180] sm:$0xff] }
  0x5e   :  { %254 = vmatprep.mubr.f32.mxu0 %v7441_v1  ;;  %367 = vmatprep.mubr.f32.mxu1 %v7441_v1  ;;  %v483_v38 = vld [vmem:[#allocation4 + $0x1a8] sm:$0xff]  ;;  %v485_v42 = vld [vmem:[#allocation4 + $0x1b8] sm:$0xff]  ;;  %v482_v44 = vld [vmem:[#allocation4 + $0x1a0] sm:$0xff] }
  0x5f   :  { %3736 = vmatmul.mubr.msk.f32.gmra.mrb[6].mxu0 %vm138_vm1, %v93_v59  ;;  %3746 = vmatmul.mubr.msk.f32.gmra.mrb[6].mxu1 %vm138_vm1, %v93_v59  ;;  %v480_v45 = vld [vmem:[#allocation4 + $0x190] sm:$0xff]  ;;  %v6244_v51 = vpack.c.bf16 %v483_v38, %v479_v37  ;;  %v6248_v52 = vpack.c.bf16 %v485_v42, %v481_v40  ;;  %v6250_v54 = vpack.c.bf16 %v482_v44, %v478_v43  ;;  %v487_v55 = vld [vmem:[#allocation4 + $0x1c8] sm:$0xff]  ;;  %v489_v57 = vld [vmem:[#allocation4 + $0x1d8] sm:$0xff] }
  0x60   :  { %3950 = vmatprep.subr.bf16.mxu0 %v6187_v60  ;;  %3982 = vmatprep.subr.bf16.mxu1 %v6191_v61  ;;  %v484_v46 = vld [vmem:[#allocation4 + $0x1b0] sm:$0xff]  ;;  %v491_v56 = vld [vmem:[#allocation4 + $0x1e8] sm:$0xff]  ;;  %v493_v59 = vld [vmem:[#allocation4 + $0x1f8] sm:$0xff] }
  0x61   :  { %3952 = vmatpush1.bf16.msra.mxu0 %v6193_v62  ;;  %3984 = vmatpush1.bf16.msra.mxu1 %v6197_v7  ;;  %v96_v50 = vld [vmem:[%s7430_s0 + $0x30] sm:$0xff]  ;;  %v6254_v58 = vpack.c.bf16 %v484_v46, %v480_v45  ;;  %v486_v63 = vld [vmem:[#allocation4 + $0x1c0] sm:$0xff]  ;;  %v97_v9 = vld [vmem:[%s7430_s0 + $0x38] sm:$0xff]  ;;  %v6263_v10 = vpack.c.bf16 %v491_v56, %v487_v55 }
  0x62   :  { %260 = vmatprep.mubr.f32.mxu0 %v7441_v1  ;;  %373 = vmatprep.mubr.f32.mxu1 %v7441_v1  ;;  %v490_v0 = vld [vmem:[#allocation4 + $0x1e0] sm:$0xff]  ;;  %v488_v2 = vld [vmem:[#allocation4 + $0x1d0] sm:$0xff]  ;;  %v495_v11 = vld [vmem:[#allocation6 + $0x8] sm:$0xff] }
  0x63   :  { %3737 = vmatmul.mubr.msk.f32.gmra.mrb[8].mxu0 %vm138_vm1, %v94_v13  ;;  %3747 = vmatmul.mubr.msk.f32.gmra.mrb[8].mxu1 %vm138_vm1, %v94_v13  ;;  %v492_v8 = vld [vmem:[#allocation4 + $0x1f0] sm:$0xff]  ;;  %v499_v12 = vld [vmem:[#allocation6 + $0x28] sm:$0xff]  ;;  %v6267_v13 = vpack.c.bf16 %v493_v59, %v489_v57  ;;  %v6269_v17 = vpack.c.bf16 %v490_v0, %v486_v63  ;;  %v497_v18 = vld [vmem:[#allocation6 + $0x18] sm:$0xff] }
  0x64   :  { %3954 = vmatprep.subr.bf16.mxu0 %v6206_v14  ;;  %3986 = vmatprep.subr.bf16.mxu1 %v6210_v15  ;;  %v501_v19 = vld [vmem:[#allocation6 + $0x38] sm:$0xff]  ;;  %v6273_v24 = vpack.c.bf16 %v492_v8, %v488_v2  ;;  %v494_v25 = vld [vmem:[#allocation6] sm:$0xff]  ;;  %v496_v28 = vld [vmem:[#allocation6 + $0x10] sm:$0xff]  ;;  %v6277_v29 = vpack.c.bf16 %v499_v12, %v495_v11 }
  0x65   :  { %3956 = vmatpush1.bf16.msra.mxu0 %v6212_v16  ;;  %3988 = vmatpush1.bf16.msra.mxu1 %v6216_v20  ;;  %v498_v26 = vld [vmem:[#allocation6 + $0x20] sm:$0xff]  ;;  %v503_v37 = vld [vmem:[#allocation6 + $0x48] sm:$0xff]  ;;  %v6281_v40 = vpack.c.bf16 %v501_v19, %v497_v18  ;;  %v505_v42 = vld [vmem:[#allocation6 + $0x58] sm:$0xff] }
  0x66   :  { %266 = vmatprep.mubr.f32.mxu0 %v7441_v1  ;;  %379 = vmatprep.mubr.f32.mxu1 %v7441_v1  ;;  %v507_v38 = vld [vmem:[#allocation6 + $0x68] sm:$0xff]  ;;  %v509_v43 = vld [vmem:[#allocation6 + $0x78] sm:$0xff]  ;;  %v6285_v44 = vpack.c.bf16 %v498_v26, %v494_v25  ;;  %v506_v55 = vld [vmem:[#allocation6 + $0x60] sm:$0xff] }
  0x67   :  { %3738 = vmatmul.mubr.msk.f32.gmra.mrb[10].mxu0 %vm138_vm1, %v95_v30  ;;  %3748 = vmatmul.mubr.msk.f32.gmra.mrb[10].mxu1 %vm138_vm1, %v95_v30  ;;  %v500_v30 = vld [vmem:[#allocation6 + $0x30] sm:$0xff]  ;;  %v6291_v46 = vpack.c.bf16 %v507_v38, %v503_v37  ;;  %v6295_v57 = vpack.c.bf16 %v509_v43, %v505_v42  ;;  %v511_v63 = vld [vmem:[#allocation6 + $0x88] sm:$0xff]  ;;  %v513_v2 = vld [vmem:[#allocation6 + $0x98] sm:$0xff] }
  0x68   :  { %3958 = vmatprep.subr.bf16.mxu0 %v6225_v32  ;;  %3990 = vmatprep.subr.bf16.mxu1 %v6229_v33  ;;  %v6289_v45 = vpack.c.bf16 %v500_v30, %v496_v28  ;;  %v504_v56 = vld [vmem:[#allocation6 + $0x50] sm:$0xff]  ;;  %v515_v0 = vld [vmem:[#allocation6 + $0xa8] sm:$0xff]  ;;  %v517_v8 = vld [vmem:[#allocation6 + $0xb8] sm:$0xff] }
  0x69   :  { %3960 = vmatpush1.bf16.msra.mxu0 %v6231_v34  ;;  %3992 = vmatpush1.bf16.msra.mxu1 %v6235_v41  ;;  %v508_v59 = vld [vmem:[#allocation6 + $0x70] sm:$0xff]  ;;  %v6307_v12 = vpack.c.bf16 %v515_v0, %v511_v63  ;;  %v510_v18 = vld [vmem:[#allocation6 + $0x80] sm:$0xff]  ;;  %v6310_v26 = vpack.c.bf16 %v517_v8, %v513_v2  ;;  %v519_v30 = vld [vmem:[#allocation6 + $0xc8] sm:$0xff] }
  0x6a   :  { %272 = vmatprep.mubr.f32.mxu0 %v7441_v1  ;;  %385 = vmatprep.mubr.f32.mxu1 %v7441_v1  ;;  %v6305_v11 = vpack.c.bf16 %v508_v59, %v504_v56  ;;  %v514_v19 = vld [vmem:[#allocation6 + $0xa0] sm:$0xff]  ;;  %v512_v25 = vld [vmem:[#allocation6 + $0x90] sm:$0xff]  ;;  %v523_v37 = vld [vmem:[#allocation6 + $0xe8] sm:$0xff] }
  0x6b   :  { %3739 = vmatmul.mubr.msk.f32.gmra.mrb[12].mxu0 %vm138_vm1, %v96_v50  ;;  %3749 = vmatmul.mubr.msk.f32.gmra.mrb[12].mxu1 %vm138_vm1, %v96_v50  ;;  %v502_v50 = vld [vmem:[#allocation6 + $0x40] sm:$0xff]  ;;  %7591 = vst [vmem:[#allocation19_spill] sm:$0xff] %v6307_v12  ;;  %7592 = vst [vmem:[#allocation20_spill] sm:$0xff] %v6310_v26  ;;  %v516_v28 = vld [vmem:[#allocation6 + $0xb0] sm:$0xff]  ;;  %v6315_v43 = vpack.c.bf16 %v514_v19, %v510_v18 }
  0x6c   :  { %3962 = vmatprep.subr.bf16.mxu0 %v6244_v51  ;;  %3994 = vmatprep.subr.bf16.mxu1 %v6248_v52  ;;  %7590 = vst [vmem:[#allocation18_spill] sm:$0xff] %v6305_v11  ;;  %v521_v38 = vld [vmem:[#allocation6 + $0xd8] sm:$0xff]  ;;  %v518_v56 = vld [vmem:[#allocation6 + $0xc0] sm:$0xff]  ;;  %v520_v63 = vld [vmem:[#allocation6 + $0xd0] sm:$0xff] }
  0x6d   :  { %3964 = vmatpush1.bf16.msra.mxu0 %v6250_v54  ;;  %3996 = vmatpush1.bf16.msra.mxu1 %v6254_v58  ;;  %v525_v42 = vld [vmem:[#allocation6 + $0xf8] sm:$0xff]  ;;  %7593 = vst [vmem:[#allocation21_spill] sm:$0xff] %v6315_v43  ;;  %v522_v59 = vld [vmem:[#allocation6 + $0xe0] sm:$0xff]  ;;  %v524_v2 = vld [vmem:[#allocation6 + $0xf0] sm:$0xff] }
  0x6e   :  { %278 = vmatprep.mubr.f32.mxu0 %v7441_v1  ;;  %391 = vmatprep.mubr.f32.mxu1 %v7441_v1  ;;  %v6324_v0 = vpack.c.bf16 %v525_v42, %v521_v38  ;;  %v527_v8 = vld [vmem:[#allocation6 + $0x108] sm:$0xff]  ;;  %v529_v18 = vld [vmem:[#allocation6 + $0x118] sm:$0xff]  ;;  %v528_v42 = vld [vmem:[#allocation6 + $0x110] sm:$0xff] }
  0x6f   :  { %3740 = vmatmul.mubr.msk.f32.gmra.mrb[14].mxu0 %vm138_vm1, %v97_v9  ;;  %3750 = vmatmul.mubr.msk.f32.gmra.mrb[14].mxu1 %vm138_vm1, %v97_v9  ;;  %v6301_v9 = vpack.c.bf16 %v506_v55, %v502_v50  ;;  %v6319_v50 = vpack.c.bf16 %v516_v28, %v512_v25  ;;  %v6321_v55 = vpack.c.bf16 %v523_v37, %v519_v30  ;;  %v533_v19 = vld [vmem:[#allocation6 + $0x138] sm:$0xff]  ;;  %v526_v30 = vld [vmem:[#allocation6 + $0x100] sm:$0xff] }
  0x70   :  { %3966 = vmatprep.subr.bf16.mxu0 %v6263_v10  ;;  %3998 = vmatprep.subr.bf16.mxu1 %v6267_v13  ;;  %7596 = vst [vmem:[#allocation24_spill] sm:$0xff] %v6324_v0  ;;  %v6331_v25 = vpack.c.bf16 %v524_v2, %v520_v63  ;;  %v530_v37 = vld [vmem:[#allocation6 + $0x120] sm:$0xff]  ;;  %v6336_v38 = vpack.c.bf16 %v533_v19, %v529_v18  ;;  %v539_v63 = vld [vmem:[#allocation6 + $0x168] sm:$0xff]  ;;  %v537_v2 = vld [vmem:[#allocation6 + $0x158] sm:$0xff] }
  0x71   :  { %3968 = vmatpush1.bf16.msra.mxu0 %v6269_v17  ;;  %4000 = vmatpush1.bf16.msra.mxu1 %v6273_v24  ;;  %7594 = vst [vmem:[#allocation22_spill] sm:$0xff] %v6319_v50  ;;  %7595 = vst [vmem:[#allocation23_spill] sm:$0xff] %v6321_v55  ;;  %v541_v18 = vld [vmem:[#allocation6 + $0x178] sm:$0xff]  ;;  %v534_v19 = vld [vmem:[#allocation6 + $0x140] sm:$0xff] }
  0x72   :  { %712 = vmatprep.mubr.f32.mxu0 %v7441_v1  ;;  %783 = vmatprep.mubr.f32.mxu1 %v7441_v1  ;;  %7598 = vst [vmem:[#allocation26_spill] sm:$0xff] %v6331_v25  ;;  %7600 = vst [vmem:[#allocation28_spill] sm:$0xff] %v6336_v38 }
  0x73   :  { %4002 = vmatprep.subr.bf16.mxu0 %v6277_v29  ;;  %4066 = vmatprep.subr.bf16.mxu1 %v6281_v40 }
  0x74   :  { %713 = vmatmul.mubr.f32.vlgmr.msra.gmra.mrb[0].mxu0 %v7441_v1  ;;  %784 = vmatmul.mubr.f32.vlgmr.msra.gmra.mrb[0].mxu1 %v7441_v1 }
  0x75   :  { %4004 = vmatpush1.bf16.msra.mxu0 %v6285_v44  ;;  %4068 = vmatpush1.bf16.msra.mxu1 %v6289_v45 }
  0x76   :  { %4006 = vmatprep.subr.bf16.mxu0 %v6291_v46  ;;  %4070 = vmatprep.subr.bf16.mxu1 %v6295_v57 }
  0x77   :  { %882 = vmatprep.mubr.f32.mxu0 %v7441_v1  ;;  %953 = vmatprep.mubr.f32.mxu1 %v7441_v1  ;;  %v531_v1 = vld [vmem:[#allocation6 + $0x128] sm:$0xff] }
  0x78   :  { %v6333_v28 = vpack.c.bf16 %v531_v1, %v527_v8  ;;  %v535_v1 = vld [vmem:[#allocation6 + $0x148] sm:$0xff] }
  0x79   :  { %4008 = vmatpush1.bf16.msra.mxu0 %v6301_v9  ;;  %4072 = vmatpush1.bf16.msra.mxu1 %v6305_v11  ;;  %v6327_v11 = vpack.c.bf16 %v522_v59, %v518_v56  ;;  %v6339_v56 = vpack.c.bf16 %v530_v37, %v526_v30  ;;  %v6348_v8 = vpack.c.bf16 %v539_v63, %v535_v1  ;;  %v538_v30 = vld [vmem:[#allocation6 + $0x160] sm:$0xff]  ;;  %v547_v1 = vld [vmem:[#allocation6 + $0x1a8] sm:$0xff]  ;;  %v545_v63 = vld [vmem:[#allocation6 + $0x198] sm:$0xff] }
  0x7a   :  { %4010 = vmatprep.subr.bf16.mxu0 %v6307_v12  ;;  %4074 = vmatprep.subr.bf16.mxu1 %v6310_v26  ;;  %7599 = vst [vmem:[#allocation27_spill] sm:$0xff] %v6333_v28  ;;  %v532_v26 = vld [vmem:[#allocation6 + $0x130] sm:$0xff]  ;;  %v6350_v37 = vpack.c.bf16 %v541_v18, %v537_v2  ;;  %v549_v2 = vld [vmem:[#allocation6 + $0x1b8] sm:$0xff]  ;;  %v542_v18 = vld [vmem:[#allocation6 + $0x180] sm:$0xff] }
  0x7b   :  { %7597 = vst [vmem:[#allocation25_spill] sm:$0xff] %v6327_v11  ;;  %7601 = vst [vmem:[#allocation29_spill] sm:$0xff] %v6339_v56  ;;  %v6343_v59 = vpack.c.bf16 %v532_v26, %v528_v42  ;;  %v536_v26 = vld [vmem:[#allocation6 + $0x150] sm:$0xff] }
  0x7c   :  { %7603 = vst [vmem:[#allocation31_spill] sm:$0xff] %v6348_v8  ;;  %7604 = vst [vmem:[#allocation32_spill] sm:$0xff] %v6350_v37  ;;  %v540_v42 = vld [vmem:[#allocation6 + $0x170] sm:$0xff] }
  0x7d   :  { %4012 = vmatpush1.bf16.msra.mxu0 %v6315_v43  ;;  %4076 = vmatpush1.bf16.msra.mxu1 %v6319_v50  ;;  %7602 = vst [vmem:[#allocation30_spill] sm:$0xff] %v6343_v59 }
  0x7e   :  { %4014 = vmatprep.subr.bf16.mxu0 %v6321_v55  ;;  %4078 = vmatprep.subr.bf16.mxu1 %v6324_v0  ;;  %v613_v0 = vld [vmem:[#allocation6 + $0x3b8] sm:$0xff] }
  0x81   :  { %4016 = vmatpush1.bf16.msra.mxu0 %v6327_v11  ;;  %4080 = vmatpush1.bf16.msra.mxu1 %v6331_v25  ;;  %v6352_v25 = vpack.c.bf16 %v538_v30, %v534_v19  ;;  %v546_v19 = vld [vmem:[#allocation6 + $0x1a0] sm:$0xff]  ;;  %v6362_v30 = vpack.c.bf16 %v549_v2, %v545_v63  ;;  %v557_v63 = vld [vmem:[#allocation6 + $0x1f8] sm:$0xff] }
  0x82   :  { %4018 = vmatprep.subr.bf16.mxu0 %v6333_v28  ;;  %4082 = vmatprep.subr.bf16.mxu1 %v6336_v38  ;;  %v6355_v38 = vpack.c.bf16 %v540_v42, %v536_v26  ;;  %v6364_v28 = vpack.c.bf16 %v546_v19, %v542_v18  ;;  %v544_v26 = vld [vmem:[#allocation6 + $0x190] sm:$0xff]  ;;  %v550_v2 = vld [vmem:[#allocation6 + $0x1c0] sm:$0xff]  ;;  %v609_v11 = vld [vmem:[#allocation6 + $0x398] sm:$0xff] }
  0x83   :  { %7605 = vst [vmem:[#allocation33_spill] sm:$0xff] %v6352_v25  ;;  %7608 = vst [vmem:[#allocation36_spill] sm:$0xff] %v6362_v30  ;;  %v548_v42 = vld [vmem:[#allocation6 + $0x1b0] sm:$0xff]  ;;  %v554_v18 = vld [vmem:[#allocation6 + $0x1e0] sm:$0xff] }
  0x84   :  { %7606 = vst [vmem:[#allocation34_spill] sm:$0xff] %v6355_v38  ;;  %7609 = vst [vmem:[#allocation37_spill] sm:$0xff] %v6364_v28 }
  0x85   :  { %4020 = vmatpush1.bf16.msra.mxu0 %v6339_v56  ;;  %4084 = vmatpush1.bf16.msra.mxu1 %v6343_v59  ;;  %v543_v59 = vld [vmem:[#allocation6 + $0x188] sm:$0xff] }
  0x86   :  { %4022 = vmatprep.subr.bf16.mxu0 %v6348_v8  ;;  %4086 = vmatprep.subr.bf16.mxu1 %v6350_v37  ;;  %v6360_v56 = vpack.c.bf16 %v547_v1, %v543_v59  ;;  %v6367_v37 = vpack.c.bf16 %v548_v42, %v544_v26  ;;  %v555_v59 = vld [vmem:[#allocation6 + $0x1e8] sm:$0xff]  ;;  %v553_v1 = vld [vmem:[#allocation6 + $0x1d8] sm:$0xff]  ;;  %v6376_v8 = vpack.c.bf16 %v554_v18, %v550_v2  ;;  %v552_v26 = vld [vmem:[#allocation6 + $0x1d0] sm:$0xff] }
  0x87   :  { %v6374_v19 = vpack.c.bf16 %v557_v63, %v553_v1  ;;  %v556_v42 = vld [vmem:[#allocation6 + $0x1f0] sm:$0xff]  ;;  %v565_v1 = vld [vmem:[#allocation6 + $0x238] sm:$0xff]  ;;  %v558_v63 = vld [vmem:[#allocation6 + $0x200] sm:$0xff] }
  0x88   :  { %7607 = vst [vmem:[#allocation35_spill] sm:$0xff] %v6360_v56  ;;  %7610 = vst [vmem:[#allocation38_spill] sm:$0xff] %v6367_v37  ;;  %v562_v2 = vld [vmem:[#allocation6 + $0x220] sm:$0xff] }
  0x89   :  { %4024 = vmatpush1.bf16.msra.mxu0 %v6352_v25  ;;  %4088 = vmatpush1.bf16.msra.mxu1 %v6355_v38  ;;  %v551_v38 = vld [vmem:[#allocation6 + $0x1c8] sm:$0xff]  ;;  %7612 = vst [vmem:[#allocation40_spill] sm:$0xff] %v6374_v19  ;;  %7613 = vst [vmem:[#allocation41_spill] sm:$0xff] %v6376_v8 }
  0x8a   :  { %4026 = vmatprep.subr.bf16.mxu0 %v6360_v56  ;;  %4090 = vmatprep.subr.bf16.mxu1 %v6362_v30  ;;  %v6372_v25 = vpack.c.bf16 %v555_v59, %v551_v38  ;;  %v6379_v30 = vpack.c.bf16 %v556_v42, %v552_v26  ;;  %v563_v38 = vld [vmem:[#allocation6 + $0x228] sm:$0xff]  ;;  %v561_v59 = vld [vmem:[#allocation6 + $0x218] sm:$0xff]  ;;  %v6388_v56 = vpack.c.bf16 %v562_v2, %v558_v63  ;;  %v560_v26 = vld [vmem:[#allocation6 + $0x210] sm:$0xff] }
  0x8b   :  { %v6386_v18 = vpack.c.bf16 %v565_v1, %v561_v59  ;;  %v564_v42 = vld [vmem:[#allocation6 + $0x230] sm:$0xff]  ;;  %v573_v59 = vld [vmem:[#allocation6 + $0x278] sm:$0xff]  ;;  %v566_v1 = vld [vmem:[#allocation6 + $0x240] sm:$0xff] }
  0x8c   :  { %7611 = vst [vmem:[#allocation39_spill] sm:$0xff] %v6372_v25  ;;  %7614 = vst [vmem:[#allocation42_spill] sm:$0xff] %v6379_v30  ;;  %v570_v63 = vld [vmem:[#allocation6 + $0x260] sm:$0xff] }
  0x8d   :  { %4028 = vmatpush1.bf16.msra.mxu0 %v6364_v28  ;;  %4092 = vmatpush1.bf16.msra.mxu1 %v6367_v37  ;;  %v559_v37 = vld [vmem:[#allocation6 + $0x208] sm:$0xff]  ;;  %7616 = vst [vmem:[#allocation44_spill] sm:$0xff] %v6386_v18  ;;  %7617 = vst [vmem:[#allocation45_spill] sm:$0xff] %v6388_v56 }
  0x8e   :  { %4030 = vmatprep.subr.bf16.mxu0 %v6372_v25  ;;  %4094 = vmatprep.subr.bf16.mxu1 %v6374_v19  ;;  %v6384_v28 = vpack.c.bf16 %v563_v38, %v559_v37  ;;  %v6391_v19 = vpack.c.bf16 %v564_v42, %v560_v26  ;;  %v571_v37 = vld [vmem:[#allocation6 + $0x268] sm:$0xff]  ;;  %v569_v38 = vld [vmem:[#allocation6 + $0x258] sm:$0xff]  ;;  %v6400_v25 = vpack.c.bf16 %v570_v63, %v566_v1  ;;  %v568_v26 = vld [vmem:[#allocation6 + $0x250] sm:$0xff] }
  0x8f   :  { %v6398_v2 = vpack.c.bf16 %v573_v59, %v569_v38  ;;  %v572_v42 = vld [vmem:[#allocation6 + $0x270] sm:$0xff]  ;;  %v581_v38 = vld [vmem:[#allocation6 + $0x2b8] sm:$0xff]  ;;  %v574_v59 = vld [vmem:[#allocation6 + $0x280] sm:$0xff] }
  0x90   :  { %7615 = vst [vmem:[#allocation43_spill] sm:$0xff] %v6384_v28  ;;  %7618 = vst [vmem:[#allocation46_spill] sm:$0xff] %v6391_v19  ;;  %v578_v1 = vld [vmem:[#allocation6 + $0x2a0] sm:$0xff] }
  0x91   :  { %4032 = vmatpush1.bf16.msra.mxu0 %v6376_v8  ;;  %4096 = vmatpush1.bf16.msra.mxu1 %v6379_v30  ;;  %v567_v30 = vld [vmem:[#allocation6 + $0x248] sm:$0xff]  ;;  %7620 = vst [vmem:[#allocation48_spill] sm:$0xff] %v6398_v2  ;;  %7621 = vst [vmem:[#allocation49_spill] sm:$0xff] %v6400_v25 }
  0x92   :  { %4034 = vmatprep.subr.bf16.mxu0 %v6384_v28  ;;  %4098 = vmatprep.subr.bf16.mxu1 %v6386_v18  ;;  %v6396_v8 = vpack.c.bf16 %v571_v37, %v567_v30  ;;  %v6403_v18 = vpack.c.bf16 %v572_v42, %v568_v26  ;;  %v579_v30 = vld [vmem:[#allocation6 + $0x2a8] sm:$0xff]  ;;  %v577_v37 = vld [vmem:[#allocation6 + $0x298] sm:$0xff]  ;;  %v6412_v28 = vpack.c.bf16 %v578_v1, %v574_v59  ;;  %v576_v26 = vld [vmem:[#allocation6 + $0x290] sm:$0xff] }
  0x93   :  { %v6410_v63 = vpack.c.bf16 %v581_v38, %v577_v37  ;;  %v580_v42 = vld [vmem:[#allocation6 + $0x2b0] sm:$0xff]  ;;  %v589_v37 = vld [vmem:[#allocation6 + $0x2f8] sm:$0xff]  ;;  %v582_v38 = vld [vmem:[#allocation6 + $0x2c0] sm:$0xff] }
  0x94   :  { %7619 = vst [vmem:[#allocation47_spill] sm:$0xff] %v6396_v8  ;;  %7622 = vst [vmem:[#allocation50_spill] sm:$0xff] %v6403_v18  ;;  %v586_v59 = vld [vmem:[#allocation6 + $0x2e0] sm:$0xff] }
  0x95   :  { %4036 = vmatpush1.bf16.msra.mxu0 %v6388_v56  ;;  %4100 = vmatpush1.bf16.msra.mxu1 %v6391_v19  ;;  %v575_v19 = vld [vmem:[#allocation6 + $0x288] sm:$0xff]  ;;  %7624 = vst [vmem:[#allocation52_spill] sm:$0xff] %v6410_v63  ;;  %7625 = vst [vmem:[#allocation53_spill] sm:$0xff] %v6412_v28 }
  0x96   :  { %4038 = vmatprep.subr.bf16.mxu0 %v6396_v8  ;;  %4102 = vmatprep.subr.bf16.mxu1 %v6398_v2  ;;  %v6408_v56 = vpack.c.bf16 %v579_v30, %v575_v19  ;;  %v6415_v2 = vpack.c.bf16 %v580_v42, %v576_v26  ;;  %v587_v19 = vld [vmem:[#allocation6 + $0x2e8] sm:$0xff]  ;;  %v585_v30 = vld [vmem:[#allocation6 + $0x2d8] sm:$0xff]  ;;  %v6424_v8 = vpack.c.bf16 %v586_v59, %v582_v38  ;;  %v584_v26 = vld [vmem:[#allocation6 + $0x2d0] sm:$0xff] }
  0x97   :  { %v6422_v1 = vpack.c.bf16 %v589_v37, %v585_v30  ;;  %v588_v42 = vld [vmem:[#allocation6 + $0x2f0] sm:$0xff]  ;;  %v597_v30 = vld [vmem:[#allocation6 + $0x338] sm:$0xff]  ;;  %v590_v37 = vld [vmem:[#allocation6 + $0x300] sm:$0xff] }
  0x98   :  { %7623 = vst [vmem:[#allocation51_spill] sm:$0xff] %v6408_v56  ;;  %7626 = vst [vmem:[#allocation54_spill] sm:$0xff] %v6415_v2  ;;  %v594_v38 = vld [vmem:[#allocation6 + $0x320] sm:$0xff] }
  0x99   :  { %4040 = vmatpush1.bf16.msra.mxu0 %v6400_v25  ;;  %4104 = vmatpush1.bf16.msra.mxu1 %v6403_v18  ;;  %v583_v18 = vld [vmem:[#allocation6 + $0x2c8] sm:$0xff]  ;;  %7628 = vst [vmem:[#allocation56_spill] sm:$0xff] %v6422_v1  ;;  %7629 = vst [vmem:[#allocation57_spill] sm:$0xff] %v6424_v8 }
  0x9a   :  { %4042 = vmatprep.subr.bf16.mxu0 %v6408_v56  ;;  %4106 = vmatprep.subr.bf16.mxu1 %v6410_v63  ;;  %v6420_v25 = vpack.c.bf16 %v587_v19, %v583_v18  ;;  %v6427_v63 = vpack.c.bf16 %v588_v42, %v584_v26  ;;  %v595_v18 = vld [vmem:[#allocation6 + $0x328] sm:$0xff]  ;;  %v593_v19 = vld [vmem:[#allocation6 + $0x318] sm:$0xff]  ;;  %v6436_v56 = vpack.c.bf16 %v594_v38, %v590_v37  ;;  %v592_v26 = vld [vmem:[#allocation6 + $0x310] sm:$0xff] }
  0x9b   :  { %v6434_v59 = vpack.c.bf16 %v597_v30, %v593_v19  ;;  %v596_v42 = vld [vmem:[#allocation6 + $0x330] sm:$0xff]  ;;  %v605_v19 = vld [vmem:[#allocation6 + $0x378] sm:$0xff]  ;;  %v598_v30 = vld [vmem:[#allocation6 + $0x340] sm:$0xff] }
  0x9c   :  { %7627 = vst [vmem:[#allocation55_spill] sm:$0xff] %v6420_v25  ;;  %7630 = vst [vmem:[#allocation58_spill] sm:$0xff] %v6427_v63  ;;  %v602_v37 = vld [vmem:[#allocation6 + $0x360] sm:$0xff] }
  0x9d   :  { %4044 = vmatpush1.bf16.msra.mxu0 %v6412_v28  ;;  %4108 = vmatpush1.bf16.msra.mxu1 %v6415_v2  ;;  %v591_v2 = vld [vmem:[#allocation6 + $0x308] sm:$0xff]  ;;  %7632 = vst [vmem:[#allocation60_spill] sm:$0xff] %v6434_v59  ;;  %7633 = vst [vmem:[#allocation61_spill] sm:$0xff] %v6436_v56 }
  0x9e   :  { %4046 = vmatprep.subr.bf16.mxu0 %v6420_v25  ;;  %4110 = vmatprep.subr.bf16.mxu1 %v6422_v1  ;;  %v6432_v28 = vpack.c.bf16 %v595_v18, %v591_v2  ;;  %v6439_v1 = vpack.c.bf16 %v596_v42, %v592_v26  ;;  %v603_v2 = vld [vmem:[#allocation6 + $0x368] sm:$0xff]  ;;  %v601_v18 = vld [vmem:[#allocation6 + $0x358] sm:$0xff]  ;;  %v6448_v25 = vpack.c.bf16 %v602_v37, %v598_v30  ;;  %v600_v26 = vld [vmem:[#allocation6 + $0x350] sm:$0xff] }
  0x9f   :  { %v6446_v38 = vpack.c.bf16 %v605_v19, %v601_v18  ;;  %v604_v42 = vld [vmem:[#allocation6 + $0x370] sm:$0xff]  ;;  %v606_v18 = vld [vmem:[#allocation6 + $0x380] sm:$0xff] }
  0xa0   :  { %7631 = vst [vmem:[#allocation59_spill] sm:$0xff] %v6432_v28  ;;  %7634 = vst [vmem:[#allocation62_spill] sm:$0xff] %v6439_v1  ;;  %v610_v19 = vld [vmem:[#allocation6 + $0x3a0] sm:$0xff]  ;;  %v608_v30 = vld [vmem:[#allocation6 + $0x390] sm:$0xff] }
  0xa1   :  { %4048 = vmatpush1.bf16.msra.mxu0 %v6424_v8  ;;  %4112 = vmatpush1.bf16.msra.mxu1 %v6427_v63  ;;  %v599_v63 = vld [vmem:[#allocation6 + $0x348] sm:$0xff]  ;;  %7636 = vst [vmem:[#allocation64_spill] sm:$0xff] %v6446_v38  ;;  %7637 = vst [vmem:[#allocation65_spill] sm:$0xff] %v6448_v25  ;;  %v6460_v37 = vpack.c.bf16 %v610_v19, %v606_v18  ;;  %v620_v18 = vld [vmem:[#allocation6 + $0x3f0] sm:$0xff] }
  0xa2   :  { %4050 = vmatprep.subr.bf16.mxu0 %v6432_v28  ;;  %4114 = vmatprep.subr.bf16.mxu1 %v6434_v59  ;;  %v6444_v8 = vpack.c.bf16 %v603_v2, %v599_v63  ;;  %v607_v28 = vld [vmem:[#allocation6 + $0x388] sm:$0xff]  ;;  %v6457_v2 = vpack.c.bf16 %v613_v0, %v609_v11  ;;  %v617_v11 = vld [vmem:[#allocation6 + $0x3d8] sm:$0xff] }
  0xa3   :  { %v611_v59 = vld [vmem:[#allocation6 + $0x3a8] sm:$0xff]  ;;  %7641 = vst [vmem:[#allocation69_spill] sm:$0xff] %v6460_v37  ;;  %v621_v0 = vld [vmem:[#allocation6 + $0x3f8] sm:$0xff] }
  0xa4   :  { %7635 = vst [vmem:[#allocation63_spill] sm:$0xff] %v6444_v8  ;;  %v6455_v63 = vpack.c.bf16 %v611_v59, %v607_v28  ;;  %7640 = vst [vmem:[#allocation68_spill] sm:$0xff] %v6457_v2  ;;  %v614_v59 = vld [vmem:[#allocation6 + $0x3c0] sm:$0xff] }
  0xa5   :  { %4052 = vmatpush1.bf16.msra.mxu0 %v6436_v56  ;;  %4116 = vmatpush1.bf16.msra.mxu1 %v6439_v1  ;;  %v6451_v56 = vpack.c.bf16 %v604_v42, %v600_v26  ;;  %v612_v26 = vld [vmem:[#allocation6 + $0x3b0] sm:$0xff]  ;;  %v615_v42 = vld [vmem:[#allocation6 + $0x3c8] sm:$0xff]  ;;  %v618_v1 = vld [vmem:[#allocation6 + $0x3e0] sm:$0xff] }
  0xa6   :  { %4054 = vmatprep.subr.bf16.mxu0 %v6444_v8  ;;  %4118 = vmatprep.subr.bf16.mxu1 %v6446_v38  ;;  %7639 = vst [vmem:[#allocation67_spill] sm:$0xff] %v6455_v63  ;;  %v619_v8 = vld [vmem:[#allocation6 + $0x3e8] sm:$0xff]  ;;  %v6464_v38 = vpack.c.bf16 %v612_v26, %v608_v30  ;;  %v6471_v19 = vpack.c.bf16 %v618_v1, %v614_v59 }
  0xa7   :  { %7638 = vst [vmem:[#allocation66_spill] sm:$0xff] %v6451_v56  ;;  %v6466_v28 = vpack.c.bf16 %v619_v8, %v615_v42  ;;  %v99_v8 = vld [vmem:[%s7433_s3] sm:$0xf] }
  0xa8   :  { %7642 = vst [vmem:[#allocation70_spill] sm:$0xff] %v6464_v38  ;;  %7645 = vst [vmem:[#allocation73_spill] sm:$0xff] %v6471_v19  ;;  %v6486_v1 = vrot.slane %v99_v8, %v6117_v5 }
  0xa9   :  { %4056 = vmatpush1.bf16.msra.mxu0 %v6448_v25  ;;  %4120 = vmatpush1.bf16.msra.mxu1 %v6451_v56  ;;  %7643 = vst [vmem:[#allocation71_spill] sm:$0xff] %v6466_v28  ;;  %v6468_v25 = vpack.c.bf16 %v621_v0, %v617_v11  ;;  %v616_v56 = vld [vmem:[#allocation6 + $0x3d0] sm:$0xff] }
  0xaa   :  { %4058 = vmatprep.subr.bf16.mxu0 %v6455_v63  ;;  %4122 = vmatprep.subr.bf16.mxu1 %v6457_v2  ;;  %v6475_v30 = vpack.c.bf16 %v620_v18, %v616_v56  ;;  %7647 = vst [vmem:[#allocation75_spill] sm:$0xff] %v6486_v1  ;;  %v6489_v56 = vrot.slane %v99_v8, %v6113_v3 }
  0xab   :  { %7644 = vst [vmem:[#allocation72_spill] sm:$0xff] %v6468_v25  ;;  %v6498_v3 = vrot.slane %v99_v8, %v6119_v6 }
  0xac   :  { %7646 = vst [vmem:[#allocation74_spill] sm:$0xff] %v6475_v30  ;;  %7648 = vst [vmem:[#allocation76_spill] sm:$0xff] %v6489_v56 }
  0xad   :  { %4060 = vmatpush1.bf16.msra.mxu0 %v6460_v37  ;;  %4124 = vmatpush1.bf16.msra.mxu1 %v6464_v38 }
  0xae   :  { %4062 = vmatprep.subr.bf16.mxu0 %v6466_v28  ;;  %4126 = vmatprep.subr.bf16.mxu1 %v6468_v25 }
  0xb1   :  { %4064 = vmatpush1.bf16.msra.mxu0 %v6471_v19  ;;  %4128 = vmatpush1.bf16.msra.mxu1 %v6475_v30 }
  0xb2   :  { %4130 = vmatprep.subr.bf16.mxu0 %v6134_v21  ;;  %4162 = vmatprep.subr.bf16.mxu1 %v6136_v22  ;;  %v6494_v22 = vrot.slane %v99_v8, %v6115_v4 }
  0xb4   :  { %7649 = vst [vmem:[#allocation77_spill] sm:$0xff] %v6494_v22 }
 0x147   :  { %v714_v26 = vpop.f32.mrb[0].mxu0  ;;  %v785_v11 = vpop.f32.mrb[0].mxu1 }
 0x148   :  { %v5537_v42 = vadd.f32 %v714_v26, %v6486_v1  ;;  %v716_v0 = vpop.f32.mrb[1].mxu0  ;;  %v787_v18 = vpop.f32.mrb[1].mxu1  ;;  %v5553_v26 = vadd.f32 %v785_v11, %v6498_v3 }
 0x149   :  { %v5538_v59 = vadd.f32 %v716_v0, %v6489_v56  ;;  %v5554_v5 = vadd.f32 %v787_v18, %v6494_v22 }
 0x14a   :  { %v3751_v21 = vmul.f32 -1.442695, %v5537_v42 }
 0x14b   :  { %v3752_v30 = vmul.f32 -1.442695, %v5538_v59  ;;  %v3753_v19 = vmul.f32 -1.442695, %v5554_v5 }
 0x14c   :  { %5610 = vpow2.f32 %v3751_v21 }
 0x14d   :  { %5612 = vpow2.f32 %v3752_v30 }
 0x14e   :  { %5614 = vpow2.f32 %v3753_v19  ;;  %v7653_v19 = vld [vmem:[#allocation24_spill] sm:$0xff] }
 0x14f   :  { %5616 = vtanh.f32 %v5553_v26  ;;  %v7655_v26 = vld [vmem:[#allocation26_spill] sm:$0xff] }
 0x156   :  { %v5611_v1 = vpop.eup %5610 }
 0x157   :  { %v5613_v25 = vpop.eup %5612  ;;  %v797_v28 = vadd.f32 1.0, %v5611_v1 }
 0x158   :  { %v803_v42 = vadd.f32 1.0, %v5613_v25  ;;  %v5615_v0 = vpop.eup %5614  ;;  %v7650_v25 = vmov 0.0  }
 0x159   :  { %5618 = vrcp.f32 %v797_v28  ;;  %v5617_v59 = vpop.eup %5616  ;;  %v810_v18 = vadd.f32 1.0, %v5615_v0  ;;  %v7652_v28 = vld [vmem:[#allocation20_spill] sm:$0xff] }
 0x15a   :  { %5620 = vrcp.f32 %v803_v42  ;;  %v7656_v42 = vld [vmem:[#allocation27_spill] sm:$0xff]  ;;  %v7657_v0 = vld [vmem:[#allocation28_spill] sm:$0xff] }
 0x15b   :  { %5622 = vrcp.f32 %v810_v18  ;;  %v7661_v18 = vld [vmem:[#allocation32_spill] sm:$0xff] }
 0x163   :  { %v5619_v21 = vpop.eup %5618 }
 0x164   :  { %v5621_v30 = vpop.eup %5620  ;;  %v814_v56 = vmul.f32 %v5619_v21, %v5617_v59  ;;  %v7658_v59 = vld [vmem:[#allocation29_spill] sm:$0xff]  ;;  %v7659_v21 = vld [vmem:[#allocation30_spill] sm:$0xff] }
 0x165   :  { %v813_v22 = vmul.f32 0.0, %v5621_v30  ;;  %v5623_v5 = vpop.eup %5622  ;;  %v7660_v30 = vld [vmem:[#allocation31_spill] sm:$0xff] }
 0x167   :  { %v6501_v8 = vadd.f32 %v814_v56, %v813_v22  ;;  %v7651_v22 = vld [vmem:[#allocation18_spill] sm:$0xff]  ;;  %v7654_v56 = vld [vmem:[#allocation25_spill] sm:$0xff] }
 0x169   :  { %5624 = vtanh.f32 %v6501_v8 }
 0x173   :  { %v5625_v11 = vpop.eup %5624 }
 0x174   :  { %v817_v1 = vmul.f32 %v5625_v11, %v5623_v5  ;;  %v7662_v5 = vld [vmem:[#allocation33_spill] sm:$0xff]  ;;  %v7663_v11 = vld [vmem:[#allocation34_spill] sm:$0xff] }
 0x176   :  { %883 = vmatmul.mubr.f32.vlgmr.msra.gmra.mrb[16].mxu0 %v817_v1  ;;  %954 = vmatmul.mubr.f32.vlgmr.msra.gmra.mrb[16].mxu1 %v817_v1 }
 0x177   :  { %4132 = vmatpush1.bf16.msra.mxu0 %v6138_v23  ;;  %4164 = vmatpush1.bf16.msra.mxu1 %v6145_v27 }
 0x178   :  { %4134 = vmatprep.subr.bf16.mxu0 %v6149_v31  ;;  %4166 = vmatprep.subr.bf16.mxu1 %v6153_v35 }
 0x179   :  { %1053 = vmatprep.mubr.f32.mxu0 %v7650_v25  ;;  %1124 = vmatprep.mubr.f32.mxu1 %v7650_v25 }
 0x17b   :  { %4136 = vmatpush1.bf16.msra.mxu0 %v6155_v36  ;;  %4168 = vmatpush1.bf16.msra.mxu1 %v6159_v39 }
 0x17c   :  { %4138 = vmatprep.subr.bf16.mxu0 %v6168_v47  ;;  %4170 = vmatprep.subr.bf16.mxu1 %v6172_v48 }
 0x17f   :  { %4140 = vmatpush1.bf16.msra.mxu0 %v6174_v49  ;;  %4172 = vmatpush1.bf16.msra.mxu1 %v6178_v53 }
 0x180   :  { %4142 = vmatprep.subr.bf16.mxu0 %v6187_v60  ;;  %4174 = vmatprep.subr.bf16.mxu1 %v6191_v61 }
 0x183   :  { %4144 = vmatpush1.bf16.msra.mxu0 %v6193_v62  ;;  %4176 = vmatpush1.bf16.msra.mxu1 %v6197_v7 }
 0x184   :  { %4146 = vmatprep.subr.bf16.mxu0 %v6206_v14  ;;  %4178 = vmatprep.subr.bf16.mxu1 %v6210_v15 }
 0x187   :  { %4148 = vmatpush1.bf16.msra.mxu0 %v6212_v16  ;;  %4180 = vmatpush1.bf16.msra.mxu1 %v6216_v20 }
 0x188   :  { %4150 = vmatprep.subr.bf16.mxu0 %v6225_v32  ;;  %4182 = vmatprep.subr.bf16.mxu1 %v6229_v33 }
 0x18b   :  { %4152 = vmatpush1.bf16.msra.mxu0 %v6231_v34  ;;  %4184 = vmatpush1.bf16.msra.mxu1 %v6235_v41 }
 0x18c   :  { %4154 = vmatprep.subr.bf16.mxu0 %v6244_v51  ;;  %4186 = vmatprep.subr.bf16.mxu1 %v6248_v52 }
 0x18f   :  { %4156 = vmatpush1.bf16.msra.mxu0 %v6250_v54  ;;  %4188 = vmatpush1.bf16.msra.mxu1 %v6254_v58 }
 0x190   :  { %4158 = vmatprep.subr.bf16.mxu0 %v6263_v10  ;;  %4190 = vmatprep.subr.bf16.mxu1 %v6267_v13 }
 0x193   :  { %4160 = vmatpush1.bf16.msra.mxu0 %v6269_v17  ;;  %4192 = vmatpush1.bf16.msra.mxu1 %v6273_v24 }
 0x194   :  { %4194 = vmatprep.subr.bf16.mxu0 %v6277_v29  ;;  %4258 = vmatprep.subr.bf16.mxu1 %v6281_v40 }
 0x196   :  { %1054 = vmatmul.mubr.f32.vlgmr.msra.gmra.mrb[2].mxu0 %v817_v1  ;;  %1125 = vmatmul.mubr.f32.vlgmr.msra.gmra.mrb[2].mxu1 %v817_v1  ;;  %v7664_v1 = vld [vmem:[#allocation35_spill] sm:$0xff] }
 0x197   :  { %4196 = vmatpush1.bf16.msra.mxu0 %v6285_v44  ;;  %4260 = vmatpush1.bf16.msra.mxu1 %v6289_v45 }
 0x198   :  { %4198 = vmatprep.subr.bf16.mxu0 %v6291_v46  ;;  %4262 = vmatprep.subr.bf16.mxu1 %v6295_v57 }
 0x19b   :  { %4200 = vmatpush1.bf16.msra.mxu0 %v6301_v9  ;;  %4264 = vmatpush1.bf16.msra.mxu1 %v7651_v22 }
 0x19c   :  { %4202 = vmatprep.subr.bf16.mxu0 %v6307_v12  ;;  %4266 = vmatprep.subr.bf16.mxu1 %v7652_v28 }
 0x19f   :  { %4204 = vmatpush1.bf16.msra.mxu0 %v6315_v43  ;;  %4268 = vmatpush1.bf16.msra.mxu1 %v6319_v50 }
 0x1a0   :  { %4206 = vmatprep.subr.bf16.mxu0 %v6321_v55  ;;  %4270 = vmatprep.subr.bf16.mxu1 %v7653_v19 }
 0x1a3   :  { %4208 = vmatpush1.bf16.msra.mxu0 %v7654_v56  ;;  %4272 = vmatpush1.bf16.msra.mxu1 %v7655_v26  ;;  %v7665_v56 = vld [vmem:[#allocation36_spill] sm:$0xff]  ;;  %v7666_v26 = vld [vmem:[#allocation37_spill] sm:$0xff] }
 0x1a4   :  { %4210 = vmatprep.subr.bf16.mxu0 %v7656_v42  ;;  %4274 = vmatprep.subr.bf16.mxu1 %v7657_v0  ;;  %v7667_v42 = vld [vmem:[#allocation38_spill] sm:$0xff]  ;;  %v7668_v0 = vld [vmem:[#allocation39_spill] sm:$0xff] }
 0x1a7   :  { %4212 = vmatpush1.bf16.msra.mxu0 %v7658_v59  ;;  %4276 = vmatpush1.bf16.msra.mxu1 %v7659_v21  ;;  %v7669_v59 = vld [vmem:[#allocation40_spill] sm:$0xff]  ;;  %v7670_v21 = vld [vmem:[#allocation41_spill] sm:$0xff] }
 0x1a8   :  { %4214 = vmatprep.subr.bf16.mxu0 %v7660_v30  ;;  %4278 = vmatprep.subr.bf16.mxu1 %v7661_v18  ;;  %v7671_v30 = vld [vmem:[#allocation42_spill] sm:$0xff]  ;;  %v7672_v18 = vld [vmem:[#allocation43_spill] sm:$0xff] }
 0x1ab   :  { %4216 = vmatpush1.bf16.msra.mxu0 %v7662_v5  ;;  %4280 = vmatpush1.bf16.msra.mxu1 %v7663_v11  ;;  %v7673_v5 = vld [vmem:[#allocation44_spill] sm:$0xff]  ;;  %v7674_v11 = vld [vmem:[#allocation45_spill] sm:$0xff] }
 0x1ac   :  { %4218 = vmatprep.subr.bf16.mxu0 %v7664_v1  ;;  %4282 = vmatprep.subr.bf16.mxu1 %v7665_v56  ;;  %v7675_v1 = vld [vmem:[#allocation46_spill] sm:$0xff]  ;;  %v7676_v56 = vld [vmem:[#allocation47_spill] sm:$0xff] }
 0x1af   :  { %4220 = vmatpush1.bf16.msra.mxu0 %v7666_v26  ;;  %4284 = vmatpush1.bf16.msra.mxu1 %v7667_v42  ;;  %v7677_v26 = vld [vmem:[#allocation48_spill] sm:$0xff]  ;;  %v7678_v42 = vld [vmem:[#allocation49_spill] sm:$0xff] }
 0x1b0   :  { %4222 = vmatprep.subr.bf16.mxu0 %v7668_v0  ;;  %4286 = vmatprep.subr.bf16.mxu1 %v7669_v59  ;;  %v7679_v0 = vld [vmem:[#allocation50_spill] sm:$0xff]  ;;  %v7680_v59 = vld [vmem:[#allocation51_spill] sm:$0xff] }
 0x1b3   :  { %4224 = vmatpush1.bf16.msra.mxu0 %v7670_v21  ;;  %4288 = vmatpush1.bf16.msra.mxu1 %v7671_v30  ;;  %v7681_v21 = vld [vmem:[#allocation52_spill] sm:$0xff]  ;;  %v7682_v30 = vld [vmem:[#allocation53_spill] sm:$0xff] }
 0x1b4   :  { %4226 = vmatprep.subr.bf16.mxu0 %v7672_v18  ;;  %4290 = vmatprep.subr.bf16.mxu1 %v7673_v5  ;;  %v7683_v18 = vld [vmem:[#allocation54_spill] sm:$0xff]  ;;  %v7684_v5 = vld [vmem:[#allocation55_spill] sm:$0xff] }
 0x1b7   :  { %4228 = vmatpush1.bf16.msra.mxu0 %v7674_v11  ;;  %4292 = vmatpush1.bf16.msra.mxu1 %v7675_v1  ;;  %v7685_v11 = vld [vmem:[#allocation56_spill] sm:$0xff]  ;;  %v7686_v1 = vld [vmem:[#allocation57_spill] sm:$0xff] }
 0x1b8   :  { %4230 = vmatprep.subr.bf16.mxu0 %v7676_v56  ;;  %4294 = vmatprep.subr.bf16.mxu1 %v7677_v26  ;;  %v7687_v56 = vld [vmem:[#allocation58_spill] sm:$0xff]  ;;  %v7688_v26 = vld [vmem:[#allocation59_spill] sm:$0xff] }
 0x1bb   :  { %4232 = vmatpush1.bf16.msra.mxu0 %v7678_v42  ;;  %4296 = vmatpush1.bf16.msra.mxu1 %v7679_v0  ;;  %v7689_v42 = vld [vmem:[#allocation60_spill] sm:$0xff]  ;;  %v7690_v0 = vld [vmem:[#allocation61_spill] sm:$0xff] }
 0x1bc   :  { %4234 = vmatprep.subr.bf16.mxu0 %v7680_v59  ;;  %4298 = vmatprep.subr.bf16.mxu1 %v7681_v21  ;;  %v7691_v59 = vld [vmem:[#allocation62_spill] sm:$0xff]  ;;  %v7692_v21 = vld [vmem:[#allocation63_spill] sm:$0xff] }
 0x1bf   :  { %4236 = vmatpush1.bf16.msra.mxu0 %v7682_v30  ;;  %4300 = vmatpush1.bf16.msra.mxu1 %v7683_v18  ;;  %v7693_v30 = vld [vmem:[#allocation64_spill] sm:$0xff]  ;;  %v7694_v18 = vld [vmem:[#allocation65_spill] sm:$0xff] }
 0x1c0   :  { %4238 = vmatprep.subr.bf16.mxu0 %v7684_v5  ;;  %4302 = vmatprep.subr.bf16.mxu1 %v7685_v11  ;;  %v7695_v5 = vld [vmem:[#allocation66_spill] sm:$0xff] }
 0x1c3   :  { %4240 = vmatpush1.bf16.msra.mxu0 %v7686_v1  ;;  %4304 = vmatpush1.bf16.msra.mxu1 %v7687_v56 }
 0x1c4   :  { %4242 = vmatprep.subr.bf16.mxu0 %v7688_v26  ;;  %4306 = vmatprep.subr.bf16.mxu1 %v7689_v42  ;;  %v7696_v42 = vld [vmem:[#allocation71_spill] sm:$0xff] }
 0x1c7   :  { %4244 = vmatpush1.bf16.msra.mxu0 %v7690_v0  ;;  %4308 = vmatpush1.bf16.msra.mxu1 %v7691_v59  ;;  %v7697_v0 = vld [vmem:[#allocation72_spill] sm:$0xff]  ;;  %v7698_v59 = vld [vmem:[#allocation73_spill] sm:$0xff] }
 0x1c8   :  { %4246 = vmatprep.subr.bf16.mxu0 %v7692_v21  ;;  %4310 = vmatprep.subr.bf16.mxu1 %v7693_v30  ;;  %v7699_v21 = vld [vmem:[#allocation74_spill] sm:$0xff]  ;;  %v7700_v30 = vld [vmem:[#allocation16_spill] sm:$0xff] }
 0x1cb   :  { %4248 = vmatpush1.bf16.msra.mxu0 %v7694_v18  ;;  %4312 = vmatpush1.bf16.msra.mxu1 %v7695_v5  ;;  %v7701_v18 = vld [vmem:[#allocation17_spill] sm:$0xff] }
 0x1cc   :  { %4250 = vmatprep.subr.bf16.mxu0 %v6455_v63  ;;  %4314 = vmatprep.subr.bf16.mxu1 %v6457_v2  ;;  %v622_v2 = vld [vmem:[%s7435_s5] sm:$0xf]  ;;  %v7702_v63 = vld [vmem:[#allocation15_spill] sm:$0xff] }
 0x1cf   :  { %4252 = vmatpush1.bf16.msra.mxu0 %v6460_v37  ;;  %4316 = vmatpush1.bf16.msra.mxu1 %v6464_v38  ;;  %v6606_v37 = vrot.slane %v622_v2, %v7702_v63  ;;  %v7704_v38 = vld [vmem:[#allocation14_spill] sm:$0xff] }
 0x1d0   :  { %4254 = vmatprep.subr.bf16.mxu0 %v7696_v42  ;;  %4318 = vmatprep.subr.bf16.mxu1 %v7697_v0  ;;  %v6609_v5 = vrot.slane %v622_v2, %v7704_v38  ;;  %v6618_v38 = vrot.slane %v622_v2, %v6119_v6 }
 0x1d1   :  { %7703 = vst [vmem:[#allocation18_spill] sm:$0xff] %v6606_v37 }
 0x1d2   :  { %7706 = vst [vmem:[#allocation14_spill] sm:$0xff] %v6618_v38 }
 0x1d3   :  { %4256 = vmatpush1.bf16.msra.mxu0 %v7698_v59  ;;  %4320 = vmatpush1.bf16.msra.mxu1 %v7699_v21 }
 0x1d4   :  { %4322 = vmatprep.subr.bf16.mxu0 %v7700_v30  ;;  %4354 = vmatprep.subr.bf16.mxu1 %v7701_v18  ;;  %v6614_v18 = vrot.slane %v622_v2, %v6115_v4 }
 0x1d6   :  { %7705 = vst [vmem:[#allocation15_spill] sm:$0xff] %v6614_v18 }
 0x249   :  { %v884_v42 = vpop.f32.mrb[16].mxu0  ;;  %v955_v0 = vpop.f32.mrb[16].mxu1 }
 0x24a   :  { %v885_v59 = vadd.f32 %v884_v42, %v6606_v37  ;;  %v886_v26 = vpop.f32.mrb[17].mxu0  ;;  %v957_v21 = vpop.f32.mrb[17].mxu1  ;;  %v956_v19 = vadd.f32 %v955_v0, %v6618_v38  ;;  %v7707_v0 = vld [vmem:[#allocation75_spill] sm:$0xff] }
 0x24b   :  { %v887_v30 = vadd.f32 %v886_v26, %v6609_v5  ;;  %v958_v63 = vadd.f32 %v957_v21, %v6614_v18 }
 0x24c   :  { %v3754_v56 = vmul.f32 -1.442695, %v885_v59 }
 0x24d   :  { %v3755_v1 = vmul.f32 -1.442695, %v887_v30  ;;  %v3756_v11 = vmul.f32 -1.442695, %v958_v63 }
 0x24e   :  { %5626 = vpow2.f32 %v3754_v56 }
 0x24f   :  { %5628 = vpow2.f32 %v3755_v1 }
 0x250   :  { %5630 = vpow2.f32 %v3756_v11 }
 0x251   :  { %5632 = vtanh.f32 %v956_v19 }
 0x258   :  { %v5627_v42 = vpop.eup %5626 }
 0x259   :  { %v5629_v37 = vpop.eup %5628  ;;  %v963_v55 = vadd.f32 1.0, %v5627_v42 }
 0x25a   :  { %v969_v26 = vadd.f32 1.0, %v5629_v37  ;;  %v5631_v4 = vpop.eup %5630 }
 0x25b   :  { %5634 = vrcp.f32 %v963_v55  ;;  %v5633_v59 = vpop.eup %5632  ;;  %v976_v21 = vadd.f32 1.0, %v5631_v4  ;;  %v7708_v55 = vld [vmem:[#allocation76_spill] sm:$0xff] }
 0x25c   :  { %5636 = vrcp.f32 %v969_v26 }
 0x25d   :  { %5638 = vrcp.f32 %v976_v21 }
 0x265   :  { %v5635_v56 = vpop.eup %5634 }
 0x266   :  { %v5637_v30 = vpop.eup %5636  ;;  %v980_v1 = vmul.f32 %v5635_v56, %v5633_v59  ;;  %v7709_v59 = vld [vmem:[#allocation77_spill] sm:$0xff] }
 0x267   :  { %v979_v18 = vmul.f32 0.0, %v5637_v30  ;;  %v5639_v56 = vpop.eup %5638 }
 0x269   :  { %v6621_v6 = vadd.f32 %v980_v1, %v979_v18  ;;  %v1055_v2 = vpop.f32.mrb[2].mxu0  ;;  %v1126_v63 = vpop.f32.mrb[2].mxu1 }
 0x26a   :  { %v5539_v38 = vadd.f32 %v1055_v2, %v7707_v0  ;;  %v1057_v42 = vpop.f32.mrb[3].mxu0  ;;  %v1128_v11 = vpop.f32.mrb[3].mxu1  ;;  %v5555_v1 = vadd.f32 %v1126_v63, %v6498_v3 }
 0x26b   :  { %5640 = vtanh.f32 %v6621_v6  ;;  %v5540_v37 = vadd.f32 %v1057_v42, %v7708_v55  ;;  %v5556_v4 = vadd.f32 %v1128_v11, %v7709_v59 }
 0x26c   :  { %v3757_v19 = vmul.f32 -1.442695, %v5539_v38 }
 0x26d   :  { %v3758_v26 = vmul.f32 -1.442695, %v5540_v37  ;;  %v3759_v30 = vmul.f32 -1.442695, %v5556_v4 }
 0x26e   :  { %5642 = vpow2.f32 %v3757_v19 }
 0x26f   :  { %5644 = vpow2.f32 %v3758_v26 }
 0x270   :  { %5646 = vpow2.f32 %v3759_v30 }
 0x271   :  { %5648 = vtanh.f32 %v5555_v1  ;;  %v7713_v1 = vld [vmem:[#allocation25_spill] sm:$0xff] }
 0x275   :  { %v5641_v18 = vpop.eup %5640 }
 0x276   :  { %v6628_v21 = vmul.f32 %v5641_v18, %v5639_v56 }
 0x278   :  { %7710 = vst [vmem:[#allocation76_spill] sm:$0xff] %v6628_v21  ;;  %v5643_v2 = vpop.eup %5642  ;;  %1223 = vmatprep.mubr.f32.mxu0 %v6628_v21  ;;  %1294 = vmatprep.mubr.f32.mxu1 %v6628_v21 }
 0x279   :  { %v5645_v0 = vpop.eup %5644  ;;  %v1138_v42 = vadd.f32 1.0, %v5643_v2 }
 0x27a   :  { %v1144_v38 = vadd.f32 1.0, %v5645_v0  ;;  %v5647_v11 = vpop.eup %5646  ;;  %v7712_v0 = vld [vmem:[#allocation24_spill] sm:$0xff] }
 0x27b   :  { %5650 = vrcp.f32 %v1138_v42  ;;  %v5649_v37 = vpop.eup %5648  ;;  %v1151_v63 = vadd.f32 1.0, %v5647_v11  ;;  %v7715_v42 = vld [vmem:[#allocation27_spill] sm:$0xff]  ;;  %v7717_v11 = vld [vmem:[#allocation29_spill] sm:$0xff] }
 0x27c   :  { %5652 = vrcp.f32 %v1144_v38  ;;  %v7716_v38 = vld [vmem:[#allocation28_spill] sm:$0xff] }
 0x27d   :  { %5654 = vrcp.f32 %v1151_v63  ;;  %v7722_v63 = vld [vmem:[#allocation34_spill] sm:$0xff] }
 0x285   :  { %v5651_v19 = vpop.eup %5650 }
 0x286   :  { %v5653_v26 = vpop.eup %5652  ;;  %v1155_v4 = vmul.f32 %v5651_v19, %v5649_v37  ;;  %v7718_v37 = vld [vmem:[#allocation30_spill] sm:$0xff]  ;;  %v7719_v19 = vld [vmem:[#allocation31_spill] sm:$0xff] }
 0x287   :  { %v1154_v56 = vmul.f32 %v5653_v26, %v6501_v8  ;;  %v5655_v21 = vpop.eup %5654  ;;  %v7711_v8 = vld [vmem:[#allocation23_spill] sm:$0xff]  ;;  %v7720_v26 = vld [vmem:[#allocation32_spill] sm:$0xff] }
 0x289   :  { %v6633_v18 = vadd.f32 %v1155_v4, %v1154_v56  ;;  %v7721_v4 = vld [vmem:[#allocation33_spill] sm:$0xff]  ;;  %v7723_v56 = vld [vmem:[#allocation35_spill] sm:$0xff] }
 0x28b   :  { %5656 = vtanh.f32 %v6633_v18 }
 0x295   :  { %v5657_v2 = vpop.eup %5656 }
 0x296   :  { %v1158_v30 = vmul.f32 %v5657_v2, %v5655_v21  ;;  %v7714_v21 = vld [vmem:[#allocation26_spill] sm:$0xff]  ;;  %v7724_v2 = vld [vmem:[#allocation36_spill] sm:$0xff] }
 0x298   :  { %1224 = vmatmul.mubr.f32.vlgmr.msra.gmra.mrb[18].mxu0 %v1158_v30  ;;  %1295 = vmatmul.mubr.f32.vlgmr.msra.gmra.mrb[18].mxu1 %v1158_v30 }
 0x299   :  { %4324 = vmatpush1.bf16.msra.mxu0 %v6138_v23  ;;  %4356 = vmatpush1.bf16.msra.mxu1 %v6145_v27 }
 0x29a   :  { %4326 = vmatprep.subr.bf16.mxu0 %v6149_v31  ;;  %4358 = vmatprep.subr.bf16.mxu1 %v6153_v35 }
 0x29b   :  { %1394 = vmatprep.mubr.f32.mxu0 %v7650_v25  ;;  %1465 = vmatprep.mubr.f32.mxu1 %v7650_v25 }
 0x29d   :  { %4328 = vmatpush1.bf16.msra.mxu0 %v6155_v36  ;;  %4360 = vmatpush1.bf16.msra.mxu1 %v6159_v39 }
 0x29e   :  { %4330 = vmatprep.subr.bf16.mxu0 %v6168_v47  ;;  %4362 = vmatprep.subr.bf16.mxu1 %v6172_v48 }
 0x2a1   :  { %4332 = vmatpush1.bf16.msra.mxu0 %v6174_v49  ;;  %4364 = vmatpush1.bf16.msra.mxu1 %v6178_v53 }
 0x2a2   :  { %4334 = vmatprep.subr.bf16.mxu0 %v6187_v60  ;;  %4366 = vmatprep.subr.bf16.mxu1 %v6191_v61 }
 0x2a5   :  { %4336 = vmatpush1.bf16.msra.mxu0 %v6193_v62  ;;  %4368 = vmatpush1.bf16.msra.mxu1 %v6197_v7 }
 0x2a6   :  { %4338 = vmatprep.subr.bf16.mxu0 %v6206_v14  ;;  %4370 = vmatprep.subr.bf16.mxu1 %v6210_v15 }
 0x2a9   :  { %4340 = vmatpush1.bf16.msra.mxu0 %v6212_v16  ;;  %4372 = vmatpush1.bf16.msra.mxu1 %v6216_v20 }
 0x2aa   :  { %4342 = vmatprep.subr.bf16.mxu0 %v6225_v32  ;;  %4374 = vmatprep.subr.bf16.mxu1 %v6229_v33 }
 0x2ad   :  { %4344 = vmatpush1.bf16.msra.mxu0 %v6231_v34  ;;  %4376 = vmatpush1.bf16.msra.mxu1 %v6235_v41 }
 0x2ae   :  { %4346 = vmatprep.subr.bf16.mxu0 %v6244_v51  ;;  %4378 = vmatprep.subr.bf16.mxu1 %v6248_v52 }
 0x2b1   :  { %4348 = vmatpush1.bf16.msra.mxu0 %v6250_v54  ;;  %4380 = vmatpush1.bf16.msra.mxu1 %v6254_v58 }
 0x2b2   :  { %4350 = vmatprep.subr.bf16.mxu0 %v6263_v10  ;;  %4382 = vmatprep.subr.bf16.mxu1 %v6267_v13 }
 0x2b5   :  { %4352 = vmatpush1.bf16.msra.mxu0 %v6269_v17  ;;  %4384 = vmatpush1.bf16.msra.mxu1 %v6273_v24 }
 0x2b6   :  { %4386 = vmatprep.subr.bf16.mxu0 %v6277_v29  ;;  %4450 = vmatprep.subr.bf16.mxu1 %v6281_v40 }
 0x2b8   :  { %1395 = vmatmul.mubr.f32.vlgmr.msra.gmra.mrb[4].mxu0 %v1158_v30  ;;  %1466 = vmatmul.mubr.f32.vlgmr.msra.gmra.mrb[4].mxu1 %v1158_v30  ;;  %v7725_v30 = vld [vmem:[#allocation37_spill] sm:$0xff] }
 0x2b9   :  { %4388 = vmatpush1.bf16.msra.mxu0 %v6285_v44  ;;  %4452 = vmatpush1.bf16.msra.mxu1 %v6289_v45 }
 0x2ba   :  { %4390 = vmatprep.subr.bf16.mxu0 %v6291_v46  ;;  %4454 = vmatprep.subr.bf16.mxu1 %v6295_v57 }
 0x2bd   :  { %4392 = vmatpush1.bf16.msra.mxu0 %v6301_v9  ;;  %4456 = vmatpush1.bf16.msra.mxu1 %v7651_v22 }
 0x2be   :  { %4394 = vmatprep.subr.bf16.mxu0 %v6307_v12  ;;  %4458 = vmatprep.subr.bf16.mxu1 %v7652_v28 }
 0x2c1   :  { %4396 = vmatpush1.bf16.msra.mxu0 %v6315_v43  ;;  %4460 = vmatpush1.bf16.msra.mxu1 %v6319_v50 }
 0x2c2   :  { %4398 = vmatprep.subr.bf16.mxu0 %v7711_v8  ;;  %4462 = vmatprep.subr.bf16.mxu1 %v7712_v0 }
 0x2c5   :  { %4400 = vmatpush1.bf16.msra.mxu0 %v7713_v1  ;;  %4464 = vmatpush1.bf16.msra.mxu1 %v7714_v21  ;;  %v7765_v21 = vld [vmem:[#allocation18_spill] sm:$0xff] }
 0x2c6   :  { %4402 = vmatprep.subr.bf16.mxu0 %v7715_v42  ;;  %4466 = vmatprep.subr.bf16.mxu1 %v7716_v38  ;;  %v7726_v42 = vld [vmem:[#allocation38_spill] sm:$0xff]  ;;  %v7727_v38 = vld [vmem:[#allocation39_spill] sm:$0xff] }
 0x2c9   :  { %4404 = vmatpush1.bf16.msra.mxu0 %v7717_v11  ;;  %4468 = vmatpush1.bf16.msra.mxu1 %v7718_v37  ;;  %v7728_v11 = vld [vmem:[#allocation40_spill] sm:$0xff]  ;;  %v7729_v37 = vld [vmem:[#allocation41_spill] sm:$0xff] }
 0x2ca   :  { %4406 = vmatprep.subr.bf16.mxu0 %v7719_v19  ;;  %4470 = vmatprep.subr.bf16.mxu1 %v7720_v26  ;;  %v7730_v19 = vld [vmem:[#allocation42_spill] sm:$0xff]  ;;  %v7731_v26 = vld [vmem:[#allocation43_spill] sm:$0xff] }
 0x2cd   :  { %4408 = vmatpush1.bf16.msra.mxu0 %v7721_v4  ;;  %4472 = vmatpush1.bf16.msra.mxu1 %v7722_v63  ;;  %v7732_v4 = vld [vmem:[#allocation44_spill] sm:$0xff]  ;;  %v7733_v63 = vld [vmem:[#allocation45_spill] sm:$0xff] }
 0x2ce   :  { %4410 = vmatprep.subr.bf16.mxu0 %v7723_v56  ;;  %4474 = vmatprep.subr.bf16.mxu1 %v7724_v2  ;;  %v7734_v56 = vld [vmem:[#allocation46_spill] sm:$0xff]  ;;  %v7735_v2 = vld [vmem:[#allocation47_spill] sm:$0xff] }
 0x2d1   :  { %4412 = vmatpush1.bf16.msra.mxu0 %v7725_v30  ;;  %4476 = vmatpush1.bf16.msra.mxu1 %v7726_v42  ;;  %v7736_v30 = vld [vmem:[#allocation48_spill] sm:$0xff]  ;;  %v7737_v42 = vld [vmem:[#allocation49_spill] sm:$0xff] }
 0x2d2   :  { %4414 = vmatprep.subr.bf16.mxu0 %v7727_v38  ;;  %4478 = vmatprep.subr.bf16.mxu1 %v7728_v11  ;;  %v7738_v38 = vld [vmem:[#allocation50_spill] sm:$0xff]  ;;  %v7739_v11 = vld [vmem:[#allocation51_spill] sm:$0xff] }
 0x2d5   :  { %4416 = vmatpush1.bf16.msra.mxu0 %v7729_v37  ;;  %4480 = vmatpush1.bf16.msra.mxu1 %v7730_v19  ;;  %v7740_v37 = vld [vmem:[#allocation52_spill] sm:$0xff]  ;;  %v7741_v19 = vld [vmem:[#allocation53_spill] sm:$0xff] }
 0x2d6   :  { %4418 = vmatprep.subr.bf16.mxu0 %v7731_v26  ;;  %4482 = vmatprep.subr.bf16.mxu1 %v7732_v4  ;;  %v7742_v26 = vld [vmem:[#allocation54_spill] sm:$0xff]  ;;  %v7743_v4 = vld [vmem:[#allocation55_spill] sm:$0xff] }
 0x2d9   :  { %4420 = vmatpush1.bf16.msra.mxu0 %v7733_v63  ;;  %4484 = vmatpush1.bf16.msra.mxu1 %v7734_v56  ;;  %v7744_v63 = vld [vmem:[#allocation56_spill] sm:$0xff]  ;;  %v7745_v56 = vld [vmem:[#allocation57_spill] sm:$0xff] }
 0x2da   :  { %4422 = vmatprep.subr.bf16.mxu0 %v7735_v2  ;;  %4486 = vmatprep.subr.bf16.mxu1 %v7736_v30  ;;  %v7746_v2 = vld [vmem:[#allocation58_spill] sm:$0xff]  ;;  %v7747_v30 = vld [vmem:[#allocation59_spill] sm:$0xff] }
 0x2dd   :  { %4424 = vmatpush1.bf16.msra.mxu0 %v7737_v42  ;;  %4488 = vmatpush1.bf16.msra.mxu1 %v7738_v38  ;;  %v7748_v42 = vld [vmem:[#allocation60_spill] sm:$0xff]  ;;  %v7749_v38 = vld [vmem:[#allocation61_spill] sm:$0xff] }
 0x2de   :  { %4426 = vmatprep.subr.bf16.mxu0 %v7739_v11  ;;  %4490 = vmatprep.subr.bf16.mxu1 %v7740_v37  ;;  %v7750_v11 = vld [vmem:[#allocation62_spill] sm:$0xff]  ;;  %v7751_v37 = vld [vmem:[#allocation63_spill] sm:$0xff] }
 0x2e1   :  { %4428 = vmatpush1.bf16.msra.mxu0 %v7741_v19  ;;  %4492 = vmatpush1.bf16.msra.mxu1 %v7742_v26  ;;  %v7752_v19 = vld [vmem:[#allocation64_spill] sm:$0xff]  ;;  %v7753_v26 = vld [vmem:[#allocation65_spill] sm:$0xff] }
 0x2e2   :  { %4430 = vmatprep.subr.bf16.mxu0 %v7743_v4  ;;  %4494 = vmatprep.subr.bf16.mxu1 %v7744_v63  ;;  %v7754_v4 = vld [vmem:[#allocation66_spill] sm:$0xff]  ;;  %v7755_v63 = vld [vmem:[#allocation67_spill] sm:$0xff] }
 0x2e5   :  { %4432 = vmatpush1.bf16.msra.mxu0 %v7745_v56  ;;  %4496 = vmatpush1.bf16.msra.mxu1 %v7746_v2  ;;  %v7756_v56 = vld [vmem:[#allocation68_spill] sm:$0xff]  ;;  %v7757_v2 = vld [vmem:[#allocation69_spill] sm:$0xff] }
 0x2e6   :  { %4434 = vmatprep.subr.bf16.mxu0 %v7747_v30  ;;  %4498 = vmatprep.subr.bf16.mxu1 %v7748_v42  ;;  %v7758_v30 = vld [vmem:[#allocation70_spill] sm:$0xff]  ;;  %v7759_v42 = vld [vmem:[#allocation71_spill] sm:$0xff] }
 0x2e9   :  { %4436 = vmatpush1.bf16.msra.mxu0 %v7749_v38  ;;  %4500 = vmatpush1.bf16.msra.mxu1 %v7750_v11  ;;  %v7760_v38 = vld [vmem:[#allocation72_spill] sm:$0xff]  ;;  %v7761_v11 = vld [vmem:[#allocation73_spill] sm:$0xff] }
 0x2ea   :  { %4438 = vmatprep.subr.bf16.mxu0 %v7751_v37  ;;  %4502 = vmatprep.subr.bf16.mxu1 %v7752_v19  ;;  %v7762_v37 = vld [vmem:[#allocation74_spill] sm:$0xff]  ;;  %v7763_v19 = vld [vmem:[#allocation16_spill] sm:$0xff] }
 0x2ed   :  { %4440 = vmatpush1.bf16.msra.mxu0 %v7753_v26  ;;  %4504 = vmatpush1.bf16.msra.mxu1 %v7754_v4  ;;  %v7764_v26 = vld [vmem:[#allocation17_spill] sm:$0xff] }
 0x2ee   :  { %4442 = vmatprep.subr.bf16.mxu0 %v7755_v63  ;;  %4506 = vmatprep.subr.bf16.mxu1 %v7756_v56 }
 0x2f1   :  { %4444 = vmatpush1.bf16.msra.mxu0 %v7757_v2  ;;  %4508 = vmatpush1.bf16.msra.mxu1 %v7758_v30 }
 0x2f2   :  { %4446 = vmatprep.subr.bf16.mxu0 %v7759_v42  ;;  %4510 = vmatprep.subr.bf16.mxu1 %v7760_v38  ;;  %v7766_v38 = vld [vmem:[#allocation15_spill] sm:$0xff] }
 0x2f5   :  { %4448 = vmatpush1.bf16.msra.mxu0 %v7761_v11  ;;  %4512 = vmatpush1.bf16.msra.mxu1 %v7762_v37  ;;  %v7767_v37 = vld [vmem:[#allocation14_spill] sm:$0xff] }
 0x2f6   :  { %4514 = vmatprep.subr.bf16.mxu0 %v7763_v19  ;;  %4546 = vmatprep.subr.bf16.mxu1 %v7764_v26 }
 0x36b   :  { %v1225_v4 = vpop.f32.mrb[18].mxu0  ;;  %v1296_v63 = vpop.f32.mrb[18].mxu1 }
 0x36c   :  { %v1226_v56 = vadd.f32 %v1225_v4, %v7765_v21  ;;  %v1227_v1 = vpop.f32.mrb[19].mxu0  ;;  %v1298_v2 = vpop.f32.mrb[19].mxu1  ;;  %v1297_v50 = vadd.f32 %v1296_v63, %v7767_v37  ;;  %v7768_v37 = vld [vmem:[#allocation75_spill] sm:$0xff] }
 0x36d   :  { %v1228_v30 = vadd.f32 %v1227_v1, %v6609_v5  ;;  %v1299_v11 = vadd.f32 %v1298_v2, %v7766_v38 }
 0x36e   :  { %v3760_v0 = vmul.f32 -1.442695, %v1226_v56 }
 0x36f   :  { %v3761_v42 = vmul.f32 -1.442695, %v1228_v30  ;;  %v3762_v8 = vmul.f32 -1.442695, %v1299_v11 }
 0x370   :  { %5658 = vpow2.f32 %v3760_v0 }
 0x371   :  { %5660 = vpow2.f32 %v3761_v42 }
 0x372   :  { %5662 = vpow2.f32 %v3762_v8 }
 0x373   :  { %5664 = vtanh.f32 %v1297_v50 }
 0x37a   :  { %v5659_v19 = vpop.eup %5658 }
 0x37b   :  { %v5661_v43 = vpop.eup %5660  ;;  %v1304_v26 = vadd.f32 1.0, %v5659_v19 }
 0x37c   :  { %v1310_v28 = vadd.f32 1.0, %v5661_v43  ;;  %v5663_v4 = vpop.eup %5662 }
 0x37d   :  { %5666 = vrcp.f32 %v1304_v26  ;;  %v5665_v21 = vpop.eup %5664  ;;  %v1317_v0 = vadd.f32 1.0, %v5663_v4 }
 0x37e   :  { %5668 = vrcp.f32 %v1310_v28 }
 0x37f   :  { %5670 = vrcp.f32 %v1317_v0 }
 0x387   :  { %v5667_v1 = vpop.eup %5666 }
 0x388   :  { %v5669_v56 = vpop.eup %5668  ;;  %v1321_v30 = vmul.f32 %v5667_v1, %v5665_v21 }
 0x389   :  { %v1320_v42 = vmul.f32 %v5669_v56, %v6621_v6  ;;  %v5671_v6 = vpop.eup %5670 }
 0x38b   :  { %v6739_v2 = vadd.f32 %v1321_v30, %v1320_v42  ;;  %v1396_v11 = vpop.f32.mrb[4].mxu0  ;;  %v1467_v63 = vpop.f32.mrb[4].mxu1 }
 0x38c   :  { %v5541_v19 = vadd.f32 %v1396_v11, %v7768_v37  ;;  %v1398_v8 = vpop.f32.mrb[5].mxu0  ;;  %v1469_v50 = vpop.f32.mrb[5].mxu1  ;;  %v5557_v56 = vadd.f32 %v1467_v63, %v6498_v3 }
 0x38d   :  { %v5542_v43 = vadd.f32 %v1398_v8, %v7708_v55  ;;  %5672 = vtanh.f32 %v6739_v2  ;;  %v5558_v21 = vadd.f32 %v1469_v50, %v7709_v59 }
 0x38e   :  { %v3763_v28 = vmul.f32 -1.442695, %v5541_v19 }
 0x38f   :  { %v3764_v26 = vmul.f32 -1.442695, %v5542_v43  ;;  %v3765_v1 = vmul.f32 -1.442695, %v5558_v21 }
 0x390   :  { %5674 = vpow2.f32 %v3763_v28 }
 0x391   :  { %5676 = vpow2.f32 %v3764_v26 }
 0x392   :  { %5678 = vpow2.f32 %v3765_v1 }
 0x393   :  { %5680 = vtanh.f32 %v5557_v56  ;;  %v7771_v56 = vld [vmem:[#allocation21_spill] sm:$0xff] }
 0x397   :  { %v5673_v4 = vpop.eup %5672 }
 0x398   :  { %v6746_v30 = vmul.f32 %v5673_v4, %v5671_v6 }
 0x39a   :  { %7769 = vst [vmem:[#allocation77_spill] sm:$0xff] %v6746_v30  ;;  %v5675_v0 = vpop.eup %5674  ;;  %1564 = vmatprep.mubr.f32.mxu0 %v6746_v30  ;;  %1635 = vmatprep.mubr.f32.mxu1 %v6746_v30  ;;  %v7785_v30 = vld [vmem:[#allocation35_spill] sm:$0xff] }
 0x39b   :  { %v5677_v42 = vpop.eup %5676  ;;  %v1479_v11 = vadd.f32 1.0, %v5675_v0 }
 0x39c   :  { %v1485_v19 = vadd.f32 1.0, %v5677_v42  ;;  %v5679_v8 = vpop.eup %5678  ;;  %v7772_v42 = vld [vmem:[#allocation22_spill] sm:$0xff] }
 0x39d   :  { %5682 = vrcp.f32 %v1479_v11  ;;  %v5681_v50 = vpop.eup %5680  ;;  %v1492_v63 = vadd.f32 1.0, %v5679_v8  ;;  %v7773_v11 = vld [vmem:[#allocation23_spill] sm:$0xff]  ;;  %v7775_v8 = vld [vmem:[#allocation25_spill] sm:$0xff] }
 0x39e   :  { %5684 = vrcp.f32 %v1485_v19  ;;  %v7774_v19 = vld [vmem:[#allocation24_spill] sm:$0xff] }
 0x39f   :  { %5686 = vrcp.f32 %v1492_v63  ;;  %v7780_v63 = vld [vmem:[#allocation30_spill] sm:$0xff] }
 0x3a7   :  { %v5683_v43 = vpop.eup %5682 }
 0x3a8   :  { %v5685_v28 = vpop.eup %5684  ;;  %v1496_v26 = vmul.f32 %v5683_v43, %v5681_v50  ;;  %v7776_v50 = vld [vmem:[#allocation26_spill] sm:$0xff]  ;;  %v7777_v43 = vld [vmem:[#allocation27_spill] sm:$0xff] }
 0x3a9   :  { %v1495_v21 = vmul.f32 %v5685_v28, %v6633_v18  ;;  %v5687_v4 = vpop.eup %5686  ;;  %v7770_v18 = vld [vmem:[#allocation20_spill] sm:$0xff] }
 0x3aa   :  { %v7778_v28 = vld [vmem:[#allocation28_spill] sm:$0xff] }
 0x3ab   :  { %v6751_v6 = vadd.f32 %v1496_v26, %v1495_v21  ;;  %v7779_v26 = vld [vmem:[#allocation29_spill] sm:$0xff]  ;;  %v7781_v21 = vld [vmem:[#allocation31_spill] sm:$0xff] }
 0x3ad   :  { %5688 = vtanh.f32 %v6751_v6 }
 0x3b7   :  { %v5689_v0 = vpop.eup %5688 }
 0x3b8   :  { %v1499_v1 = vmul.f32 %v5689_v0, %v5687_v4  ;;  %v7782_v4 = vld [vmem:[#allocation32_spill] sm:$0xff]  ;;  %v7783_v0 = vld [vmem:[#allocation33_spill] sm:$0xff] }
 0x3ba   :  { %1565 = vmatmul.mubr.f32.vlgmr.msra.gmra.mrb[20].mxu0 %v1499_v1  ;;  %1636 = vmatmul.mubr.f32.vlgmr.msra.gmra.mrb[20].mxu1 %v1499_v1 }
 0x3bb   :  { %4516 = vmatpush1.bf16.msra.mxu0 %v6138_v23  ;;  %4548 = vmatpush1.bf16.msra.mxu1 %v6145_v27 }
 0x3bc   :  { %4518 = vmatprep.subr.bf16.mxu0 %v6149_v31  ;;  %4550 = vmatprep.subr.bf16.mxu1 %v6153_v35 }
 0x3bd   :  { %1735 = vmatprep.mubr.f32.mxu0 %v7650_v25  ;;  %1806 = vmatprep.mubr.f32.mxu1 %v7650_v25 }
 0x3bf   :  { %4520 = vmatpush1.bf16.msra.mxu0 %v6155_v36  ;;  %4552 = vmatpush1.bf16.msra.mxu1 %v6159_v39 }
 0x3c0   :  { %4522 = vmatprep.subr.bf16.mxu0 %v6168_v47  ;;  %4554 = vmatprep.subr.bf16.mxu1 %v6172_v48 }
 0x3c3   :  { %4524 = vmatpush1.bf16.msra.mxu0 %v6174_v49  ;;  %4556 = vmatpush1.bf16.msra.mxu1 %v6178_v53 }
 0x3c4   :  { %4526 = vmatprep.subr.bf16.mxu0 %v6187_v60  ;;  %4558 = vmatprep.subr.bf16.mxu1 %v6191_v61 }
 0x3c7   :  { %4528 = vmatpush1.bf16.msra.mxu0 %v6193_v62  ;;  %4560 = vmatpush1.bf16.msra.mxu1 %v6197_v7 }
 0x3c8   :  { %4530 = vmatprep.subr.bf16.mxu0 %v6206_v14  ;;  %4562 = vmatprep.subr.bf16.mxu1 %v6210_v15 }
 0x3cb   :  { %4532 = vmatpush1.bf16.msra.mxu0 %v6212_v16  ;;  %4564 = vmatpush1.bf16.msra.mxu1 %v6216_v20 }
 0x3cc   :  { %4534 = vmatprep.subr.bf16.mxu0 %v6225_v32  ;;  %4566 = vmatprep.subr.bf16.mxu1 %v6229_v33 }
 0x3cf   :  { %4536 = vmatpush1.bf16.msra.mxu0 %v6231_v34  ;;  %4568 = vmatpush1.bf16.msra.mxu1 %v6235_v41 }
 0x3d0   :  { %4538 = vmatprep.subr.bf16.mxu0 %v6244_v51  ;;  %4570 = vmatprep.subr.bf16.mxu1 %v6248_v52 }
 0x3d3   :  { %4540 = vmatpush1.bf16.msra.mxu0 %v6250_v54  ;;  %4572 = vmatpush1.bf16.msra.mxu1 %v6254_v58 }
 0x3d4   :  { %4542 = vmatprep.subr.bf16.mxu0 %v6263_v10  ;;  %4574 = vmatprep.subr.bf16.mxu1 %v6267_v13 }
 0x3d7   :  { %4544 = vmatpush1.bf16.msra.mxu0 %v6269_v17  ;;  %4576 = vmatpush1.bf16.msra.mxu1 %v6273_v24 }
 0x3d8   :  { %4578 = vmatprep.subr.bf16.mxu0 %v6277_v29  ;;  %4642 = vmatprep.subr.bf16.mxu1 %v6281_v40 }
 0x3da   :  { %1736 = vmatmul.mubr.f32.vlgmr.msra.gmra.mrb[6].mxu0 %v1499_v1  ;;  %1807 = vmatmul.mubr.f32.vlgmr.msra.gmra.mrb[6].mxu1 %v1499_v1  ;;  %v7784_v1 = vld [vmem:[#allocation34_spill] sm:$0xff] }
 0x3db   :  { %4580 = vmatpush1.bf16.msra.mxu0 %v6285_v44  ;;  %4644 = vmatpush1.bf16.msra.mxu1 %v6289_v45 }
 0x3dc   :  { %4582 = vmatprep.subr.bf16.mxu0 %v6291_v46  ;;  %4646 = vmatprep.subr.bf16.mxu1 %v6295_v57 }
 0x3df   :  { %4584 = vmatpush1.bf16.msra.mxu0 %v6301_v9  ;;  %4648 = vmatpush1.bf16.msra.mxu1 %v7651_v22 }
 0x3e0   :  { %4586 = vmatprep.subr.bf16.mxu0 %v6307_v12  ;;  %4650 = vmatprep.subr.bf16.mxu1 %v7770_v18 }
 0x3e3   :  { %4588 = vmatpush1.bf16.msra.mxu0 %v7771_v56  ;;  %4652 = vmatpush1.bf16.msra.mxu1 %v7772_v42 }
 0x3e4   :  { %4590 = vmatprep.subr.bf16.mxu0 %v7773_v11  ;;  %4654 = vmatprep.subr.bf16.mxu1 %v7774_v19  ;;  %v7827_v19 = vld [vmem:[#allocation18_spill] sm:$0xff] }
 0x3e7   :  { %4592 = vmatpush1.bf16.msra.mxu0 %v7775_v8  ;;  %4656 = vmatpush1.bf16.msra.mxu1 %v7776_v50  ;;  %v7786_v8 = vld [vmem:[#allocation36_spill] sm:$0xff]  ;;  %v7787_v50 = vld [vmem:[#allocation37_spill] sm:$0xff] }
 0x3e8   :  { %4594 = vmatprep.subr.bf16.mxu0 %v7777_v43  ;;  %4658 = vmatprep.subr.bf16.mxu1 %v7778_v28  ;;  %v7788_v43 = vld [vmem:[#allocation38_spill] sm:$0xff]  ;;  %v7789_v28 = vld [vmem:[#allocation39_spill] sm:$0xff] }
 0x3eb   :  { %4596 = vmatpush1.bf16.msra.mxu0 %v7779_v26  ;;  %4660 = vmatpush1.bf16.msra.mxu1 %v7780_v63  ;;  %v7790_v26 = vld [vmem:[#allocation40_spill] sm:$0xff]  ;;  %v7791_v63 = vld [vmem:[#allocation41_spill] sm:$0xff] }
 0x3ec   :  { %4598 = vmatprep.subr.bf16.mxu0 %v7781_v21  ;;  %4662 = vmatprep.subr.bf16.mxu1 %v7782_v4  ;;  %v7792_v21 = vld [vmem:[#allocation42_spill] sm:$0xff]  ;;  %v7793_v4 = vld [vmem:[#allocation43_spill] sm:$0xff] }
 0x3ef   :  { %4600 = vmatpush1.bf16.msra.mxu0 %v7783_v0  ;;  %4664 = vmatpush1.bf16.msra.mxu1 %v7784_v1  ;;  %v7794_v0 = vld [vmem:[#allocation44_spill] sm:$0xff]  ;;  %v7795_v1 = vld [vmem:[#allocation45_spill] sm:$0xff] }
 0x3f0   :  { %4602 = vmatprep.subr.bf16.mxu0 %v7785_v30  ;;  %4666 = vmatprep.subr.bf16.mxu1 %v7786_v8  ;;  %v7796_v30 = vld [vmem:[#allocation46_spill] sm:$0xff]  ;;  %v7797_v8 = vld [vmem:[#allocation47_spill] sm:$0xff] }
 0x3f3   :  { %4604 = vmatpush1.bf16.msra.mxu0 %v7787_v50  ;;  %4668 = vmatpush1.bf16.msra.mxu1 %v7788_v43  ;;  %v7798_v50 = vld [vmem:[#allocation48_spill] sm:$0xff]  ;;  %v7799_v43 = vld [vmem:[#allocation49_spill] sm:$0xff] }
 0x3f4   :  { %4606 = vmatprep.subr.bf16.mxu0 %v7789_v28  ;;  %4670 = vmatprep.subr.bf16.mxu1 %v7790_v26  ;;  %v7800_v28 = vld [vmem:[#allocation50_spill] sm:$0xff]  ;;  %v7801_v26 = vld [vmem:[#allocation51_spill] sm:$0xff] }
 0x3f7   :  { %4608 = vmatpush1.bf16.msra.mxu0 %v7791_v63  ;;  %4672 = vmatpush1.bf16.msra.mxu1 %v7792_v21  ;;  %v7802_v63 = vld [vmem:[#allocation52_spill] sm:$0xff]  ;;  %v7803_v21 = vld [vmem:[#allocation53_spill] sm:$0xff] }
 0x3f8   :  { %4610 = vmatprep.subr.bf16.mxu0 %v7793_v4  ;;  %4674 = vmatprep.subr.bf16.mxu1 %v7794_v0  ;;  %v7804_v4 = vld [vmem:[#allocation54_spill] sm:$0xff]  ;;  %v7805_v0 = vld [vmem:[#allocation55_spill] sm:$0xff] }
 0x3fb   :  { %4612 = vmatpush1.bf16.msra.mxu0 %v7795_v1  ;;  %4676 = vmatpush1.bf16.msra.mxu1 %v7796_v30  ;;  %v7806_v1 = vld [vmem:[#allocation56_spill] sm:$0xff]  ;;  %v7807_v30 = vld [vmem:[#allocation57_spill] sm:$0xff] }
 0x3fc   :  { %4614 = vmatprep.subr.bf16.mxu0 %v7797_v8  ;;  %4678 = vmatprep.subr.bf16.mxu1 %v7798_v50  ;;  %v7808_v8 = vld [vmem:[#allocation58_spill] sm:$0xff]  ;;  %v7809_v50 = vld [vmem:[#allocation59_spill] sm:$0xff] }
 0x3ff   :  { %4616 = vmatpush1.bf16.msra.mxu0 %v7799_v43  ;;  %4680 = vmatpush1.bf16.msra.mxu1 %v7800_v28  ;;  %v7810_v43 = vld [vmem:[#allocation60_spill] sm:$0xff]  ;;  %v7811_v28 = vld [vmem:[#allocation61_spill] sm:$0xff] }
 0x400   :  { %4618 = vmatprep.subr.bf16.mxu0 %v7801_v26  ;;  %4682 = vmatprep.subr.bf16.mxu1 %v7802_v63  ;;  %v7812_v26 = vld [vmem:[#allocation62_spill] sm:$0xff]  ;;  %v7813_v63 = vld [vmem:[#allocation63_spill] sm:$0xff] }
 0x403   :  { %4620 = vmatpush1.bf16.msra.mxu0 %v7803_v21  ;;  %4684 = vmatpush1.bf16.msra.mxu1 %v7804_v4  ;;  %v7814_v21 = vld [vmem:[#allocation64_spill] sm:$0xff]  ;;  %v7815_v4 = vld [vmem:[#allocation65_spill] sm:$0xff] }
 0x404   :  { %4622 = vmatprep.subr.bf16.mxu0 %v7805_v0  ;;  %4686 = vmatprep.subr.bf16.mxu1 %v7806_v1  ;;  %v7816_v0 = vld [vmem:[#allocation66_spill] sm:$0xff]  ;;  %v7817_v1 = vld [vmem:[#allocation67_spill] sm:$0xff] }
 0x407   :  { %4624 = vmatpush1.bf16.msra.mxu0 %v7807_v30  ;;  %4688 = vmatpush1.bf16.msra.mxu1 %v7808_v8  ;;  %v7818_v30 = vld [vmem:[#allocation68_spill] sm:$0xff]  ;;  %v7819_v8 = vld [vmem:[#allocation69_spill] sm:$0xff] }
 0x408   :  { %4626 = vmatprep.subr.bf16.mxu0 %v7809_v50  ;;  %4690 = vmatprep.subr.bf16.mxu1 %v7810_v43  ;;  %v7820_v50 = vld [vmem:[#allocation70_spill] sm:$0xff]  ;;  %v7821_v43 = vld [vmem:[#allocation71_spill] sm:$0xff] }
 0x40b   :  { %4628 = vmatpush1.bf16.msra.mxu0 %v7811_v28  ;;  %4692 = vmatpush1.bf16.msra.mxu1 %v7812_v26  ;;  %v7822_v28 = vld [vmem:[#allocation72_spill] sm:$0xff]  ;;  %v7823_v26 = vld [vmem:[#allocation73_spill] sm:$0xff] }
 0x40c   :  { %4630 = vmatprep.subr.bf16.mxu0 %v7813_v63  ;;  %4694 = vmatprep.subr.bf16.mxu1 %v7814_v21  ;;  %v7824_v63 = vld [vmem:[#allocation74_spill] sm:$0xff]  ;;  %v7825_v21 = vld [vmem:[#allocation16_spill] sm:$0xff] }
 0x40f   :  { %4632 = vmatpush1.bf16.msra.mxu0 %v7815_v4  ;;  %4696 = vmatpush1.bf16.msra.mxu1 %v7816_v0  ;;  %v7826_v4 = vld [vmem:[#allocation17_spill] sm:$0xff] }
 0x410   :  { %4634 = vmatprep.subr.bf16.mxu0 %v7817_v1  ;;  %4698 = vmatprep.subr.bf16.mxu1 %v7818_v30 }
 0x413   :  { %4636 = vmatpush1.bf16.msra.mxu0 %v7819_v8  ;;  %4700 = vmatpush1.bf16.msra.mxu1 %v7820_v50 }
 0x414   :  { %4638 = vmatprep.subr.bf16.mxu0 %v7821_v43  ;;  %4702 = vmatprep.subr.bf16.mxu1 %v7822_v28 }
 0x417   :  { %4640 = vmatpush1.bf16.msra.mxu0 %v7823_v26  ;;  %4704 = vmatpush1.bf16.msra.mxu1 %v7824_v63  ;;  %v7828_v63 = vld [vmem:[#allocation14_spill] sm:$0xff] }
 0x418   :  { %4706 = vmatprep.subr.bf16.mxu0 %v7825_v21  ;;  %4738 = vmatprep.subr.bf16.mxu1 %v7826_v4 }
 0x48d   :  { %v1566_v0 = vpop.f32.mrb[20].mxu0  ;;  %v1637_v1 = vpop.f32.mrb[20].mxu1 }
 0x48e   :  { %v1567_v30 = vadd.f32 %v1566_v0, %v7827_v19  ;;  %v1568_v11 = vpop.f32.mrb[21].mxu0  ;;  %v1639_v8 = vpop.f32.mrb[21].mxu1  ;;  %v1638_v56 = vadd.f32 %v1637_v1, %v7828_v63 }
 0x48f   :  { %v1569_v50 = vadd.f32 %v1568_v11, %v6609_v5  ;;  %v1640_v26 = vadd.f32 %v1639_v8, %v7766_v38 }
 0x490   :  { %v3766_v42 = vmul.f32 -1.442695, %v1567_v30 }
 0x491   :  { %v3767_v43 = vmul.f32 -1.442695, %v1569_v50  ;;  %v3768_v28 = vmul.f32 -1.442695, %v1640_v26 }
 0x492   :  { %5690 = vpow2.f32 %v3766_v42 }
 0x493   :  { %5692 = vpow2.f32 %v3767_v43 }
 0x494   :  { %5694 = vpow2.f32 %v3768_v28 }
 0x495   :  { %5696 = vtanh.f32 %v1638_v56 }
 0x49c   :  { %v5691_v21 = vpop.eup %5690 }
 0x49d   :  { %v5693_v18 = vpop.eup %5692  ;;  %v1645_v4 = vadd.f32 1.0, %v5691_v21 }
 0x49e   :  { %v1651_v12 = vadd.f32 1.0, %v5693_v18  ;;  %v5695_v0 = vpop.eup %5694 }
 0x49f   :  { %5698 = vrcp.f32 %v1645_v4  ;;  %v5697_v19 = vpop.eup %5696  ;;  %v1658_v42 = vadd.f32 1.0, %v5695_v0 }
 0x4a0   :  { %5700 = vrcp.f32 %v1651_v12 }
 0x4a1   :  { %5702 = vrcp.f32 %v1658_v42 }
 0x4a9   :  { %v5699_v11 = vpop.eup %5698 }
 0x4aa   :  { %v5701_v30 = vpop.eup %5700  ;;  %v1662_v50 = vmul.f32 %v5699_v11, %v5697_v19 }
 0x4ab   :  { %v1661_v43 = vmul.f32 %v5701_v30, %v6739_v2  ;;  %v5703_v2 = vpop.eup %5702 }
 0x4ad   :  { %v6857_v8 = vadd.f32 %v1662_v50, %v1661_v43  ;;  %v1737_v26 = vpop.f32.mrb[6].mxu0  ;;  %v1808_v1 = vpop.f32.mrb[6].mxu1 }
 0x4ae   :  { %v5543_v21 = vadd.f32 %v1737_v26, %v7768_v37  ;;  %v1739_v28 = vpop.f32.mrb[7].mxu0  ;;  %v1810_v56 = vpop.f32.mrb[7].mxu1  ;;  %v5559_v30 = vadd.f32 %v1808_v1, %v6498_v3 }
 0x4af   :  { %v5544_v18 = vadd.f32 %v1739_v28, %v7708_v55  ;;  %5704 = vtanh.f32 %v6857_v8  ;;  %v5560_v19 = vadd.f32 %v1810_v56, %v7709_v59 }
 0x4b0   :  { %v3769_v12 = vmul.f32 -1.442695, %v5543_v21 }
 0x4b1   :  { %v3770_v4 = vmul.f32 -1.442695, %v5544_v18  ;;  %v3771_v11 = vmul.f32 -1.442695, %v5560_v19 }
 0x4b2   :  { %5706 = vpow2.f32 %v3769_v12 }
 0x4b3   :  { %5708 = vpow2.f32 %v3770_v4 }
 0x4b4   :  { %5710 = vpow2.f32 %v3771_v11 }
 0x4b5   :  { %5712 = vtanh.f32 %v5559_v30  ;;  %v7831_v30 = vld [vmem:[#allocation20_spill] sm:$0xff] }
 0x4b9   :  { %v5705_v0 = vpop.eup %5704 }
 0x4ba   :  { %v6864_v50 = vmul.f32 %v5705_v0, %v5703_v2 }
 0x4bc   :  { %7829 = vst [vmem:[#allocation15_spill] sm:$0xff] %v6864_v50  ;;  %v5707_v42 = vpop.eup %5706  ;;  %1905 = vmatprep.mubr.f32.mxu0 %v6864_v50  ;;  %1976 = vmatprep.mubr.f32.mxu1 %v6864_v50  ;;  %v7845_v50 = vld [vmem:[#allocation34_spill] sm:$0xff] }
 0x4bd   :  { %v5709_v43 = vpop.eup %5708  ;;  %v1820_v26 = vadd.f32 1.0, %v5707_v42 }
 0x4be   :  { %v1826_v21 = vadd.f32 1.0, %v5709_v43  ;;  %v5711_v28 = vpop.eup %5710  ;;  %v7832_v43 = vld [vmem:[#allocation21_spill] sm:$0xff] }
 0x4bf   :  { %5714 = vrcp.f32 %v1820_v26  ;;  %v5713_v56 = vpop.eup %5712  ;;  %v1833_v1 = vadd.f32 1.0, %v5711_v28  ;;  %v7833_v26 = vld [vmem:[#allocation22_spill] sm:$0xff]  ;;  %v7835_v28 = vld [vmem:[#allocation24_spill] sm:$0xff] }
 0x4c0   :  { %5716 = vrcp.f32 %v1826_v21  ;;  %v7834_v21 = vld [vmem:[#allocation23_spill] sm:$0xff] }
 0x4c1   :  { %5718 = vrcp.f32 %v1833_v1  ;;  %v7840_v1 = vld [vmem:[#allocation29_spill] sm:$0xff] }
 0x4c9   :  { %v5715_v18 = vpop.eup %5714 }
 0x4ca   :  { %v5717_v12 = vpop.eup %5716  ;;  %v1837_v4 = vmul.f32 %v5715_v18, %v5713_v56  ;;  %v7836_v56 = vld [vmem:[#allocation25_spill] sm:$0xff]  ;;  %v7837_v18 = vld [vmem:[#allocation26_spill] sm:$0xff] }
 0x4cb   :  { %v1836_v19 = vmul.f32 %v5717_v12, %v6751_v6  ;;  %v5719_v0 = vpop.eup %5718  ;;  %v7830_v6 = vld [vmem:[#allocation19_spill] sm:$0xff] }
 0x4cc   :  { %v7838_v12 = vld [vmem:[#allocation27_spill] sm:$0xff] }
 0x4cd   :  { %v6869_v2 = vadd.f32 %v1837_v4, %v1836_v19  ;;  %v7839_v4 = vld [vmem:[#allocation28_spill] sm:$0xff]  ;;  %v7841_v19 = vld [vmem:[#allocation30_spill] sm:$0xff] }
 0x4cf   :  { %5720 = vtanh.f32 %v6869_v2 }
 0x4d9   :  { %v5721_v42 = vpop.eup %5720 }
 0x4da   :  { %v1840_v11 = vmul.f32 %v5721_v42, %v5719_v0  ;;  %v7842_v0 = vld [vmem:[#allocation31_spill] sm:$0xff]  ;;  %v7843_v42 = vld [vmem:[#allocation32_spill] sm:$0xff] }
 0x4dc   :  { %1906 = vmatmul.mubr.f32.vlgmr.msra.gmra.mrb[22].mxu0 %v1840_v11  ;;  %1977 = vmatmul.mubr.f32.vlgmr.msra.gmra.mrb[22].mxu1 %v1840_v11 }
 0x4dd   :  { %4708 = vmatpush1.bf16.msra.mxu0 %v6138_v23  ;;  %4740 = vmatpush1.bf16.msra.mxu1 %v6145_v27 }
 0x4de   :  { %4710 = vmatprep.subr.bf16.mxu0 %v6149_v31  ;;  %4742 = vmatprep.subr.bf16.mxu1 %v6153_v35 }
 0x4df   :  { %2076 = vmatprep.mubr.f32.mxu0 %v7650_v25  ;;  %2147 = vmatprep.mubr.f32.mxu1 %v7650_v25 }
 0x4e1   :  { %4712 = vmatpush1.bf16.msra.mxu0 %v6155_v36  ;;  %4744 = vmatpush1.bf16.msra.mxu1 %v6159_v39 }
 0x4e2   :  { %4714 = vmatprep.subr.bf16.mxu0 %v6168_v47  ;;  %4746 = vmatprep.subr.bf16.mxu1 %v6172_v48 }
 0x4e5   :  { %4716 = vmatpush1.bf16.msra.mxu0 %v6174_v49  ;;  %4748 = vmatpush1.bf16.msra.mxu1 %v6178_v53 }
 0x4e6   :  { %4718 = vmatprep.subr.bf16.mxu0 %v6187_v60  ;;  %4750 = vmatprep.subr.bf16.mxu1 %v6191_v61 }
 0x4e9   :  { %4720 = vmatpush1.bf16.msra.mxu0 %v6193_v62  ;;  %4752 = vmatpush1.bf16.msra.mxu1 %v6197_v7 }
 0x4ea   :  { %4722 = vmatprep.subr.bf16.mxu0 %v6206_v14  ;;  %4754 = vmatprep.subr.bf16.mxu1 %v6210_v15 }
 0x4ed   :  { %4724 = vmatpush1.bf16.msra.mxu0 %v6212_v16  ;;  %4756 = vmatpush1.bf16.msra.mxu1 %v6216_v20 }
 0x4ee   :  { %4726 = vmatprep.subr.bf16.mxu0 %v6225_v32  ;;  %4758 = vmatprep.subr.bf16.mxu1 %v6229_v33 }
 0x4f1   :  { %4728 = vmatpush1.bf16.msra.mxu0 %v6231_v34  ;;  %4760 = vmatpush1.bf16.msra.mxu1 %v6235_v41 }
 0x4f2   :  { %4730 = vmatprep.subr.bf16.mxu0 %v6244_v51  ;;  %4762 = vmatprep.subr.bf16.mxu1 %v6248_v52 }
 0x4f5   :  { %4732 = vmatpush1.bf16.msra.mxu0 %v6250_v54  ;;  %4764 = vmatpush1.bf16.msra.mxu1 %v6254_v58 }
 0x4f6   :  { %4734 = vmatprep.subr.bf16.mxu0 %v6263_v10  ;;  %4766 = vmatprep.subr.bf16.mxu1 %v6267_v13 }
 0x4f9   :  { %4736 = vmatpush1.bf16.msra.mxu0 %v6269_v17  ;;  %4768 = vmatpush1.bf16.msra.mxu1 %v6273_v24 }
 0x4fa   :  { %4770 = vmatprep.subr.bf16.mxu0 %v6277_v29  ;;  %4834 = vmatprep.subr.bf16.mxu1 %v6281_v40 }
 0x4fc   :  { %2077 = vmatmul.mubr.f32.vlgmr.msra.gmra.mrb[8].mxu0 %v1840_v11  ;;  %2148 = vmatmul.mubr.f32.vlgmr.msra.gmra.mrb[8].mxu1 %v1840_v11  ;;  %v7844_v11 = vld [vmem:[#allocation33_spill] sm:$0xff] }
 0x4fd   :  { %4772 = vmatpush1.bf16.msra.mxu0 %v6285_v44  ;;  %4836 = vmatpush1.bf16.msra.mxu1 %v6289_v45 }
 0x4fe   :  { %4774 = vmatprep.subr.bf16.mxu0 %v6291_v46  ;;  %4838 = vmatprep.subr.bf16.mxu1 %v6295_v57 }
 0x501   :  { %4776 = vmatpush1.bf16.msra.mxu0 %v6301_v9  ;;  %4840 = vmatpush1.bf16.msra.mxu1 %v7651_v22 }
 0x502   :  { %4778 = vmatprep.subr.bf16.mxu0 %v7830_v6  ;;  %4842 = vmatprep.subr.bf16.mxu1 %v7831_v30 }
 0x505   :  { %4780 = vmatpush1.bf16.msra.mxu0 %v7832_v43  ;;  %4844 = vmatpush1.bf16.msra.mxu1 %v7833_v26 }
 0x506   :  { %4782 = vmatprep.subr.bf16.mxu0 %v7834_v21  ;;  %4846 = vmatprep.subr.bf16.mxu1 %v7835_v28  ;;  %v7846_v28 = vld [vmem:[#allocation35_spill] sm:$0xff]  ;;  %v7888_v21 = vld [vmem:[#allocation18_spill] sm:$0xff] }
 0x509   :  { %4784 = vmatpush1.bf16.msra.mxu0 %v7836_v56  ;;  %4848 = vmatpush1.bf16.msra.mxu1 %v7837_v18  ;;  %v7847_v56 = vld [vmem:[#allocation36_spill] sm:$0xff]  ;;  %v7848_v18 = vld [vmem:[#allocation37_spill] sm:$0xff] }
 0x50a   :  { %4786 = vmatprep.subr.bf16.mxu0 %v7838_v12  ;;  %4850 = vmatprep.subr.bf16.mxu1 %v7839_v4  ;;  %v7849_v12 = vld [vmem:[#allocation38_spill] sm:$0xff]  ;;  %v7850_v4 = vld [vmem:[#allocation39_spill] sm:$0xff] }
 0x50d   :  { %4788 = vmatpush1.bf16.msra.mxu0 %v7840_v1  ;;  %4852 = vmatpush1.bf16.msra.mxu1 %v7841_v19  ;;  %v7851_v1 = vld [vmem:[#allocation40_spill] sm:$0xff]  ;;  %v7852_v19 = vld [vmem:[#allocation41_spill] sm:$0xff] }
 0x50e   :  { %4790 = vmatprep.subr.bf16.mxu0 %v7842_v0  ;;  %4854 = vmatprep.subr.bf16.mxu1 %v7843_v42  ;;  %v7853_v0 = vld [vmem:[#allocation42_spill] sm:$0xff]  ;;  %v7854_v42 = vld [vmem:[#allocation43_spill] sm:$0xff] }
 0x511   :  { %4792 = vmatpush1.bf16.msra.mxu0 %v7844_v11  ;;  %4856 = vmatpush1.bf16.msra.mxu1 %v7845_v50  ;;  %v7855_v11 = vld [vmem:[#allocation44_spill] sm:$0xff]  ;;  %v7856_v50 = vld [vmem:[#allocation45_spill] sm:$0xff] }
 0x512   :  { %4794 = vmatprep.subr.bf16.mxu0 %v7846_v28  ;;  %4858 = vmatprep.subr.bf16.mxu1 %v7847_v56  ;;  %v7857_v28 = vld [vmem:[#allocation46_spill] sm:$0xff]  ;;  %v7858_v56 = vld [vmem:[#allocation47_spill] sm:$0xff] }
 0x515   :  { %4796 = vmatpush1.bf16.msra.mxu0 %v7848_v18  ;;  %4860 = vmatpush1.bf16.msra.mxu1 %v7849_v12  ;;  %v7859_v18 = vld [vmem:[#allocation48_spill] sm:$0xff]  ;;  %v7860_v12 = vld [vmem:[#allocation49_spill] sm:$0xff] }
 0x516   :  { %4798 = vmatprep.subr.bf16.mxu0 %v7850_v4  ;;  %4862 = vmatprep.subr.bf16.mxu1 %v7851_v1  ;;  %v7861_v4 = vld [vmem:[#allocation50_spill] sm:$0xff]  ;;  %v7862_v1 = vld [vmem:[#allocation51_spill] sm:$0xff] }
 0x519   :  { %4800 = vmatpush1.bf16.msra.mxu0 %v7852_v19  ;;  %4864 = vmatpush1.bf16.msra.mxu1 %v7853_v0  ;;  %v7863_v19 = vld [vmem:[#allocation52_spill] sm:$0xff]  ;;  %v7864_v0 = vld [vmem:[#allocation53_spill] sm:$0xff] }
 0x51a   :  { %4802 = vmatprep.subr.bf16.mxu0 %v7854_v42  ;;  %4866 = vmatprep.subr.bf16.mxu1 %v7855_v11  ;;  %v7865_v42 = vld [vmem:[#allocation54_spill] sm:$0xff]  ;;  %v7866_v11 = vld [vmem:[#allocation55_spill] sm:$0xff] }
 0x51d   :  { %4804 = vmatpush1.bf16.msra.mxu0 %v7856_v50  ;;  %4868 = vmatpush1.bf16.msra.mxu1 %v7857_v28  ;;  %v7867_v50 = vld [vmem:[#allocation56_spill] sm:$0xff]  ;;  %v7868_v28 = vld [vmem:[#allocation57_spill] sm:$0xff] }
 0x51e   :  { %4806 = vmatprep.subr.bf16.mxu0 %v7858_v56  ;;  %4870 = vmatprep.subr.bf16.mxu1 %v7859_v18  ;;  %v7869_v56 = vld [vmem:[#allocation58_spill] sm:$0xff]  ;;  %v7870_v18 = vld [vmem:[#allocation59_spill] sm:$0xff] }
 0x521   :  { %4808 = vmatpush1.bf16.msra.mxu0 %v7860_v12  ;;  %4872 = vmatpush1.bf16.msra.mxu1 %v7861_v4  ;;  %v7871_v12 = vld [vmem:[#allocation60_spill] sm:$0xff]  ;;  %v7872_v4 = vld [vmem:[#allocation61_spill] sm:$0xff] }
 0x522   :  { %4810 = vmatprep.subr.bf16.mxu0 %v7862_v1  ;;  %4874 = vmatprep.subr.bf16.mxu1 %v7863_v19  ;;  %v7873_v1 = vld [vmem:[#allocation62_spill] sm:$0xff]  ;;  %v7874_v19 = vld [vmem:[#allocation63_spill] sm:$0xff] }
 0x525   :  { %4812 = vmatpush1.bf16.msra.mxu0 %v7864_v0  ;;  %4876 = vmatpush1.bf16.msra.mxu1 %v7865_v42  ;;  %v7875_v0 = vld [vmem:[#allocation64_spill] sm:$0xff]  ;;  %v7876_v42 = vld [vmem:[#allocation65_spill] sm:$0xff] }
 0x526   :  { %4814 = vmatprep.subr.bf16.mxu0 %v7866_v11  ;;  %4878 = vmatprep.subr.bf16.mxu1 %v7867_v50  ;;  %v7877_v11 = vld [vmem:[#allocation66_spill] sm:$0xff]  ;;  %v7878_v50 = vld [vmem:[#allocation67_spill] sm:$0xff] }
 0x529   :  { %4816 = vmatpush1.bf16.msra.mxu0 %v7868_v28  ;;  %4880 = vmatpush1.bf16.msra.mxu1 %v7869_v56  ;;  %v7879_v28 = vld [vmem:[#allocation68_spill] sm:$0xff]  ;;  %v7880_v56 = vld [vmem:[#allocation69_spill] sm:$0xff] }
 0x52a   :  { %4818 = vmatprep.subr.bf16.mxu0 %v7870_v18  ;;  %4882 = vmatprep.subr.bf16.mxu1 %v7871_v12  ;;  %v7881_v18 = vld [vmem:[#allocation70_spill] sm:$0xff]  ;;  %v7882_v12 = vld [vmem:[#allocation71_spill] sm:$0xff] }
 0x52d   :  { %4820 = vmatpush1.bf16.msra.mxu0 %v7872_v4  ;;  %4884 = vmatpush1.bf16.msra.mxu1 %v7873_v1  ;;  %v7883_v4 = vld [vmem:[#allocation72_spill] sm:$0xff]  ;;  %v7884_v1 = vld [vmem:[#allocation73_spill] sm:$0xff] }
 0x52e   :  { %4822 = vmatprep.subr.bf16.mxu0 %v7874_v19  ;;  %4886 = vmatprep.subr.bf16.mxu1 %v7875_v0  ;;  %v7885_v19 = vld [vmem:[#allocation74_spill] sm:$0xff]  ;;  %v7886_v0 = vld [vmem:[#allocation16_spill] sm:$0xff] }
 0x531   :  { %4824 = vmatpush1.bf16.msra.mxu0 %v7876_v42  ;;  %4888 = vmatpush1.bf16.msra.mxu1 %v7877_v11  ;;  %v7887_v42 = vld [vmem:[#allocation17_spill] sm:$0xff] }
 0x532   :  { %4826 = vmatprep.subr.bf16.mxu0 %v7878_v50  ;;  %4890 = vmatprep.subr.bf16.mxu1 %v7879_v28 }
 0x535   :  { %4828 = vmatpush1.bf16.msra.mxu0 %v7880_v56  ;;  %4892 = vmatpush1.bf16.msra.mxu1 %v7881_v18 }
 0x536   :  { %4830 = vmatprep.subr.bf16.mxu0 %v7882_v12  ;;  %4894 = vmatprep.subr.bf16.mxu1 %v7883_v4 }
 0x539   :  { %4832 = vmatpush1.bf16.msra.mxu0 %v7884_v1  ;;  %4896 = vmatpush1.bf16.msra.mxu1 %v7885_v19 }
 0x53a   :  { %4898 = vmatprep.subr.bf16.mxu0 %v7886_v0  ;;  %4930 = vmatprep.subr.bf16.mxu1 %v7887_v42 }
 0x5af   :  { %v1907_v11 = vpop.f32.mrb[22].mxu0  ;;  %v1978_v50 = vpop.f32.mrb[22].mxu1 }
 0x5b0   :  { %v1908_v28 = vadd.f32 %v1907_v11, %v7888_v21  ;;  %v1909_v26 = vpop.f32.mrb[23].mxu0  ;;  %v1980_v56 = vpop.f32.mrb[23].mxu1  ;;  %v1979_v19 = vadd.f32 %v1978_v50, %v7828_v63 }
 0x5b1   :  { %v1910_v18 = vadd.f32 %v1909_v26, %v6609_v5  ;;  %v1981_v1 = vadd.f32 %v1980_v56, %v7766_v38 }
 0x5b2   :  { %v3772_v43 = vmul.f32 -1.442695, %v1908_v28 }
 0x5b3   :  { %v3773_v12 = vmul.f32 -1.442695, %v1910_v18  ;;  %v3774_v4 = vmul.f32 -1.442695, %v1981_v1 }
 0x5b4   :  { %5722 = vpow2.f32 %v3772_v43 }
 0x5b5   :  { %5724 = vpow2.f32 %v3773_v12 }
 0x5b6   :  { %5726 = vpow2.f32 %v3774_v4 }
 0x5b7   :  { %5728 = vtanh.f32 %v1979_v19 }
 0x5be   :  { %v5723_v0 = vpop.eup %5722 }
 0x5bf   :  { %v5725_v30 = vpop.eup %5724  ;;  %v1986_v42 = vadd.f32 1.0, %v5723_v0 }
 0x5c0   :  { %v1992_v6 = vadd.f32 1.0, %v5725_v30  ;;  %v5727_v11 = vpop.eup %5726 }
 0x5c1   :  { %5730 = vrcp.f32 %v1986_v42  ;;  %v5729_v21 = vpop.eup %5728  ;;  %v1999_v43 = vadd.f32 1.0, %v5727_v11 }
 0x5c2   :  { %5732 = vrcp.f32 %v1992_v6 }
 0x5c3   :  { %5734 = vrcp.f32 %v1999_v43 }
 0x5cb   :  { %v5731_v26 = vpop.eup %5730 }
 0x5cc   :  { %v5733_v28 = vpop.eup %5732  ;;  %v2003_v18 = vmul.f32 %v5731_v26, %v5729_v21 }
 0x5cd   :  { %v2002_v12 = vmul.f32 %v5733_v28, %v6857_v8  ;;  %v5735_v8 = vpop.eup %5734 }
 0x5cf   :  { %v6975_v56 = vadd.f32 %v2003_v18, %v2002_v12  ;;  %v2078_v1 = vpop.f32.mrb[8].mxu0  ;;  %v2149_v50 = vpop.f32.mrb[8].mxu1 }
 0x5d0   :  { %v5545_v0 = vadd.f32 %v2078_v1, %v7768_v37  ;;  %v2080_v4 = vpop.f32.mrb[9].mxu0  ;;  %v2151_v19 = vpop.f32.mrb[9].mxu1  ;;  %v5561_v28 = vadd.f32 %v2149_v50, %v6498_v3 }
 0x5d1   :  { %v5546_v30 = vadd.f32 %v2080_v4, %v7708_v55  ;;  %5736 = vtanh.f32 %v6975_v56  ;;  %v5562_v21 = vadd.f32 %v2151_v19, %v7709_v59 }
 0x5d2   :  { %v3775_v6 = vmul.f32 -1.442695, %v5545_v0 }
 0x5d3   :  { %v3776_v42 = vmul.f32 -1.442695, %v5546_v30  ;;  %v3777_v26 = vmul.f32 -1.442695, %v5562_v21 }
 0x5d4   :  { %5738 = vpow2.f32 %v3775_v6 }
 0x5d5   :  { %5740 = vpow2.f32 %v3776_v42 }
 0x5d6   :  { %5742 = vpow2.f32 %v3777_v26 }
 0x5d7   :  { %5744 = vtanh.f32 %v5561_v28  ;;  %v7891_v28 = vld [vmem:[#allocation20_spill] sm:$0xff] }
 0x5db   :  { %v5737_v11 = vpop.eup %5736 }
 0x5dc   :  { %v6982_v18 = vmul.f32 %v5737_v11, %v5735_v8 }
 0x5de   :  { %7889 = vst [vmem:[#allocation75_spill] sm:$0xff] %v6982_v18  ;;  %v5739_v43 = vpop.eup %5738  ;;  %2246 = vmatprep.mubr.f32.mxu0 %v6982_v18  ;;  %2317 = vmatprep.mubr.f32.mxu1 %v6982_v18  ;;  %v7905_v18 = vld [vmem:[#allocation34_spill] sm:$0xff] }
 0x5df   :  { %v5741_v12 = vpop.eup %5740  ;;  %v2161_v1 = vadd.f32 1.0, %v5739_v43 }
 0x5e0   :  { %v2167_v0 = vadd.f32 1.0, %v5741_v12  ;;  %v5743_v4 = vpop.eup %5742  ;;  %v7892_v12 = vld [vmem:[#allocation21_spill] sm:$0xff] }
 0x5e1   :  { %5746 = vrcp.f32 %v2161_v1  ;;  %v5745_v19 = vpop.eup %5744  ;;  %v2174_v50 = vadd.f32 1.0, %v5743_v4  ;;  %v7893_v1 = vld [vmem:[#allocation22_spill] sm:$0xff]  ;;  %v7895_v4 = vld [vmem:[#allocation24_spill] sm:$0xff] }
 0x5e2   :  { %5748 = vrcp.f32 %v2167_v0  ;;  %v7894_v0 = vld [vmem:[#allocation23_spill] sm:$0xff] }
 0x5e3   :  { %5750 = vrcp.f32 %v2174_v50  ;;  %v7900_v50 = vld [vmem:[#allocation29_spill] sm:$0xff] }
 0x5eb   :  { %v5747_v30 = vpop.eup %5746 }
 0x5ec   :  { %v5749_v6 = vpop.eup %5748  ;;  %v2178_v42 = vmul.f32 %v5747_v30, %v5745_v19  ;;  %v7896_v19 = vld [vmem:[#allocation25_spill] sm:$0xff]  ;;  %v7897_v30 = vld [vmem:[#allocation26_spill] sm:$0xff] }
 0x5ed   :  { %v2177_v21 = vmul.f32 %v5749_v6, %v6869_v2  ;;  %v5751_v11 = vpop.eup %5750  ;;  %v7890_v2 = vld [vmem:[#allocation19_spill] sm:$0xff] }
 0x5ee   :  { %v7898_v6 = vld [vmem:[#allocation27_spill] sm:$0xff] }
 0x5ef   :  { %v6987_v8 = vadd.f32 %v2178_v42, %v2177_v21  ;;  %v7899_v42 = vld [vmem:[#allocation28_spill] sm:$0xff]  ;;  %v7901_v21 = vld [vmem:[#allocation30_spill] sm:$0xff] }
 0x5f1   :  { %5752 = vtanh.f32 %v6987_v8 }
 0x5fb   :  { %v5753_v43 = vpop.eup %5752 }
 0x5fc   :  { %v2181_v26 = vmul.f32 %v5753_v43, %v5751_v11  ;;  %v7902_v11 = vld [vmem:[#allocation31_spill] sm:$0xff]  ;;  %v7903_v43 = vld [vmem:[#allocation32_spill] sm:$0xff] }
 0x5fe   :  { %2247 = vmatmul.mubr.f32.vlgmr.msra.gmra.mrb[24].mxu0 %v2181_v26  ;;  %2318 = vmatmul.mubr.f32.vlgmr.msra.gmra.mrb[24].mxu1 %v2181_v26 }
 0x5ff   :  { %4900 = vmatpush1.bf16.msra.mxu0 %v6138_v23  ;;  %4932 = vmatpush1.bf16.msra.mxu1 %v6145_v27 }
 0x600   :  { %4902 = vmatprep.subr.bf16.mxu0 %v6149_v31  ;;  %4934 = vmatprep.subr.bf16.mxu1 %v6153_v35 }
 0x601   :  { %2417 = vmatprep.mubr.f32.mxu0 %v7650_v25  ;;  %2488 = vmatprep.mubr.f32.mxu1 %v7650_v25 }
 0x603   :  { %4904 = vmatpush1.bf16.msra.mxu0 %v6155_v36  ;;  %4936 = vmatpush1.bf16.msra.mxu1 %v6159_v39 }
 0x604   :  { %4906 = vmatprep.subr.bf16.mxu0 %v6168_v47  ;;  %4938 = vmatprep.subr.bf16.mxu1 %v6172_v48 }
 0x607   :  { %4908 = vmatpush1.bf16.msra.mxu0 %v6174_v49  ;;  %4940 = vmatpush1.bf16.msra.mxu1 %v6178_v53 }
 0x608   :  { %4910 = vmatprep.subr.bf16.mxu0 %v6187_v60  ;;  %4942 = vmatprep.subr.bf16.mxu1 %v6191_v61 }
 0x60b   :  { %4912 = vmatpush1.bf16.msra.mxu0 %v6193_v62  ;;  %4944 = vmatpush1.bf16.msra.mxu1 %v6197_v7 }
 0x60c   :  { %4914 = vmatprep.subr.bf16.mxu0 %v6206_v14  ;;  %4946 = vmatprep.subr.bf16.mxu1 %v6210_v15 }
 0x60f   :  { %4916 = vmatpush1.bf16.msra.mxu0 %v6212_v16  ;;  %4948 = vmatpush1.bf16.msra.mxu1 %v6216_v20 }
 0x610   :  { %4918 = vmatprep.subr.bf16.mxu0 %v6225_v32  ;;  %4950 = vmatprep.subr.bf16.mxu1 %v6229_v33 }
 0x613   :  { %4920 = vmatpush1.bf16.msra.mxu0 %v6231_v34  ;;  %4952 = vmatpush1.bf16.msra.mxu1 %v6235_v41 }
 0x614   :  { %4922 = vmatprep.subr.bf16.mxu0 %v6244_v51  ;;  %4954 = vmatprep.subr.bf16.mxu1 %v6248_v52 }
 0x617   :  { %4924 = vmatpush1.bf16.msra.mxu0 %v6250_v54  ;;  %4956 = vmatpush1.bf16.msra.mxu1 %v6254_v58 }
 0x618   :  { %4926 = vmatprep.subr.bf16.mxu0 %v6263_v10  ;;  %4958 = vmatprep.subr.bf16.mxu1 %v6267_v13 }
 0x61b   :  { %4928 = vmatpush1.bf16.msra.mxu0 %v6269_v17  ;;  %4960 = vmatpush1.bf16.msra.mxu1 %v6273_v24 }
 0x61c   :  { %4962 = vmatprep.subr.bf16.mxu0 %v6277_v29  ;;  %5026 = vmatprep.subr.bf16.mxu1 %v6281_v40 }
 0x61e   :  { %2418 = vmatmul.mubr.f32.vlgmr.msra.gmra.mrb[10].mxu0 %v2181_v26  ;;  %2489 = vmatmul.mubr.f32.vlgmr.msra.gmra.mrb[10].mxu1 %v2181_v26  ;;  %v7904_v26 = vld [vmem:[#allocation33_spill] sm:$0xff] }
 0x61f   :  { %4964 = vmatpush1.bf16.msra.mxu0 %v6285_v44  ;;  %5028 = vmatpush1.bf16.msra.mxu1 %v6289_v45 }
 0x620   :  { %4966 = vmatprep.subr.bf16.mxu0 %v6291_v46  ;;  %5030 = vmatprep.subr.bf16.mxu1 %v6295_v57 }
 0x623   :  { %4968 = vmatpush1.bf16.msra.mxu0 %v6301_v9  ;;  %5032 = vmatpush1.bf16.msra.mxu1 %v7651_v22 }
 0x624   :  { %4970 = vmatprep.subr.bf16.mxu0 %v7890_v2  ;;  %5034 = vmatprep.subr.bf16.mxu1 %v7891_v28 }
 0x627   :  { %4972 = vmatpush1.bf16.msra.mxu0 %v7892_v12  ;;  %5036 = vmatpush1.bf16.msra.mxu1 %v7893_v1 }
 0x628   :  { %4974 = vmatprep.subr.bf16.mxu0 %v7894_v0  ;;  %5038 = vmatprep.subr.bf16.mxu1 %v7895_v4  ;;  %v7906_v4 = vld [vmem:[#allocation35_spill] sm:$0xff]  ;;  %v7948_v0 = vld [vmem:[#allocation18_spill] sm:$0xff] }
 0x62b   :  { %4976 = vmatpush1.bf16.msra.mxu0 %v7896_v19  ;;  %5040 = vmatpush1.bf16.msra.mxu1 %v7897_v30  ;;  %v7907_v19 = vld [vmem:[#allocation36_spill] sm:$0xff]  ;;  %v7908_v30 = vld [vmem:[#allocation37_spill] sm:$0xff] }
 0x62c   :  { %4978 = vmatprep.subr.bf16.mxu0 %v7898_v6  ;;  %5042 = vmatprep.subr.bf16.mxu1 %v7899_v42  ;;  %v7909_v6 = vld [vmem:[#allocation38_spill] sm:$0xff]  ;;  %v7910_v42 = vld [vmem:[#allocation39_spill] sm:$0xff] }
 0x62f   :  { %4980 = vmatpush1.bf16.msra.mxu0 %v7900_v50  ;;  %5044 = vmatpush1.bf16.msra.mxu1 %v7901_v21  ;;  %v7911_v50 = vld [vmem:[#allocation40_spill] sm:$0xff]  ;;  %v7912_v21 = vld [vmem:[#allocation41_spill] sm:$0xff] }
 0x630   :  { %4982 = vmatprep.subr.bf16.mxu0 %v7902_v11  ;;  %5046 = vmatprep.subr.bf16.mxu1 %v7903_v43  ;;  %v7913_v11 = vld [vmem:[#allocation42_spill] sm:$0xff]  ;;  %v7914_v43 = vld [vmem:[#allocation43_spill] sm:$0xff] }
 0x633   :  { %4984 = vmatpush1.bf16.msra.mxu0 %v7904_v26  ;;  %5048 = vmatpush1.bf16.msra.mxu1 %v7905_v18  ;;  %v7915_v26 = vld [vmem:[#allocation44_spill] sm:$0xff]  ;;  %v7916_v18 = vld [vmem:[#allocation45_spill] sm:$0xff] }
 0x634   :  { %4986 = vmatprep.subr.bf16.mxu0 %v7906_v4  ;;  %5050 = vmatprep.subr.bf16.mxu1 %v7907_v19  ;;  %v7917_v4 = vld [vmem:[#allocation46_spill] sm:$0xff]  ;;  %v7918_v19 = vld [vmem:[#allocation47_spill] sm:$0xff] }
 0x637   :  { %4988 = vmatpush1.bf16.msra.mxu0 %v7908_v30  ;;  %5052 = vmatpush1.bf16.msra.mxu1 %v7909_v6  ;;  %v7919_v30 = vld [vmem:[#allocation48_spill] sm:$0xff]  ;;  %v7920_v6 = vld [vmem:[#allocation49_spill] sm:$0xff] }
 0x638   :  { %4990 = vmatprep.subr.bf16.mxu0 %v7910_v42  ;;  %5054 = vmatprep.subr.bf16.mxu1 %v7911_v50  ;;  %v7921_v42 = vld [vmem:[#allocation50_spill] sm:$0xff]  ;;  %v7922_v50 = vld [vmem:[#allocation51_spill] sm:$0xff] }
 0x63b   :  { %4992 = vmatpush1.bf16.msra.mxu0 %v7912_v21  ;;  %5056 = vmatpush1.bf16.msra.mxu1 %v7913_v11  ;;  %v7923_v21 = vld [vmem:[#allocation52_spill] sm:$0xff]  ;;  %v7924_v11 = vld [vmem:[#allocation53_spill] sm:$0xff] }
 0x63c   :  { %4994 = vmatprep.subr.bf16.mxu0 %v7914_v43  ;;  %5058 = vmatprep.subr.bf16.mxu1 %v7915_v26  ;;  %v7925_v43 = vld [vmem:[#allocation54_spill] sm:$0xff]  ;;  %v7926_v26 = vld [vmem:[#allocation55_spill] sm:$0xff] }
 0x63f   :  { %4996 = vmatpush1.bf16.msra.mxu0 %v7916_v18  ;;  %5060 = vmatpush1.bf16.msra.mxu1 %v7917_v4  ;;  %v7927_v18 = vld [vmem:[#allocation56_spill] sm:$0xff]  ;;  %v7928_v4 = vld [vmem:[#allocation57_spill] sm:$0xff] }
 0x640   :  { %4998 = vmatprep.subr.bf16.mxu0 %v7918_v19  ;;  %5062 = vmatprep.subr.bf16.mxu1 %v7919_v30  ;;  %v7929_v19 = vld [vmem:[#allocation58_spill] sm:$0xff]  ;;  %v7930_v30 = vld [vmem:[#allocation59_spill] sm:$0xff] }
 0x643   :  { %5000 = vmatpush1.bf16.msra.mxu0 %v7920_v6  ;;  %5064 = vmatpush1.bf16.msra.mxu1 %v7921_v42  ;;  %v7931_v6 = vld [vmem:[#allocation60_spill] sm:$0xff]  ;;  %v7932_v42 = vld [vmem:[#allocation61_spill] sm:$0xff] }
 0x644   :  { %5002 = vmatprep.subr.bf16.mxu0 %v7922_v50  ;;  %5066 = vmatprep.subr.bf16.mxu1 %v7923_v21  ;;  %v7933_v50 = vld [vmem:[#allocation62_spill] sm:$0xff]  ;;  %v7934_v21 = vld [vmem:[#allocation63_spill] sm:$0xff] }
 0x647   :  { %5004 = vmatpush1.bf16.msra.mxu0 %v7924_v11  ;;  %5068 = vmatpush1.bf16.msra.mxu1 %v7925_v43  ;;  %v7935_v11 = vld [vmem:[#allocation64_spill] sm:$0xff]  ;;  %v7936_v43 = vld [vmem:[#allocation65_spill] sm:$0xff] }
 0x648   :  { %5006 = vmatprep.subr.bf16.mxu0 %v7926_v26  ;;  %5070 = vmatprep.subr.bf16.mxu1 %v7927_v18  ;;  %v7937_v26 = vld [vmem:[#allocation66_spill] sm:$0xff]  ;;  %v7938_v18 = vld [vmem:[#allocation67_spill] sm:$0xff] }
 0x64b   :  { %5008 = vmatpush1.bf16.msra.mxu0 %v7928_v4  ;;  %5072 = vmatpush1.bf16.msra.mxu1 %v7929_v19  ;;  %v7939_v4 = vld [vmem:[#allocation68_spill] sm:$0xff]  ;;  %v7940_v19 = vld [vmem:[#allocation69_spill] sm:$0xff] }
 0x64c   :  { %5010 = vmatprep.subr.bf16.mxu0 %v7930_v30  ;;  %5074 = vmatprep.subr.bf16.mxu1 %v7931_v6  ;;  %v7941_v30 = vld [vmem:[#allocation70_spill] sm:$0xff]  ;;  %v7942_v6 = vld [vmem:[#allocation71_spill] sm:$0xff] }
 0x64f   :  { %5012 = vmatpush1.bf16.msra.mxu0 %v7932_v42  ;;  %5076 = vmatpush1.bf16.msra.mxu1 %v7933_v50  ;;  %v7943_v42 = vld [vmem:[#allocation72_spill] sm:$0xff]  ;;  %v7944_v50 = vld [vmem:[#allocation73_spill] sm:$0xff] }
 0x650   :  { %5014 = vmatprep.subr.bf16.mxu0 %v7934_v21  ;;  %5078 = vmatprep.subr.bf16.mxu1 %v7935_v11  ;;  %v7945_v21 = vld [vmem:[#allocation74_spill] sm:$0xff]  ;;  %v7946_v11 = vld [vmem:[#allocation16_spill] sm:$0xff] }
 0x653   :  { %5016 = vmatpush1.bf16.msra.mxu0 %v7936_v43  ;;  %5080 = vmatpush1.bf16.msra.mxu1 %v7937_v26  ;;  %v7947_v43 = vld [vmem:[#allocation17_spill] sm:$0xff] }
 0x654   :  { %5018 = vmatprep.subr.bf16.mxu0 %v7938_v18  ;;  %5082 = vmatprep.subr.bf16.mxu1 %v7939_v4 }
 0x657   :  { %5020 = vmatpush1.bf16.msra.mxu0 %v7940_v19  ;;  %5084 = vmatpush1.bf16.msra.mxu1 %v7941_v30 }
 0x658   :  { %5022 = vmatprep.subr.bf16.mxu0 %v7942_v6  ;;  %5086 = vmatprep.subr.bf16.mxu1 %v7943_v42 }
 0x65b   :  { %5024 = vmatpush1.bf16.msra.mxu0 %v7944_v50  ;;  %5088 = vmatpush1.bf16.msra.mxu1 %v7945_v21 }
 0x65c   :  { %5090 = vmatprep.subr.bf16.mxu0 %v7946_v11  ;;  %5122 = vmatprep.subr.bf16.mxu1 %v7947_v43 }
 0x6d1   :  { %v2248_v26 = vpop.f32.mrb[24].mxu0  ;;  %v2319_v18 = vpop.f32.mrb[24].mxu1 }
 0x6d2   :  { %v2249_v4 = vadd.f32 %v2248_v26, %v7948_v0  ;;  %v2250_v1 = vpop.f32.mrb[25].mxu0  ;;  %v2321_v19 = vpop.f32.mrb[25].mxu1  ;;  %v2320_v21 = vadd.f32 %v2319_v18, %v7828_v63 }
 0x6d3   :  { %v2251_v30 = vadd.f32 %v2250_v1, %v6609_v5  ;;  %v2322_v50 = vadd.f32 %v2321_v19, %v7766_v38 }
 0x6d4   :  { %v3778_v12 = vmul.f32 -1.442695, %v2249_v4 }
 0x6d5   :  { %v3779_v6 = vmul.f32 -1.442695, %v2251_v30  ;;  %v3780_v42 = vmul.f32 -1.442695, %v2322_v50 }
 0x6d6   :  { %5754 = vpow2.f32 %v3778_v12 }
 0x6d7   :  { %5756 = vpow2.f32 %v3779_v6 }
 0x6d8   :  { %5758 = vpow2.f32 %v3780_v42 }
 0x6d9   :  { %5760 = vtanh.f32 %v2320_v21 }
 0x6e0   :  { %v5755_v11 = vpop.eup %5754 }
 0x6e1   :  { %v5757_v28 = vpop.eup %5756  ;;  %v2327_v43 = vadd.f32 1.0, %v5755_v11 }
 0x6e2   :  { %v2333_v2 = vadd.f32 1.0, %v5757_v28  ;;  %v5759_v26 = vpop.eup %5758 }
 0x6e3   :  { %5762 = vrcp.f32 %v2327_v43  ;;  %v5761_v0 = vpop.eup %5760  ;;  %v2340_v12 = vadd.f32 1.0, %v5759_v26 }
 0x6e4   :  { %5764 = vrcp.f32 %v2333_v2 }
 0x6e5   :  { %5766 = vrcp.f32 %v2340_v12 }
 0x6ed   :  { %v5763_v1 = vpop.eup %5762 }
 0x6ee   :  { %v5765_v4 = vpop.eup %5764  ;;  %v2344_v30 = vmul.f32 %v5763_v1, %v5761_v0 }
 0x6ef   :  { %v2343_v6 = vmul.f32 %v5765_v4, %v6975_v56  ;;  %v5767_v56 = vpop.eup %5766 }
 0x6f1   :  { %v7093_v19 = vadd.f32 %v2344_v30, %v2343_v6  ;;  %v2419_v50 = vpop.f32.mrb[10].mxu0  ;;  %v2490_v18 = vpop.f32.mrb[10].mxu1 }
 0x6f2   :  { %v5547_v11 = vadd.f32 %v2419_v50, %v7768_v37  ;;  %v2421_v42 = vpop.f32.mrb[11].mxu0  ;;  %v2492_v21 = vpop.f32.mrb[11].mxu1  ;;  %v5563_v4 = vadd.f32 %v2490_v18, %v6498_v3 }
 0x6f3   :  { %v5548_v28 = vadd.f32 %v2421_v42, %v7708_v55  ;;  %5768 = vtanh.f32 %v7093_v19  ;;  %v5564_v0 = vadd.f32 %v2492_v21, %v7709_v59 }
 0x6f4   :  { %v3781_v2 = vmul.f32 -1.442695, %v5547_v11 }
 0x6f5   :  { %v3782_v43 = vmul.f32 -1.442695, %v5548_v28  ;;  %v3783_v1 = vmul.f32 -1.442695, %v5564_v0 }
 0x6f6   :  { %5770 = vpow2.f32 %v3781_v2 }
 0x6f7   :  { %5772 = vpow2.f32 %v3782_v43 }
 0x6f8   :  { %5774 = vpow2.f32 %v3783_v1 }
 0x6f9   :  { %5776 = vtanh.f32 %v5563_v4  ;;  %v7951_v4 = vld [vmem:[#allocation20_spill] sm:$0xff] }
 0x6fd   :  { %v5769_v26 = vpop.eup %5768 }
 0x6fe   :  { %v7100_v30 = vmul.f32 %v5769_v26, %v5767_v56 }
 0x700   :  { %7949 = vst [vmem:[#allocation14_spill] sm:$0xff] %v7100_v30  ;;  %v5771_v12 = vpop.eup %5770  ;;  %2587 = vmatprep.mubr.f32.mxu0 %v7100_v30  ;;  %2658 = vmatprep.mubr.f32.mxu1 %v7100_v30  ;;  %v7965_v30 = vld [vmem:[#allocation34_spill] sm:$0xff] }
 0x701   :  { %v5773_v6 = vpop.eup %5772  ;;  %v2502_v50 = vadd.f32 1.0, %v5771_v12 }
 0x702   :  { %v2508_v11 = vadd.f32 1.0, %v5773_v6  ;;  %v5775_v42 = vpop.eup %5774  ;;  %v7952_v6 = vld [vmem:[#allocation21_spill] sm:$0xff] }
 0x703   :  { %5778 = vrcp.f32 %v2502_v50  ;;  %v5777_v21 = vpop.eup %5776  ;;  %v2515_v18 = vadd.f32 1.0, %v5775_v42  ;;  %v7953_v50 = vld [vmem:[#allocation22_spill] sm:$0xff]  ;;  %v7955_v42 = vld [vmem:[#allocation24_spill] sm:$0xff] }
 0x704   :  { %5780 = vrcp.f32 %v2508_v11  ;;  %v7954_v11 = vld [vmem:[#allocation23_spill] sm:$0xff] }
 0x705   :  { %5782 = vrcp.f32 %v2515_v18  ;;  %v7960_v18 = vld [vmem:[#allocation29_spill] sm:$0xff] }
 0x70d   :  { %v5779_v28 = vpop.eup %5778 }
 0x70e   :  { %v5781_v2 = vpop.eup %5780  ;;  %v2519_v43 = vmul.f32 %v5779_v28, %v5777_v21  ;;  %v7956_v21 = vld [vmem:[#allocation25_spill] sm:$0xff]  ;;  %v7957_v28 = vld [vmem:[#allocation26_spill] sm:$0xff] }
 0x70f   :  { %v2518_v0 = vmul.f32 %v5781_v2, %v6987_v8  ;;  %v5783_v26 = vpop.eup %5782  ;;  %v7950_v8 = vld [vmem:[#allocation19_spill] sm:$0xff] }
 0x710   :  { %v7958_v2 = vld [vmem:[#allocation27_spill] sm:$0xff] }
 0x711   :  { %v7105_v56 = vadd.f32 %v2519_v43, %v2518_v0  ;;  %v7959_v43 = vld [vmem:[#allocation28_spill] sm:$0xff]  ;;  %v7961_v0 = vld [vmem:[#allocation30_spill] sm:$0xff] }
 0x713   :  { %5784 = vtanh.f32 %v7105_v56 }
 0x71d   :  { %v5785_v12 = vpop.eup %5784 }
 0x71e   :  { %v2522_v1 = vmul.f32 %v5785_v12, %v5783_v26  ;;  %v7962_v26 = vld [vmem:[#allocation31_spill] sm:$0xff]  ;;  %v7963_v12 = vld [vmem:[#allocation32_spill] sm:$0xff] }
 0x720   :  { %2588 = vmatmul.mubr.f32.vlgmr.msra.gmra.mrb[26].mxu0 %v2522_v1  ;;  %2659 = vmatmul.mubr.f32.vlgmr.msra.gmra.mrb[26].mxu1 %v2522_v1 }
 0x721   :  { %5092 = vmatpush1.bf16.msra.mxu0 %v6138_v23  ;;  %5124 = vmatpush1.bf16.msra.mxu1 %v6145_v27 }
 0x722   :  { %5094 = vmatprep.subr.bf16.mxu0 %v6149_v31  ;;  %5126 = vmatprep.subr.bf16.mxu1 %v6153_v35 }
 0x723   :  { %2758 = vmatprep.mubr.f32.mxu0 %v7650_v25  ;;  %2829 = vmatprep.mubr.f32.mxu1 %v7650_v25 }
 0x725   :  { %5096 = vmatpush1.bf16.msra.mxu0 %v6155_v36  ;;  %5128 = vmatpush1.bf16.msra.mxu1 %v6159_v39 }
 0x726   :  { %5098 = vmatprep.subr.bf16.mxu0 %v6168_v47  ;;  %5130 = vmatprep.subr.bf16.mxu1 %v6172_v48 }
 0x729   :  { %5100 = vmatpush1.bf16.msra.mxu0 %v6174_v49  ;;  %5132 = vmatpush1.bf16.msra.mxu1 %v6178_v53 }
 0x72a   :  { %5102 = vmatprep.subr.bf16.mxu0 %v6187_v60  ;;  %5134 = vmatprep.subr.bf16.mxu1 %v6191_v61 }
 0x72d   :  { %5104 = vmatpush1.bf16.msra.mxu0 %v6193_v62  ;;  %5136 = vmatpush1.bf16.msra.mxu1 %v6197_v7 }
 0x72e   :  { %5106 = vmatprep.subr.bf16.mxu0 %v6206_v14  ;;  %5138 = vmatprep.subr.bf16.mxu1 %v6210_v15 }
 0x731   :  { %5108 = vmatpush1.bf16.msra.mxu0 %v6212_v16  ;;  %5140 = vmatpush1.bf16.msra.mxu1 %v6216_v20 }
 0x732   :  { %5110 = vmatprep.subr.bf16.mxu0 %v6225_v32  ;;  %5142 = vmatprep.subr.bf16.mxu1 %v6229_v33 }
 0x735   :  { %5112 = vmatpush1.bf16.msra.mxu0 %v6231_v34  ;;  %5144 = vmatpush1.bf16.msra.mxu1 %v6235_v41 }
 0x736   :  { %5114 = vmatprep.subr.bf16.mxu0 %v6244_v51  ;;  %5146 = vmatprep.subr.bf16.mxu1 %v6248_v52 }
 0x739   :  { %5116 = vmatpush1.bf16.msra.mxu0 %v6250_v54  ;;  %5148 = vmatpush1.bf16.msra.mxu1 %v6254_v58 }
 0x73a   :  { %5118 = vmatprep.subr.bf16.mxu0 %v6263_v10  ;;  %5150 = vmatprep.subr.bf16.mxu1 %v6267_v13 }
 0x73d   :  { %5120 = vmatpush1.bf16.msra.mxu0 %v6269_v17  ;;  %5152 = vmatpush1.bf16.msra.mxu1 %v6273_v24 }
 0x73e   :  { %5154 = vmatprep.subr.bf16.mxu0 %v6277_v29  ;;  %5218 = vmatprep.subr.bf16.mxu1 %v6281_v40 }
 0x740   :  { %2759 = vmatmul.mubr.f32.vlgmr.msra.gmra.mrb[12].mxu0 %v2522_v1  ;;  %2830 = vmatmul.mubr.f32.vlgmr.msra.gmra.mrb[12].mxu1 %v2522_v1  ;;  %v7964_v1 = vld [vmem:[#allocation33_spill] sm:$0xff] }
 0x741   :  { %5156 = vmatpush1.bf16.msra.mxu0 %v6285_v44  ;;  %5220 = vmatpush1.bf16.msra.mxu1 %v6289_v45 }
 0x742   :  { %5158 = vmatprep.subr.bf16.mxu0 %v6291_v46  ;;  %5222 = vmatprep.subr.bf16.mxu1 %v6295_v57 }
 0x745   :  { %5160 = vmatpush1.bf16.msra.mxu0 %v6301_v9  ;;  %5224 = vmatpush1.bf16.msra.mxu1 %v7651_v22 }
 0x746   :  { %5162 = vmatprep.subr.bf16.mxu0 %v7950_v8  ;;  %5226 = vmatprep.subr.bf16.mxu1 %v7951_v4 }
 0x749   :  { %5164 = vmatpush1.bf16.msra.mxu0 %v7952_v6  ;;  %5228 = vmatpush1.bf16.msra.mxu1 %v7953_v50 }
 0x74a   :  { %5166 = vmatprep.subr.bf16.mxu0 %v7954_v11  ;;  %5230 = vmatprep.subr.bf16.mxu1 %v7955_v42  ;;  %v7966_v42 = vld [vmem:[#allocation35_spill] sm:$0xff]  ;;  %v8008_v11 = vld [vmem:[#allocation18_spill] sm:$0xff] }
 0x74d   :  { %5168 = vmatpush1.bf16.msra.mxu0 %v7956_v21  ;;  %5232 = vmatpush1.bf16.msra.mxu1 %v7957_v28  ;;  %v7967_v21 = vld [vmem:[#allocation36_spill] sm:$0xff]  ;;  %v7968_v28 = vld [vmem:[#allocation37_spill] sm:$0xff] }
 0x74e   :  { %5170 = vmatprep.subr.bf16.mxu0 %v7958_v2  ;;  %5234 = vmatprep.subr.bf16.mxu1 %v7959_v43  ;;  %v7969_v2 = vld [vmem:[#allocation38_spill] sm:$0xff]  ;;  %v7970_v43 = vld [vmem:[#allocation39_spill] sm:$0xff] }
 0x751   :  { %5172 = vmatpush1.bf16.msra.mxu0 %v7960_v18  ;;  %5236 = vmatpush1.bf16.msra.mxu1 %v7961_v0  ;;  %v7971_v18 = vld [vmem:[#allocation40_spill] sm:$0xff]  ;;  %v7972_v0 = vld [vmem:[#allocation41_spill] sm:$0xff] }
 0x752   :  { %5174 = vmatprep.subr.bf16.mxu0 %v7962_v26  ;;  %5238 = vmatprep.subr.bf16.mxu1 %v7963_v12  ;;  %v7973_v26 = vld [vmem:[#allocation42_spill] sm:$0xff]  ;;  %v7974_v12 = vld [vmem:[#allocation43_spill] sm:$0xff] }
 0x755   :  { %5176 = vmatpush1.bf16.msra.mxu0 %v7964_v1  ;;  %5240 = vmatpush1.bf16.msra.mxu1 %v7965_v30  ;;  %v7975_v1 = vld [vmem:[#allocation44_spill] sm:$0xff]  ;;  %v7976_v30 = vld [vmem:[#allocation45_spill] sm:$0xff] }
 0x756   :  { %5178 = vmatprep.subr.bf16.mxu0 %v7966_v42  ;;  %5242 = vmatprep.subr.bf16.mxu1 %v7967_v21  ;;  %v7977_v42 = vld [vmem:[#allocation46_spill] sm:$0xff]  ;;  %v7978_v21 = vld [vmem:[#allocation47_spill] sm:$0xff] }
 0x759   :  { %5180 = vmatpush1.bf16.msra.mxu0 %v7968_v28  ;;  %5244 = vmatpush1.bf16.msra.mxu1 %v7969_v2  ;;  %v7979_v28 = vld [vmem:[#allocation48_spill] sm:$0xff]  ;;  %v7980_v2 = vld [vmem:[#allocation49_spill] sm:$0xff] }
 0x75a   :  { %5182 = vmatprep.subr.bf16.mxu0 %v7970_v43  ;;  %5246 = vmatprep.subr.bf16.mxu1 %v7971_v18  ;;  %v7981_v43 = vld [vmem:[#allocation50_spill] sm:$0xff]  ;;  %v7982_v18 = vld [vmem:[#allocation51_spill] sm:$0xff] }
 0x75d   :  { %5184 = vmatpush1.bf16.msra.mxu0 %v7972_v0  ;;  %5248 = vmatpush1.bf16.msra.mxu1 %v7973_v26  ;;  %v7983_v0 = vld [vmem:[#allocation52_spill] sm:$0xff]  ;;  %v7984_v26 = vld [vmem:[#allocation53_spill] sm:$0xff] }
 0x75e   :  { %5186 = vmatprep.subr.bf16.mxu0 %v7974_v12  ;;  %5250 = vmatprep.subr.bf16.mxu1 %v7975_v1  ;;  %v7985_v12 = vld [vmem:[#allocation54_spill] sm:$0xff]  ;;  %v7986_v1 = vld [vmem:[#allocation55_spill] sm:$0xff] }
 0x761   :  { %5188 = vmatpush1.bf16.msra.mxu0 %v7976_v30  ;;  %5252 = vmatpush1.bf16.msra.mxu1 %v7977_v42  ;;  %v7987_v30 = vld [vmem:[#allocation56_spill] sm:$0xff]  ;;  %v7988_v42 = vld [vmem:[#allocation57_spill] sm:$0xff] }
 0x762   :  { %5190 = vmatprep.subr.bf16.mxu0 %v7978_v21  ;;  %5254 = vmatprep.subr.bf16.mxu1 %v7979_v28  ;;  %v7989_v21 = vld [vmem:[#allocation58_spill] sm:$0xff]  ;;  %v7990_v28 = vld [vmem:[#allocation59_spill] sm:$0xff] }
 0x765   :  { %5192 = vmatpush1.bf16.msra.mxu0 %v7980_v2  ;;  %5256 = vmatpush1.bf16.msra.mxu1 %v7981_v43  ;;  %v7991_v2 = vld [vmem:[#allocation60_spill] sm:$0xff]  ;;  %v7992_v43 = vld [vmem:[#allocation61_spill] sm:$0xff] }
 0x766   :  { %5194 = vmatprep.subr.bf16.mxu0 %v7982_v18  ;;  %5258 = vmatprep.subr.bf16.mxu1 %v7983_v0  ;;  %v7993_v18 = vld [vmem:[#allocation62_spill] sm:$0xff]  ;;  %v7994_v0 = vld [vmem:[#allocation63_spill] sm:$0xff] }
 0x769   :  { %5196 = vmatpush1.bf16.msra.mxu0 %v7984_v26  ;;  %5260 = vmatpush1.bf16.msra.mxu1 %v7985_v12  ;;  %v7995_v26 = vld [vmem:[#allocation64_spill] sm:$0xff]  ;;  %v7996_v12 = vld [vmem:[#allocation65_spill] sm:$0xff] }
 0x76a   :  { %5198 = vmatprep.subr.bf16.mxu0 %v7986_v1  ;;  %5262 = vmatprep.subr.bf16.mxu1 %v7987_v30  ;;  %v7997_v1 = vld [vmem:[#allocation66_spill] sm:$0xff]  ;;  %v7998_v30 = vld [vmem:[#allocation67_spill] sm:$0xff] }
 0x76d   :  { %5200 = vmatpush1.bf16.msra.mxu0 %v7988_v42  ;;  %5264 = vmatpush1.bf16.msra.mxu1 %v7989_v21  ;;  %v7999_v42 = vld [vmem:[#allocation68_spill] sm:$0xff]  ;;  %v8000_v21 = vld [vmem:[#allocation69_spill] sm:$0xff] }
 0x76e   :  { %5202 = vmatprep.subr.bf16.mxu0 %v7990_v28  ;;  %5266 = vmatprep.subr.bf16.mxu1 %v7991_v2  ;;  %v8001_v28 = vld [vmem:[#allocation70_spill] sm:$0xff]  ;;  %v8002_v2 = vld [vmem:[#allocation71_spill] sm:$0xff] }
 0x771   :  { %5204 = vmatpush1.bf16.msra.mxu0 %v7992_v43  ;;  %5268 = vmatpush1.bf16.msra.mxu1 %v7993_v18  ;;  %v8003_v43 = vld [vmem:[#allocation72_spill] sm:$0xff]  ;;  %v8004_v18 = vld [vmem:[#allocation73_spill] sm:$0xff] }
 0x772   :  { %5206 = vmatprep.subr.bf16.mxu0 %v7994_v0  ;;  %5270 = vmatprep.subr.bf16.mxu1 %v7995_v26  ;;  %v8005_v0 = vld [vmem:[#allocation74_spill] sm:$0xff]  ;;  %v8006_v26 = vld [vmem:[#allocation16_spill] sm:$0xff] }
 0x775   :  { %5208 = vmatpush1.bf16.msra.mxu0 %v7996_v12  ;;  %5272 = vmatpush1.bf16.msra.mxu1 %v7997_v1  ;;  %v8007_v12 = vld [vmem:[#allocation17_spill] sm:$0xff] }
 0x776   :  { %5210 = vmatprep.subr.bf16.mxu0 %v7998_v30  ;;  %5274 = vmatprep.subr.bf16.mxu1 %v7999_v42 }
 0x779   :  { %5212 = vmatpush1.bf16.msra.mxu0 %v8000_v21  ;;  %5276 = vmatpush1.bf16.msra.mxu1 %v8001_v28 }
 0x77a   :  { %5214 = vmatprep.subr.bf16.mxu0 %v8002_v2  ;;  %5278 = vmatprep.subr.bf16.mxu1 %v8003_v43 }
 0x77d   :  { %5216 = vmatpush1.bf16.msra.mxu0 %v8004_v18  ;;  %5280 = vmatpush1.bf16.msra.mxu1 %v8005_v0 }
 0x77e   :  { %5282 = vmatprep.subr.bf16.mxu0 %v8006_v26  ;;  %5314 = vmatprep.subr.bf16.mxu1 %v8007_v12 }
 0x7f3   :  { %v2589_v1 = vpop.f32.mrb[26].mxu0  ;;  %v2660_v30 = vpop.f32.mrb[26].mxu1 }
 0x7f4   :  { %v2590_v42 = vadd.f32 %v2589_v1, %v8008_v11  ;;  %v2591_v50 = vpop.f32.mrb[27].mxu0  ;;  %v2662_v21 = vpop.f32.mrb[27].mxu1  ;;  %v2661_v0 = vadd.f32 %v2660_v30, %v7828_v63 }
 0x7f5   :  { %v2592_v28 = vadd.f32 %v2591_v50, %v6609_v5  ;;  %v2663_v18 = vadd.f32 %v2662_v21, %v7766_v38 }
 0x7f6   :  { %v3784_v6 = vmul.f32 -1.442695, %v2590_v42 }
 0x7f7   :  { %v3785_v2 = vmul.f32 -1.442695, %v2592_v28  ;;  %v3786_v43 = vmul.f32 -1.442695, %v2663_v18 }
 0x7f8   :  { %5786 = vpow2.f32 %v3784_v6 }
 0x7f9   :  { %5788 = vpow2.f32 %v3785_v2 }
 0x7fa   :  { %5790 = vpow2.f32 %v3786_v43 }
 0x7fb   :  { %5792 = vtanh.f32 %v2661_v0 }
 0x802   :  { %v5787_v26 = vpop.eup %5786 }
 0x803   :  { %v5789_v4 = vpop.eup %5788  ;;  %v2668_v12 = vadd.f32 1.0, %v5787_v26 }
 0x804   :  { %v2674_v8 = vadd.f32 1.0, %v5789_v4  ;;  %v5791_v1 = vpop.eup %5790 }
 0x805   :  { %5794 = vrcp.f32 %v2668_v12  ;;  %v5793_v11 = vpop.eup %5792  ;;  %v2681_v6 = vadd.f32 1.0, %v5791_v1 }
 0x806   :  { %5796 = vrcp.f32 %v2674_v8 }
 0x807   :  { %5798 = vrcp.f32 %v2681_v6 }
 0x80f   :  { %v5795_v50 = vpop.eup %5794 }
 0x810   :  { %v5797_v42 = vpop.eup %5796  ;;  %v2685_v28 = vmul.f32 %v5795_v50, %v5793_v11 }
 0x811   :  { %v2684_v2 = vmul.f32 %v5797_v42, %v7093_v19  ;;  %v5799_v19 = vpop.eup %5798 }
 0x813   :  { %v7211_v21 = vadd.f32 %v2685_v28, %v2684_v2  ;;  %v2760_v18 = vpop.f32.mrb[12].mxu0  ;;  %v2831_v30 = vpop.f32.mrb[12].mxu1 }
 0x814   :  { %v5549_v26 = vadd.f32 %v2760_v18, %v7768_v37  ;;  %v2762_v43 = vpop.f32.mrb[13].mxu0  ;;  %v2833_v0 = vpop.f32.mrb[13].mxu1  ;;  %v5565_v42 = vadd.f32 %v2831_v30, %v6498_v3 }
 0x815   :  { %v5550_v4 = vadd.f32 %v2762_v43, %v7708_v55  ;;  %5800 = vtanh.f32 %v7211_v21  ;;  %v5566_v11 = vadd.f32 %v2833_v0, %v7709_v59 }
 0x816   :  { %v3787_v8 = vmul.f32 -1.442695, %v5549_v26 }
 0x817   :  { %v3788_v12 = vmul.f32 -1.442695, %v5550_v4  ;;  %v3789_v50 = vmul.f32 -1.442695, %v5566_v11 }
 0x818   :  { %5802 = vpow2.f32 %v3787_v8 }
 0x819   :  { %5804 = vpow2.f32 %v3788_v12 }
 0x81a   :  { %5806 = vpow2.f32 %v3789_v50 }
 0x81b   :  { %5808 = vtanh.f32 %v5565_v42  ;;  %v8049_v42 = vld [vmem:[#allocation59_spill] sm:$0xff] }
 0x81f   :  { %v5801_v1 = vpop.eup %5800 }
 0x820   :  { %v7218_v28 = vmul.f32 %v5801_v1, %v5799_v19 }
 0x822   :  { %v5803_v6 = vpop.eup %5802  ;;  %2928 = vmatprep.mubr.f32.mxu0 %v7218_v28  ;;  %2999 = vmatprep.mubr.f32.mxu1 %v7218_v28 }
 0x823   :  { %v5805_v2 = vpop.eup %5804  ;;  %v2843_v18 = vadd.f32 1.0, %v5803_v6 }
 0x824   :  { %v2849_v26 = vadd.f32 1.0, %v5805_v2  ;;  %v5807_v43 = vpop.eup %5806  ;;  %v8050_v2 = vld [vmem:[#allocation60_spill] sm:$0xff] }
 0x825   :  { %5810 = vrcp.f32 %v2843_v18  ;;  %v5809_v0 = vpop.eup %5808  ;;  %v2856_v30 = vadd.f32 1.0, %v5807_v43  ;;  %v8051_v18 = vld [vmem:[#allocation61_spill] sm:$0xff]  ;;  %v8053_v43 = vld [vmem:[#allocation63_spill] sm:$0xff] }
 0x826   :  { %5812 = vrcp.f32 %v2849_v26  ;;  %v8052_v26 = vld [vmem:[#allocation62_spill] sm:$0xff] }
 0x827   :  { %5814 = vrcp.f32 %v2856_v30  ;;  %v8058_v30 = vld [vmem:[#allocation68_spill] sm:$0xff] }
 0x82f   :  { %v5811_v4 = vpop.eup %5810 }
 0x830   :  { %v5813_v8 = vpop.eup %5812  ;;  %v2860_v12 = vmul.f32 %v5811_v4, %v5809_v0  ;;  %v8054_v0 = vld [vmem:[#allocation64_spill] sm:$0xff]  ;;  %v8055_v4 = vld [vmem:[#allocation65_spill] sm:$0xff] }
 0x831   :  { %v2859_v11 = vmul.f32 %v5813_v8, %v7105_v56  ;;  %v5815_v1 = vpop.eup %5814  ;;  %v8048_v56 = vld [vmem:[#allocation58_spill] sm:$0xff] }
 0x832   :  { %v8056_v8 = vld [vmem:[#allocation66_spill] sm:$0xff] }
 0x833   :  { %v7223_v19 = vadd.f32 %v2860_v12, %v2859_v11  ;;  %v8057_v12 = vld [vmem:[#allocation67_spill] sm:$0xff]  ;;  %v8059_v11 = vld [vmem:[#allocation69_spill] sm:$0xff] }
 0x835   :  { %5816 = vtanh.f32 %v7223_v19 }
 0x83f   :  { %v5817_v6 = vpop.eup %5816 }
 0x840   :  { %v2863_v50 = vmul.f32 %v5817_v6, %v5815_v1  ;;  %v8060_v1 = vld [vmem:[#allocation70_spill] sm:$0xff]  ;;  %v8061_v6 = vld [vmem:[#allocation71_spill] sm:$0xff] }
 0x842   :  { %2929 = vmatmul.mubr.f32.vlgmr.msra.gmra.mrb[28].mxu0 %v2863_v50  ;;  %3000 = vmatmul.mubr.f32.vlgmr.msra.gmra.mrb[28].mxu1 %v2863_v50 }
 0x843   :  { %5284 = vmatpush1.bf16.msra.mxu0 %v6138_v23  ;;  %5316 = vmatpush1.bf16.msra.mxu1 %v6145_v27  ;;  %v8009_v23 = vld [vmem:[#allocation19_spill] sm:$0xff]  ;;  %v8010_v27 = vld [vmem:[#allocation20_spill] sm:$0xff] }
 0x844   :  { %5286 = vmatprep.subr.bf16.mxu0 %v6149_v31  ;;  %5318 = vmatprep.subr.bf16.mxu1 %v6153_v35  ;;  %v8011_v31 = vld [vmem:[#allocation21_spill] sm:$0xff]  ;;  %v8012_v35 = vld [vmem:[#allocation22_spill] sm:$0xff] }
 0x845   :  { %3099 = vmatprep.mubr.f32.mxu0 %v7650_v25  ;;  %3170 = vmatprep.mubr.f32.mxu1 %v7650_v25  ;;  %v8046_v25 = vld [vmem:[#allocation56_spill] sm:$0xff] }
 0x847   :  { %5288 = vmatpush1.bf16.msra.mxu0 %v6155_v36  ;;  %5320 = vmatpush1.bf16.msra.mxu1 %v6159_v39  ;;  %v8013_v36 = vld [vmem:[#allocation23_spill] sm:$0xff]  ;;  %v8014_v39 = vld [vmem:[#allocation24_spill] sm:$0xff] }
 0x848   :  { %5290 = vmatprep.subr.bf16.mxu0 %v6168_v47  ;;  %5322 = vmatprep.subr.bf16.mxu1 %v6172_v48  ;;  %v8015_v47 = vld [vmem:[#allocation25_spill] sm:$0xff]  ;;  %v8016_v48 = vld [vmem:[#allocation26_spill] sm:$0xff] }
 0x84b   :  { %5292 = vmatpush1.bf16.msra.mxu0 %v6174_v49  ;;  %5324 = vmatpush1.bf16.msra.mxu1 %v6178_v53  ;;  %v8017_v49 = vld [vmem:[#allocation27_spill] sm:$0xff]  ;;  %v8018_v53 = vld [vmem:[#allocation28_spill] sm:$0xff] }
 0x84c   :  { %5294 = vmatprep.subr.bf16.mxu0 %v6187_v60  ;;  %5326 = vmatprep.subr.bf16.mxu1 %v6191_v61  ;;  %v8019_v60 = vld [vmem:[#allocation29_spill] sm:$0xff]  ;;  %v8020_v61 = vld [vmem:[#allocation30_spill] sm:$0xff] }
 0x84f   :  { %5296 = vmatpush1.bf16.msra.mxu0 %v6193_v62  ;;  %5328 = vmatpush1.bf16.msra.mxu1 %v6197_v7  ;;  %v8021_v62 = vld [vmem:[#allocation31_spill] sm:$0xff]  ;;  %v8022_v7 = vld [vmem:[#allocation32_spill] sm:$0xff] }
 0x850   :  { %5298 = vmatprep.subr.bf16.mxu0 %v6206_v14  ;;  %5330 = vmatprep.subr.bf16.mxu1 %v6210_v15  ;;  %v8023_v14 = vld [vmem:[#allocation33_spill] sm:$0xff]  ;;  %v8024_v15 = vld [vmem:[#allocation34_spill] sm:$0xff] }
 0x853   :  { %5300 = vmatpush1.bf16.msra.mxu0 %v6212_v16  ;;  %5332 = vmatpush1.bf16.msra.mxu1 %v6216_v20  ;;  %v8025_v16 = vld [vmem:[#allocation35_spill] sm:$0xff]  ;;  %v8026_v20 = vld [vmem:[#allocation36_spill] sm:$0xff] }
 0x854   :  { %5302 = vmatprep.subr.bf16.mxu0 %v6225_v32  ;;  %5334 = vmatprep.subr.bf16.mxu1 %v6229_v33  ;;  %v8027_v32 = vld [vmem:[#allocation37_spill] sm:$0xff]  ;;  %v8028_v33 = vld [vmem:[#allocation38_spill] sm:$0xff] }
 0x857   :  { %5304 = vmatpush1.bf16.msra.mxu0 %v6231_v34  ;;  %5336 = vmatpush1.bf16.msra.mxu1 %v6235_v41  ;;  %v8029_v34 = vld [vmem:[#allocation39_spill] sm:$0xff]  ;;  %v8030_v41 = vld [vmem:[#allocation40_spill] sm:$0xff] }
 0x858   :  { %5306 = vmatprep.subr.bf16.mxu0 %v6244_v51  ;;  %5338 = vmatprep.subr.bf16.mxu1 %v6248_v52  ;;  %v8031_v51 = vld [vmem:[#allocation41_spill] sm:$0xff]  ;;  %v8032_v52 = vld [vmem:[#allocation42_spill] sm:$0xff] }
 0x85b   :  { %5308 = vmatpush1.bf16.msra.mxu0 %v6250_v54  ;;  %5340 = vmatpush1.bf16.msra.mxu1 %v6254_v58  ;;  %v8033_v54 = vld [vmem:[#allocation43_spill] sm:$0xff]  ;;  %v8034_v58 = vld [vmem:[#allocation44_spill] sm:$0xff] }
 0x85c   :  { %5310 = vmatprep.subr.bf16.mxu0 %v6263_v10  ;;  %5342 = vmatprep.subr.bf16.mxu1 %v6267_v13  ;;  %v8035_v10 = vld [vmem:[#allocation45_spill] sm:$0xff]  ;;  %v8036_v13 = vld [vmem:[#allocation46_spill] sm:$0xff] }
 0x85f   :  { %5312 = vmatpush1.bf16.msra.mxu0 %v6269_v17  ;;  %5344 = vmatpush1.bf16.msra.mxu1 %v6273_v24  ;;  %v8037_v17 = vld [vmem:[#allocation47_spill] sm:$0xff]  ;;  %v8038_v24 = vld [vmem:[#allocation48_spill] sm:$0xff] }
 0x860   :  { %5346 = vmatprep.subr.bf16.mxu0 %v6277_v29  ;;  %5410 = vmatprep.subr.bf16.mxu1 %v6281_v40  ;;  %v8039_v29 = vld [vmem:[#allocation49_spill] sm:$0xff]  ;;  %v8040_v40 = vld [vmem:[#allocation50_spill] sm:$0xff] }
 0x862   :  { %3100 = vmatmul.mubr.f32.vlgmr.msra.gmra.mrb[14].mxu0 %v2863_v50  ;;  %3171 = vmatmul.mubr.f32.vlgmr.msra.gmra.mrb[14].mxu1 %v2863_v50  ;;  %v8062_v50 = vld [vmem:[#allocation72_spill] sm:$0xff] }
 0x863   :  { %5348 = vmatpush1.bf16.msra.mxu0 %v6285_v44  ;;  %5412 = vmatpush1.bf16.msra.mxu1 %v6289_v45  ;;  %v8041_v44 = vld [vmem:[#allocation51_spill] sm:$0xff]  ;;  %v8042_v45 = vld [vmem:[#allocation52_spill] sm:$0xff] }
 0x864   :  { %5350 = vmatprep.subr.bf16.mxu0 %v6291_v46  ;;  %5414 = vmatprep.subr.bf16.mxu1 %v6295_v57  ;;  %v8043_v46 = vld [vmem:[#allocation53_spill] sm:$0xff]  ;;  %v8044_v57 = vld [vmem:[#allocation54_spill] sm:$0xff] }
 0x867   :  { %5352 = vmatpush1.bf16.msra.mxu0 %v6301_v9  ;;  %5416 = vmatpush1.bf16.msra.mxu1 %v7651_v22  ;;  %v8045_v9 = vld [vmem:[#allocation55_spill] sm:$0xff]  ;;  %v8047_v22 = vld [vmem:[#allocation57_spill] sm:$0xff] }
 0x868   :  { %5354 = vmatprep.subr.bf16.mxu0 %v8009_v23  ;;  %5418 = vmatprep.subr.bf16.mxu1 %v8010_v27  ;;  %v8063_v23 = vld [vmem:[#allocation73_spill] sm:$0xff]  ;;  %v8064_v27 = vld [vmem:[#allocation74_spill] sm:$0xff] }
 0x86b   :  { %5356 = vmatpush1.bf16.msra.mxu0 %v8011_v31  ;;  %5420 = vmatpush1.bf16.msra.mxu1 %v8012_v35  ;;  %v3380_v31 = vld [vmem:[#allocation8] sm:$0xff]  ;;  %v3381_v35 = vld [vmem:[#allocation8 + $0x8] sm:$0xff] }
 0x86c   :  { %5358 = vmatprep.subr.bf16.mxu0 %v8013_v36  ;;  %5422 = vmatprep.subr.bf16.mxu1 %v8014_v39  ;;  %v7322_v36 = vpack.c.bf16 %v3381_v35, %v3380_v31  ;;  %v3384_v31 = vld [vmem:[#allocation8 + $0x20] sm:$0xff]  ;;  %v3385_v35 = vld [vmem:[#allocation8 + $0x28] sm:$0xff] }
 0x86f   :  { %5360 = vmatpush1.bf16.msra.mxu0 %v8015_v47  ;;  %5424 = vmatpush1.bf16.msra.mxu1 %v8016_v48  ;;  %v8065_v48 = vld [vmem:[#allocation18_spill] sm:$0xff] }
 0x870   :  { %5362 = vmatprep.subr.bf16.mxu0 %v8017_v49  ;;  %5426 = vmatprep.subr.bf16.mxu1 %v8018_v53 }
 0x873   :  { %5364 = vmatpush1.bf16.msra.mxu0 %v8019_v60  ;;  %5428 = vmatpush1.bf16.msra.mxu1 %v8020_v61 }
 0x874   :  { %5366 = vmatprep.subr.bf16.mxu0 %v8021_v62  ;;  %5430 = vmatprep.subr.bf16.mxu1 %v8022_v7 }
 0x877   :  { %5368 = vmatpush1.bf16.msra.mxu0 %v8023_v14  ;;  %5432 = vmatpush1.bf16.msra.mxu1 %v8024_v15 }
 0x878   :  { %5370 = vmatprep.subr.bf16.mxu0 %v8025_v16  ;;  %5434 = vmatprep.subr.bf16.mxu1 %v8026_v20 }
 0x87b   :  { %5372 = vmatpush1.bf16.msra.mxu0 %v8027_v32  ;;  %5436 = vmatpush1.bf16.msra.mxu1 %v8028_v33 }
 0x87c   :  { %5374 = vmatprep.subr.bf16.mxu0 %v8029_v34  ;;  %5438 = vmatprep.subr.bf16.mxu1 %v8030_v41 }
 0x87f   :  { %5376 = vmatpush1.bf16.msra.mxu0 %v8031_v51  ;;  %5440 = vmatpush1.bf16.msra.mxu1 %v8032_v52 }
 0x880   :  { %5378 = vmatprep.subr.bf16.mxu0 %v8033_v54  ;;  %5442 = vmatprep.subr.bf16.mxu1 %v8034_v58 }
 0x883   :  { %5380 = vmatpush1.bf16.msra.mxu0 %v8035_v10  ;;  %5444 = vmatpush1.bf16.msra.mxu1 %v8036_v13 }
 0x884   :  { %5382 = vmatprep.subr.bf16.mxu0 %v8037_v17  ;;  %5446 = vmatprep.subr.bf16.mxu1 %v8038_v24 }
 0x887   :  { %5384 = vmatpush1.bf16.msra.mxu0 %v8039_v29  ;;  %5448 = vmatpush1.bf16.msra.mxu1 %v8040_v40 }
 0x888   :  { %5386 = vmatprep.subr.bf16.mxu0 %v8041_v44  ;;  %5450 = vmatprep.subr.bf16.mxu1 %v8042_v45 }
 0x88b   :  { %5388 = vmatpush1.bf16.msra.mxu0 %v8043_v46  ;;  %5452 = vmatpush1.bf16.msra.mxu1 %v8044_v57 }
 0x88c   :  { %5390 = vmatprep.subr.bf16.mxu0 %v8045_v9  ;;  %5454 = vmatprep.subr.bf16.mxu1 %v8046_v25 }
 0x88f   :  { %5392 = vmatpush1.bf16.msra.mxu0 %v8047_v22  ;;  %5456 = vmatpush1.bf16.msra.mxu1 %v8048_v56 }
 0x890   :  { %5394 = vmatprep.subr.bf16.mxu0 %v8049_v42  ;;  %5458 = vmatprep.subr.bf16.mxu1 %v8050_v2 }
 0x893   :  { %5396 = vmatpush1.bf16.msra.mxu0 %v8051_v18  ;;  %5460 = vmatpush1.bf16.msra.mxu1 %v8052_v26 }
 0x894   :  { %5398 = vmatprep.subr.bf16.mxu0 %v8053_v43  ;;  %5462 = vmatprep.subr.bf16.mxu1 %v8054_v0 }
 0x897   :  { %5400 = vmatpush1.bf16.msra.mxu0 %v8055_v4  ;;  %5464 = vmatpush1.bf16.msra.mxu1 %v8056_v8 }
 0x898   :  { %5402 = vmatprep.subr.bf16.mxu0 %v8057_v12  ;;  %5466 = vmatprep.subr.bf16.mxu1 %v8058_v30 }
 0x89b   :  { %5404 = vmatpush1.bf16.msra.mxu0 %v8059_v11  ;;  %5468 = vmatpush1.bf16.msra.mxu1 %v8060_v1  ;;  %v3382_v11 = vld [vmem:[#allocation8 + $0x10] sm:$0xff]  ;;  %v3383_v1 = vld [vmem:[#allocation8 + $0x18] sm:$0xff] }
 0x89c   :  { %5406 = vmatprep.subr.bf16.mxu0 %v8061_v6  ;;  %5470 = vmatprep.subr.bf16.mxu1 %v8062_v50 }
 0x89f   :  { %5408 = vmatpush1.bf16.msra.mxu0 %v8063_v23  ;;  %5472 = vmatpush1.bf16.msra.mxu1 %v8064_v27  ;;  %v5477_v27 = vpack.c.bf16 %v3383_v1, %v3382_v11 }
 0x8a0   :  { %5474 = vmatprep.subr.bf16.mxu0 %v7322_v36 }
 0x915   :  { %v2930_v39 = vpop.f32.mrb[28].mxu0  ;;  %v3001_v47 = vpop.f32.mrb[28].mxu1 }
 0x916   :  { %v2931_v49 = vadd.f32 %v2930_v39, %v8065_v48  ;;  %v2932_v53 = vpop.f32.mrb[29].mxu0  ;;  %v3003_v60 = vpop.f32.mrb[29].mxu1  ;;  %v3002_v16 = vadd.f32 %v3001_v47, %v7828_v63  ;;  %v8066_v39 = vld [vmem:[#allocation76_spill] sm:$0xff]  ;;  %v5481_v47 = vpack.c.bf16 %v3385_v35, %v3384_v31  ;;  %v3588_v31 = vld [vmem:[#allocation9] sm:$0xff]  ;;  %v3589_v35 = vld [vmem:[#allocation9 + $0x8] sm:$0xff] }
 0x917   :  { %v2933_v61 = vadd.f32 %v2932_v53, %v6609_v5  ;;  %v3004_v14 = vadd.f32 %v3003_v60, %v7766_v38  ;;  %v3388_v60 = vld [vmem:[#allocation8 + $0x40] sm:$0xff] }
 0x918   :  { %v3790_v62 = vmul.f32 -1.442695, %v2931_v49  ;;  %v3387_v49 = vld [vmem:[#allocation8 + $0x38] sm:$0xff] }
 0x919   :  { %v3791_v7 = vmul.f32 -1.442695, %v2933_v61  ;;  %v3792_v15 = vmul.f32 -1.442695, %v3004_v14  ;;  %v3389_v61 = vld [vmem:[#allocation8 + $0x48] sm:$0xff]  ;;  %v3391_v14 = vld [vmem:[#allocation8 + $0x58] sm:$0xff] }
 0x91a   :  { %5818 = vpow2.f32 %v3790_v62  ;;  %v5489_v62 = vpack.c.bf16 %v3389_v61, %v3388_v60  ;;  %v3592_v60 = vld [vmem:[#allocation9 + $0x20] sm:$0xff]  ;;  %v3593_v61 = vld [vmem:[#allocation9 + $0x28] sm:$0xff] }
 0x91b   :  { %5820 = vpow2.f32 %v3791_v7  ;;  %v3390_v7 = vld [vmem:[#allocation8 + $0x50] sm:$0xff] }
 0x91c   :  { %5822 = vpow2.f32 %v3792_v15  ;;  %v5493_v15 = vpack.c.bf16 %v3391_v14, %v3390_v7 }
 0x91d   :  { %5824 = vtanh.f32 %v3002_v16  ;;  %v3393_v16 = vld [vmem:[#allocation8 + $0x68] sm:$0xff] }
 0x924   :  { %v5819_v20 = vpop.eup %5818 }
 0x925   :  { %v5821_v32 = vpop.eup %5820  ;;  %v3009_v33 = vadd.f32 1.0, %v5819_v20 }
 0x926   :  { %v3015_v34 = vadd.f32 1.0, %v5821_v32  ;;  %v5823_v41 = vpop.eup %5822  ;;  %v3394_v32 = vld [vmem:[#allocation8 + $0x70] sm:$0xff] }
 0x927   :  { %5826 = vrcp.f32 %v3009_v33  ;;  %v5825_v51 = vpop.eup %5824  ;;  %v3022_v10 = vadd.f32 1.0, %v5823_v41  ;;  %v3395_v33 = vld [vmem:[#allocation8 + $0x78] sm:$0xff] }
 0x928   :  { %5828 = vrcp.f32 %v3015_v34  ;;  %v5501_v34 = vpack.c.bf16 %v3395_v33, %v3394_v32  ;;  %v8067_v41 = vld [vmem:[#allocation77_spill] sm:$0xff] }
 0x929   :  { %5830 = vrcp.f32 %v3022_v10 }
 0x931   :  { %v5827_v52 = vpop.eup %5826 }
 0x932   :  { %v5829_v54 = vpop.eup %5828  ;;  %v3026_v58 = vmul.f32 %v5827_v52, %v5825_v51  ;;  %v8068_v51 = vld [vmem:[#allocation15_spill] sm:$0xff] }
 0x933   :  { %v3025_v13 = vmul.f32 %v5829_v54, %v7211_v21  ;;  %v5831_v21 = vpop.eup %5830  ;;  %v8069_v52 = vld [vmem:[#allocation75_spill] sm:$0xff]  ;;  %v8070_v54 = vld [vmem:[#allocation14_spill] sm:$0xff] }
 0x935   :  { %v7330_v17 = vadd.f32 %v3026_v58, %v3025_v13  ;;  %v3101_v24 = vpop.f32.mrb[14].mxu0  ;;  %v3172_v29 = vpop.f32.mrb[14].mxu1 }
 0x936   :  { %v5551_v40 = vadd.f32 %v3101_v24, %v7768_v37  ;;  %v3103_v44 = vpop.f32.mrb[15].mxu0  ;;  %v3174_v45 = vpop.f32.mrb[15].mxu1  ;;  %v5567_v42 = vadd.f32 %v3172_v29, %v6498_v3 }
 0x937   :  { %v5552_v46 = vadd.f32 %v3103_v44, %v7708_v55  ;;  %5832 = vtanh.f32 %v7330_v17  ;;  %v5568_v25 = vadd.f32 %v3174_v45, %v7709_v59 }
 0x938   :  { %v3793_v57 = vmul.f32 -1.442695, %v5551_v40 }
 0x939   :  { %v3794_v9 = vmul.f32 -1.442695, %v5552_v46  ;;  %v3795_v56 = vmul.f32 -1.442695, %v5568_v25 }
 0x93a   :  { %5834 = vpow2.f32 %v3793_v57 }
 0x93b   :  { %5836 = vpow2.f32 %v3794_v9 }
 0x93c   :  { %5838 = vpow2.f32 %v3795_v56 }
 0x93d   :  { %5840 = vtanh.f32 %v5567_v42 }
 0x941   :  { %v5833_v22 = vpop.eup %5832 }
 0x942   :  { %v7337_v2 = vmul.f32 %v5833_v22, %v5831_v21 }
 0x944   :  { %v5835_v37 = vpop.eup %5834  ;;  %3269 = vmatprep.mubr.f32.mxu0 %v7337_v2  ;;  %3340 = vmatprep.mubr.f32.mxu1 %v7337_v2 }
 0x945   :  { %v5837_v55 = vpop.eup %5836  ;;  %v3184_v18 = vadd.f32 1.0, %v5835_v37 }
 0x946   :  { %v3190_v26 = vadd.f32 1.0, %v5837_v55  ;;  %v5839_v59 = vpop.eup %5838 }
 0x947   :  { %5842 = vrcp.f32 %v3184_v18  ;;  %v5841_v43 = vpop.eup %5840  ;;  %v3197_v3 = vadd.f32 1.0, %v5839_v59 }
 0x948   :  { %5844 = vrcp.f32 %v3190_v26 }
 0x949   :  { %5846 = vrcp.f32 %v3197_v3 }
 0x951   :  { %v5843_v0 = vpop.eup %5842 }
 0x952   :  { %v5845_v4 = vpop.eup %5844  ;;  %v3201_v8 = vmul.f32 %v5843_v0, %v5841_v43 }
 0x953   :  { %v3200_v12 = vmul.f32 %v5845_v4, %v7223_v19  ;;  %v5847_v6 = vpop.eup %5846  ;;  %v3386_v19 = vld [vmem:[#allocation8 + $0x30] sm:$0xff] }
 0x954   :  { %v5485_v53 = vpack.c.bf16 %v3387_v49, %v3386_v19  ;;  %v5505_v19 = vpack.c.bf16 %v3589_v35, %v3588_v31  ;;  %v3591_v49 = vld [vmem:[#allocation9 + $0x18] sm:$0xff] }
 0x955   :  { %v3202_v30 = vadd.f32 %v3201_v8, %v3200_v12 }
 0x956   :  { %5506 = vmatprep.subr.bf16.mxu1 %v5505_v19 }
 0x957   :  { %5848 = vtanh.f32 %v3202_v30 }
 0x961   :  { %v5849_v50 = vpop.eup %5848 }
 0x962   :  { %v3204_v23 = vmul.f32 %v5849_v50, %v5847_v6 }
 0x964   :  { %3270 = vmatmul.mubr.f32.vlgmr.msra.gmra.mrb[30].mxu0 %v3204_v23  ;;  %3341 = vmatmul.mubr.f32.vlgmr.msra.gmra.mrb[30].mxu1 %v3204_v23 }
 0x965   :  { %5476 = vmatpush3.bf16.msra.mxu0 %v7322_v36  ;;  %3881 = vmatprep.mubr.f32.mxu0 %v8066_v39  ;;  %v3392_v36 = vld [vmem:[#allocation8 + $0x60] sm:$0xff] }
 0x966   :  { %5478 = vmatprep.subr.bf16.mxu0 %v5477_v27  ;;  %v5497_v20 = vpack.c.bf16 %v3393_v16, %v3392_v36  ;;  %5508 = vmatpush3.bf16.msra.mxu1 %v5505_v19 }
 0x969   :  { %5480 = vmatpush3.bf16.msra.mxu0 %v5477_v27 }
 0x96a   :  { %5482 = vmatprep.subr.bf16.mxu0 %v5481_v47 }
 0x96d   :  { %5484 = vmatpush3.bf16.msra.mxu0 %v5481_v47  ;;  %v3590_v47 = vld [vmem:[#allocation9 + $0x10] sm:$0xff] }
 0x96e   :  { %5486 = vmatprep.subr.bf16.mxu0 %v5485_v53 }
 0x971   :  { %5488 = vmatpush3.bf16.msra.mxu0 %v5485_v53  ;;  %v5509_v53 = vpack.c.bf16 %v3591_v49, %v3590_v47 }
 0x972   :  { %5490 = vmatprep.subr.bf16.mxu0 %v5489_v62 }
 0x973   :  { %5510 = vmatprep.subr.bf16.mxu1 %v5509_v53 }
 0x974   :  { %5512 = vmatpush3.bf16.msra.mxu1 %v5509_v53 }
 0x975   :  { %5492 = vmatpush3.bf16.msra.mxu0 %v5489_v62  ;;  %v5513_v62 = vpack.c.bf16 %v3593_v61, %v3592_v60 }
 0x976   :  { %5494 = vmatprep.subr.bf16.mxu0 %v5493_v15 }
 0x977   :  { %5514 = vmatprep.subr.bf16.mxu1 %v5513_v62 }
 0x978   :  { %5516 = vmatpush3.bf16.msra.mxu1 %v5513_v62 }
 0x979   :  { %5496 = vmatpush3.bf16.msra.mxu0 %v5493_v15 }
 0x97a   :  { %5498 = vmatprep.subr.bf16.mxu0 %v5497_v20 }
 0x97d   :  { %5500 = vmatpush3.bf16.msra.mxu0 %v5497_v20 }
 0x97e   :  { %5502 = vmatprep.subr.bf16.mxu0 %v5501_v34 }
 0x981   :  { %5504 = vmatpush3.bf16.msra.mxu0 %v5501_v34 }
 0x984   :  { %3882 = vmatmul.mubr.f32.vlgmr.msra.gmra.mrb[32].mxu0 %v8067_v41 }
 0x985   :  { %3884 = vmatprep.mubr.f32.mxu0 %v8068_v51 }
 0x988   :  { %3885 = vmatmul.mubr.f32.gmra.mrb[34].mxu0 %v8069_v52 }
 0x989   :  { %3887 = vmatprep.mubr.f32.mxu0 %v8070_v54 }
 0x98c   :  { %3888 = vmatmul.mubr.f32.gmra.mrb[36].mxu0 %v7218_v28 }
 0x98d   :  { %3890 = vmatprep.mubr.f32.mxu0 %v7337_v2 }
 0xa37   :  { %v3271_v58 = vpop.f32.mrb[30].mxu0  ;;  %v3342_v10 = vpop.f32.mrb[30].mxu1 }
 0xa38   :  { %v3272_v13 = vadd.f32 %v3271_v58, %v8065_v48  ;;  %v3273_v24 = vpop.f32.mrb[31].mxu0  ;;  %v3344_v29 = vpop.f32.mrb[31].mxu1  ;;  %v3343_v9 = vadd.f32 %v3342_v10, %v7828_v63 }
 0xa39   :  { %v3274_v40 = vadd.f32 %v3273_v24, %v6609_v5  ;;  %v3345_v46 = vadd.f32 %v3344_v29, %v7766_v38  ;;  %v7358_v38 = vld [vmem:[%s7437_s7] ss:$0 sm:$0xff] }
 0xa3a   :  { %v3796_v44 = vmul.f32 -1.442695, %v3272_v13 }
 0xa3b   :  { %v3797_v45 = vmul.f32 -1.442695, %v3274_v40  ;;  %v3798_v57 = vmul.f32 -1.442695, %v3345_v46 }
 0xa3c   :  { %5850 = vpow2.f32 %v3796_v44 }
 0xa3d   :  { %5852 = vpow2.f32 %v3797_v45 }
 0xa3e   :  { %5854 = vpow2.f32 %v3798_v57 }
 0xa3f   :  { %5856 = vtanh.f32 %v3343_v9 }
 0xa46   :  { %v5851_v25 = vpop.eup %5850 }
 0xa47   :  { %v5853_v21 = vpop.eup %5852  ;;  %v3350_v22 = vadd.f32 1.0, %v5851_v25 }
 0xa48   :  { %v3356_v56 = vadd.f32 1.0, %v5853_v21  ;;  %v5855_v48 = vpop.eup %5854 }
 0xa49   :  { %5858 = vrcp.f32 %v3350_v22  ;;  %v5857_v42 = vpop.eup %5856  ;;  %v3363_v18 = vadd.f32 1.0, %v5855_v48 }
 0xa4a   :  { %5860 = vrcp.f32 %v3356_v56 }
 0xa4b   :  { %5862 = vrcp.f32 %v3363_v18  ;;  %v3595_v18 = vld [vmem:[#allocation9 + $0x38] sm:$0xff] }
 0xa53   :  { %v5859_v5 = vpop.eup %5858 }
 0xa54   :  { %v5861_v37 = vpop.eup %5860  ;;  %v3367_v55 = vmul.f32 %v5859_v5, %v5857_v42 }
 0xa55   :  { %v3366_v26 = vmul.f32 %v5861_v37, %v7330_v17  ;;  %v5863_v6 = vpop.eup %5862 }
 0xa57   :  { %v3883_v63 = vpop.f32.mrb[32].mxu0  ;;  %v3368_v59 = vadd.f32 %v3367_v55, %v3366_v26  ;;  %v3594_v55 = vld [vmem:[#allocation9 + $0x30] sm:$0xff] }
 0xa58   :  { %v3469_v43 = vpop.f32.mrb[33].mxu0  ;;  %v3475_v3 = vadd.f32 %v3883_v63, %v7358_v38  ;;  %v5517_v26 = vpack.c.bf16 %v3595_v18, %v3594_v55  ;;  %v3597_v63 = vld [vmem:[#allocation9 + $0x48] sm:$0xff] }
 0xa59   :  { %v3470_v0 = vadd.f32 %v7358_v38, %v3469_v43  ;;  %5864 = vtanh.f32 %v3368_v59  ;;  %v3598_v43 = vld [vmem:[#allocation9 + $0x50] sm:$0xff] }
 0xa5a   :  { %5518 = vmatprep.subr.bf16.mxu1 %v5517_v26 }
 0xa5b   :  { %v3886_v4 = vpop.f32.mrb[34].mxu0  ;;  %3508 = vmax.xlane.f32.xlu0 %v3470_v0  ;;  %5520 = vmatpush3.bf16.msra.mxu1 %v5517_v26 }
 0xa5c   :  { %v3479_v8 = vpop.f32.mrb[35].mxu0  ;;  %v3485_v11 = vadd.f32 %v3886_v4, %v7358_v38 }
 0xa5d   :  { %v3480_v12 = vadd.f32 %v7358_v38, %v3479_v8  ;;  %v3600_v8 = vld [vmem:[#allocation9 + $0x60] sm:$0xff] }
 0xa5f   :  { %v3889_v17 = vpop.f32.mrb[36].mxu0  ;;  %3512 = vmax.xlane.f32.xlu1 %v3480_v12  ;;  %3510 = vmax.xlane.f32.xlu0 %v3475_v3 }
 0xa60   :  { %v3489_v30 = vpop.f32.mrb[37].mxu0  ;;  %v3495_v27 = vadd.f32 %v3889_v17, %v7358_v38  ;;  %v3602_v17 = vld [vmem:[#allocation9 + $0x70] sm:$0xff] }
 0xa61   :  { %v3490_v1 = vadd.f32 %v7358_v38, %v3489_v30  ;;  %v3603_v30 = vld [vmem:[#allocation9 + $0x78] sm:$0xff] }
 0xa63   :  { %v5865_v50 = vpop.eup %5864  ;;  %3514 = vmax.xlane.f32.xlu1 %v3485_v11  ;;  %3516 = vmax.xlane.f32.xlu0 %v3490_v1 }
 0xa64   :  { %v7365_v23 = vmul.f32 %v5865_v50, %v5863_v6 }
 0xa66   :  { %3891 = vmatmul.mubr.f32.gmra.mrb[38].mxu0 %v7365_v23 }
 0xa67   :  { %3518 = vmax.xlane.f32.xlu1 %v3495_v27 }
 0xae8   :  { %v3509_v7 = vpop.xlane.xlu0 %3508 }
 0xae9   :  { %v3524_v20 = vsub.f32 %v3470_v0, %v3509_v7  ;;  %v3599_v0 = vld [vmem:[#allocation9 + $0x58] sm:$0xff] }
 0xaea   :  { %v5525_v4 = vpack.c.bf16 %v3599_v0, %v3598_v43 }
 0xaeb   :  { %v3532_v34 = vmul.f32 1.442695, %v3524_v20 }
 0xaec   :  { %v3513_v14 = vpop.xlane.xlu1 %3512  ;;  %v3511_v15 = vpop.xlane.xlu0 %3510 }
 0xaed   :  { %v3525_v16 = vsub.f32 %v3475_v3, %v3511_v15  ;;  %v3526_v58 = vsub.f32 %v3480_v12, %v3513_v14  ;;  %v3601_v3 = vld [vmem:[#allocation9 + $0x68] sm:$0xff] }
 0xaee   :  { %v5529_v12 = vpack.c.bf16 %v3601_v3, %v3600_v8 }
 0xaef   :  { %v3534_v32 = vmul.f32 1.442695, %v3525_v16  ;;  %v3536_v40 = vmul.f32 1.442695, %v3526_v58 }
 0xaf0   :  { %v3515_v36 = vpop.xlane.xlu1 %3514  ;;  %v3517_v13 = vpop.xlane.xlu0 %3516 }
 0xaf1   :  { %v3527_v33 = vsub.f32 %v3485_v11, %v3515_v36  ;;  %5866 = vpow2.f32 %v3534_v32  ;;  %v3528_v44 = vsub.f32 %v3490_v1, %v3517_v13  ;;  %v5533_v11 = vpack.c.bf16 %v3603_v30, %v3602_v17 }
 0xaf2   :  { %5868 = vpow2.f32 %v3532_v34 }
 0xaf3   :  { %v3538_v24 = vmul.f32 1.442695, %v3527_v33  ;;  %v3540_v57 = vmul.f32 1.442695, %v3528_v44 }
 0xaf4   :  { %v3519_v10 = vpop.xlane.xlu1 %3518 }
 0xaf5   :  { %v3529_v29 = vsub.f32 %v3495_v27, %v3519_v10  ;;  %5870 = vpow2.f32 %v3538_v24 }
 0xaf6   :  { %5872 = vpow2.f32 %v3536_v40 }
 0xaf7   :  { %v3542_v45 = vmul.f32 1.442695, %v3529_v29 }
 0xaf9   :  { %5874 = vpow2.f32 %v3542_v45 }
 0xafa   :  { %5876 = vpow2.f32 %v3540_v57 }
 0xafb   :  { %v7371_v22 = vpop.eup %5866 }
 0xafc   :  { %v7373_v56 = vpop.eup %5868 }
 0xaff   :  { %v7377_v48 = vpop.eup %5870 }
 0xb00   :  { %v7379_v42 = vpop.eup %5872 }
 0xb03   :  { %v7383_v5 = vpop.eup %5874 }
 0xb04   :  { %v7385_v37 = vpop.eup %5876 }
 0xb39   :  { %v3892_v46 = vpop.f32.mrb[38].mxu0 }
 0xb3a   :  { %v3505_v9 = vadd.f32 %v3892_v46, %v7358_v38  ;;  %v3499_v25 = vpop.f32.mrb[39].mxu0 }
 0xb3b   :  { %v3500_v21 = vadd.f32 %v7358_v38, %v3499_v25  ;;  %v3596_v38 = vld [vmem:[#allocation9 + $0x40] sm:$0xff] }
 0xb3c   :  { %3522 = vmax.xlane.f32.xlu1 %v3505_v9  ;;  %v5521_v59 = vpack.c.bf16 %v3597_v63, %v3596_v38 }
 0xb3d   :  { %3520 = vmax.xlane.f32.xlu0 %v3500_v21 }
 0xb3e   :  { %5522 = vmatprep.subr.bf16.mxu1 %v5521_v59 }
 0xb3f   :  { %5524 = vmatpush3.bf16.msra.mxu1 %v5521_v59 }
 0xb40   :  { %3550 = vadd.xlane.f32.xlu1 %v7371_v22  ;;  %5526 = vmatprep.subr.bf16.mxu1 %v5525_v4 }
 0xb41   :  { %3548 = vadd.xlane.f32.xlu0 %v7373_v56 }
 0xb43   :  { %5528 = vmatpush3.bf16.msra.mxu1 %v5525_v4 }
 0xb44   :  { %3554 = vadd.xlane.f32.xlu1 %v7377_v48  ;;  %5530 = vmatprep.subr.bf16.mxu1 %v5529_v12 }
 0xb45   :  { %3552 = vadd.xlane.f32.xlu0 %v7379_v42 }
 0xb47   :  { %5532 = vmatpush3.bf16.msra.mxu1 %v5529_v12 }
 0xb48   :  { %3558 = vadd.xlane.f32.xlu1 %v7383_v5  ;;  %5534 = vmatprep.subr.bf16.mxu1 %v5533_v11 }
 0xb49   :  { %3556 = vadd.xlane.f32.xlu0 %v7385_v37 }
 0xb4b   :  { %5536 = vmatpush3.bf16.msra.mxu1 %v5533_v11 }
 0xbc9   :  { %v3523_v1 = vpop.xlane.xlu1 %3522 }
 0xbca   :  { %v3531_v6 = vsub.f32 %v3505_v9, %v3523_v1  ;;  %v3521_v50 = vpop.xlane.xlu0 %3520 }
 0xbcb   :  { %v3530_v27 = vsub.f32 %v3500_v21, %v3521_v50 }
 0xbcc   :  { %v3546_v31 = vmul.f32 1.442695, %v3531_v6 }
 0xbcd   :  { %v3544_v35 = vmul.f32 1.442695, %v3530_v27  ;;  %v3551_v47 = vpop.xlane.xlu1 %3550 }
 0xbce   :  { %5878 = vpow2.f32 %v3546_v31  ;;  %v3549_v19 = vpop.xlane.xlu0 %3548 }
 0xbcf   :  { %5880 = vpow2.f32 %v3544_v35 }
 0xbd0   :  { %5882 = vrcp.f32 %v3551_v47 }
 0xbd1   :  { %5884 = vrcp.f32 %v3549_v19  ;;  %v3555_v49 = vpop.xlane.xlu1 %3554 }
 0xbd2   :  { %5886 = vrcp.f32 %v3555_v49  ;;  %v3553_v53 = vpop.xlane.xlu0 %3552 }
 0xbd3   :  { %5888 = vrcp.f32 %v3553_v53 }
 0xbd5   :  { %v3559_v60 = vpop.xlane.xlu1 %3558 }
 0xbd6   :  { %5890 = vrcp.f32 %v3559_v60  ;;  %v3557_v61 = vpop.xlane.xlu0 %3556 }
 0xbd7   :  { %5892 = vrcp.f32 %v3557_v61 }
 0xbd8   :  { %v5879_v62 = vpop.eup %5878 }
 0xbd9   :  { %v5881_v7 = vpop.eup %5880  ;;  %3562 = vadd.xlane.f32.xlu1 %v5879_v62 }
 0xbda   :  { %v5883_v14 = vpop.eup %5882  ;;  %3560 = vadd.xlane.f32.xlu0 %v5881_v7 }
 0xbdb   :  { %v5885_v15 = vpop.eup %5884  ;;  %v3573_v36 = vmul.f32 %v5883_v14, %v7371_v22 }
 0xbdc   :  { %v5887_v16 = vpop.eup %5886  ;;  %v3572_v20 = vmul.f32 %v5885_v15, %v7373_v56 }
 0xbdd   :  { %v5889_v32 = vpop.eup %5888  ;;  %v3581_v58 = vmul.f32 %v3573_v36, %v8067_v41  ;;  %v3575_v10 = vmul.f32 %v5887_v16, %v7377_v48 }
 0xbde   :  { %v3580_v33 = vmul.f32 %v3572_v20, %v8066_v39  ;;  %v3574_v34 = vmul.f32 %v5889_v32, %v7379_v42 }
 0xbdf   :  { %v3583_v44 = vmul.f32 %v3575_v10, %v8069_v52 }
 0xbe0   :  { %v5891_v13 = vpop.eup %5890  ;;  %3925 = vmatprep.mubr.f32.mxu1 %v3580_v33  ;;  %v3582_v24 = vmul.f32 %v3574_v34, %v8068_v51 }
 0xbe1   :  { %v5893_v29 = vpop.eup %5892  ;;  %3926 = vmatmul.mubr.f32.vlgmr.msra.gmra.mrb[32].mxu1 %v3581_v58  ;;  %v3577_v45 = vmul.f32 %v5891_v13, %v7383_v5 }
 0xbe2   :  { %3928 = vmatprep.mubr.f32.mxu1 %v3582_v24  ;;  %v3576_v40 = vmul.f32 %v5893_v29, %v7385_v37 }
 0xbe3   :  { %v3585_v41 = vmul.f32 %v3577_v45, %v7218_v28 }
 0xbe4   :  { %v3584_v39 = vmul.f32 %v3576_v40, %v8070_v54  ;;  %v3800_v54 = vld [vmem:[%s7439_s9] ss:$0 sm:$0xff] }
 0xbe5   :  { %3929 = vmatmul.mubr.f32.gmra.mrb[34].mxu1 %v3583_v44 }
 0xbe6   :  { %3931 = vmatprep.mubr.f32.mxu1 %v3584_v39 }
 0xbe9   :  { %3932 = vmatmul.mubr.f32.gmra.mrb[36].mxu1 %v3585_v41 }
 0xc66   :  { %v3563_v46 = vpop.xlane.xlu1 %3562 }
 0xc67   :  { %5894 = vrcp.f32 %v3563_v46  ;;  %v3561_v57 = vpop.xlane.xlu0 %3560 }
 0xc68   :  { %5896 = vrcp.f32 %v3561_v57 }
 0xc71   :  { %v5895_v51 = vpop.eup %5894 }
 0xc72   :  { %v5897_v9 = vpop.eup %5896  ;;  %v3579_v25 = vmul.f32 %v5895_v51, %v5879_v62 }
 0xc73   :  { %v3578_v21 = vmul.f32 %v5897_v9, %v5881_v7 }
 0xc74   :  { %v3587_v52 = vmul.f32 %v3579_v25, %v7365_v23 }
 0xc75   :  { %v3586_v22 = vmul.f32 %v3578_v21, %v7337_v2 }
 0xc77   :  { %3934 = vmatprep.mubr.f32.mxu1 %v3586_v22 }
 0xc78   :  { %3935 = vmatmul.mubr.f32.gmra.mrb[38].mxu1 %v3587_v52 }
 0xcb4   :  { %v3927_v28 = vpop.f32.mrb[32].mxu1 }
 0xcb5   :  { %v3683_v56 = vadd.f32 %v3927_v28, %v3800_v54  ;;  %v3677_v48 = vpop.f32.mrb[33].mxu1 }
 0xcb6   :  { %v3678_v42 = vadd.f32 %v3800_v54, %v3677_v48 }
 0xcb7   :  { %3717 = vst [vmem:[%s7440_s10 + $0x8] sm:$0xff] %v3683_v56 }
 0xcb8   :  { %3716 = vst [vmem:[%s7440_s10] sm:$0xff] %v3678_v42  ;;  %v3930_v2 = vpop.f32.mrb[34].mxu1 }
 0xcb9   :  { %v3693_v23 = vadd.f32 %v3930_v2, %v3800_v54  ;;  %v3687_v5 = vpop.f32.mrb[35].mxu1 }
 0xcba   :  { %v3688_v37 = vadd.f32 %v3800_v54, %v3687_v5 }
 0xcbb   :  { %3719 = vst [vmem:[%s7440_s10 + $0x18] sm:$0xff] %v3693_v23 }
 0xcbc   :  { %3718 = vst [vmem:[%s7440_s10 + $0x10] sm:$0xff] %v3688_v37  ;;  %v3933_v55 = vpop.f32.mrb[36].mxu1 }
 0xcbd   :  { %v3703_v18 = vadd.f32 %v3933_v55, %v3800_v54  ;;  %v3697_v26 = vpop.f32.mrb[37].mxu1 }
 0xcbe   :  { %v3698_v38 = vadd.f32 %v3800_v54, %v3697_v26 }
 0xcbf   :  { %3721 = vst [vmem:[%s7440_s10 + $0x28] sm:$0xff] %v3703_v18 }
 0xcc0   :  { %3720 = vst [vmem:[%s7440_s10 + $0x20] sm:$0xff] %v3698_v38 }
 0xd4b   :  { %v3936_v63 = vpop.f32.mrb[38].mxu1 }
 0xd4c   :  { %v3713_v59 = vadd.f32 %v3936_v63, %v3800_v54  ;;  %v3707_v43 = vpop.f32.mrb[39].mxu1 }
 0xd4d   :  { %v3708_v0 = vadd.f32 %v3800_v54, %v3707_v43 }
 0xd4e   :  { %3723 = vst [vmem:[%s7440_s10 + $0x38] sm:$0xff] %v3713_v59 }
 0xd4f   :  { %3722 = vst [vmem:[%s7440_s10 + $0x30] sm:$0xff] %v3708_v0 }
 0xd50   :  { %3728 = vsyncpa [#allocation5], 1 }
 0xd51   :  { %3729 = vsyncpa [#allocation7], 1 }
 0xd52   :  { %3730 = vsyncpa [#allocation10], 1 }

</bundles_post_ra>
